<compile_context>
chip_gen: v6e
topology: v6e:2x2x1
jax: 0.10.0
libtpu: 0.0.40
codegen_flags: <defaults>
</compile_context>

<pallas_src>
import jax
import jax.numpy as jnp
from jax.experimental import pallas as pl
from jax.experimental.pallas import tpu as pltpu


# ----------------------------------------------------------------------------
# Fused Pallas kernel (one batch element per grid step)
# ----------------------------------------------------------------------------

def _up_fused_kernel(xp_ref, y_ref, u_ref, bup_ref,
                     t1x_ref, t1u_ref, b1_ref,
                     t2_ref, b2_ref,
                     t3_ref, b3_ref,
                     out_ref,
                     up_pad, t_pad, v_pad):
    f32 = jnp.float32

    def dot(a, b):
        return jnp.dot(a, b, preferred_element_type=f32)

    Do = out_ref.shape[1]          # output depth (= 2 * decoder depth)
    D = y_ref.shape[1]             # decoder depth
    LU = u_ref.shape[2]            # Ho*Wo*Cy  (upsampled plane width)
    LO = out_ref.shape[2]          # Ho*Wo*Cout

    # ---- ConvTranspose3d(k=2, s=2): one fat matmul per output-depth parity --
    y = y_ref[0]                                   # (D, H*W*Cy)
    bup = bup_ref[...]                             # (1, LU)
    ue = dot(y, u_ref[0]) + bup                    # rows 2d   of up(y)
    uo = dot(y, u_ref[1]) + bup                    # rows 2d+1 of up(y)

    # interleave even/odd rows into a depth-padded plane buffer in VMEM
    zu = jnp.zeros((1, LU), f32)
    up_pad[0:1, :] = zu
    up_pad[Do + 1:Do + 2, :] = zu
    for d in range(D):                             # static unroll (2*D rows)
        up_pad[1 + 2 * d:2 + 2 * d, :] = ue[d:d + 1]
        up_pad[2 + 2 * d:3 + 2 * d, :] = uo[d:d + 1]

    # ---- 3x3x3 conv = 3 depth-tap matmuls (H/W taps + padding folded into
    #      the (L_in, L_out) Toeplitz weights) ---------------------------------
    def conv3(row_block, t_ref):
        acc = dot(row_block(0), t_ref[0])
        acc = acc + dot(row_block(1), t_ref[1])
        acc = acc + dot(row_block(2), t_ref[2])
        return acc

    # CR: conv1(cat(x, up)) + ReLU   -- concat realized as a K-split
    c1 = conv3(lambda kd: xp_ref[0, kd:kd + Do, :], t1x_ref)
    c1 = c1 + conv3(lambda kd: up_pad[kd:kd + Do, :], t1u_ref)
    t = jnp.maximum(c1 + b1_ref[...], 0.0)          # (Do, LO)

    zo = jnp.zeros((1, LO), f32)
    t_pad[0:1, :] = zo
    t_pad[Do + 1:Do + 2, :] = zo
    t_pad[1:Do + 1, :] = t

    # RB.cr: conv2 + ReLU
    v = jnp.maximum(conv3(lambda kd: t_pad[kd:kd + Do, :], t2_ref)
                    + b2_ref[...], 0.0)
    v_pad[0:1, :] = zo
    v_pad[Do + 1:Do + 2, :] = zo
    v_pad[1:Do + 1, :] = v

    # RB.conv + residual + ReLU
    o = jnp.maximum(conv3(lambda kd: v_pad[kd:kd + Do, :], t3_ref)
                    + b3_ref[...] + t, 0.0)
    out_ref[0, :, :] = o.astype(out_ref.dtype)


# ----------------------------------------------------------------------------
# Wrapper-side weight folding (plain XLA; runs once per call under jit)
# ----------------------------------------------------------------------------

def _conv_toeplitz_hw(w_t, Ho, Wo):
    """w_t: PyTorch Conv3d weight (Co, Ci, 3, 3, 3).
    Returns (3, Ho*Wo*Ci, Ho*Wo*Co): per depth-tap kd, the H/W Toeplitz matrix
    with the padding=1 ring folded in (zeros where taps fall on padding)."""
    w = jnp.transpose(w_t, (2, 3, 4, 1, 0))            # (kd, kh, kw, Ci, Co)
    hi = jnp.arange(Ho)
    wi = jnp.arange(Wo)
    kh = hi[:, None] - hi[None, :] + 1                 # (H_in, H_out)
    kw = wi[:, None] - wi[None, :] + 1                 # (W_in, W_out)
    mh = (kh >= 0) & (kh < 3)
    mw = (kw >= 0) & (kw < 3)
    # g[kd, h_in, w_in, h_out, w_out, Ci, Co]
    g = w[:, kh.clip(0, 2)[:, None, :, None], kw.clip(0, 2)[None, :, None, :], :, :]
    g = g * (mh[:, None, :, None] & mw[None, :, None, :])[None, ..., None, None]
    g = jnp.transpose(g, (0, 1, 2, 5, 3, 4, 6))        # (kd, h_in, w_in, Ci, h_out, w_out, Co)
    Ci, Co = w_t.shape[1], w_t.shape[0]
    return g.reshape(3, Ho * Wo * Ci, Ho * Wo * Co)


def _upsample_mats(up_w, H, W):
    """up_w: PyTorch ConvTranspose3d weight (Ci, Co, 2, 2, 2), stride 2.
    Returns (2, H*W*Ci, 2H*2W*Co): per output-depth parity, the plane matmul
    implementing the transposed conv in H/W."""
    Ci, Co = up_w.shape[0], up_w.shape[1]
    Ho, Wo = 2 * H, 2 * W
    kh = jnp.arange(Ho)[None, :] - 2 * jnp.arange(H)[:, None]   # (H, Ho)
    kw = jnp.arange(Wo)[None, :] - 2 * jnp.arange(W)[:, None]   # (W, Wo)
    mh = (kh >= 0) & (kh < 2)
    mw = (kw >= 0) & (kw < 2)
    w = jnp.transpose(up_w, (2, 3, 4, 0, 1))           # (p, kh, kw, Ci, Co)
    g = w[:, kh.clip(0, 1)[:, None, :, None], kw.clip(0, 1)[None, :, None, :], :, :]
    g = g * (mh[:, None, :, None] & mw[None, :, None, :])[None, ..., None, None]
    g = jnp.transpose(g, (0, 1, 2, 5, 3, 4, 6))        # (p, h, w, Ci, h', w', Co)
    return g.reshape(2, H * W * Ci, Ho * Wo * Co)


def up_forward(x_ncdhw, y_ncdhw, p):
    """Up.forward(x, y) = RB(CR(cat(x, up(y), dim=1))) — inputs/outputs NCDHW."""
    N, Cx, Do, Ho, Wo = x_ncdhw.shape
    _, Cy, D, H, W = y_ncdhw.shape
    Co = p["c1_w"].shape[0]

    LX, LY = Ho * Wo * Cx, H * W * Cy
    LU, LO = Ho * Wo * Cy, Ho * Wo * Co

    # channels-last planes; skip connection zero-padded by 1 in depth.
    x = jnp.transpose(x_ncdhw, (0, 2, 3, 4, 1)).reshape(N, Do, LX)
    xp = jnp.pad(x, ((0, 0), (1, 1), (0, 0)))
    y = jnp.transpose(y_ncdhw, (0, 2, 3, 4, 1)).reshape(N, D, LY)

    # fold ConvTranspose / concat / H,W taps / padding into matmul weights
    u_mats = _upsample_mats(p["up_w"], H, W)                    # (2, LY, LU)
    bup = jnp.tile(p["up_b"], Ho * Wo).reshape(1, LU)
    t1 = _conv_toeplitz_hw(p["c1_w"], Ho, Wo)                   # (3, Ho*Wo*(Cx+Cy), LO)
    t1 = t1.reshape(3, Ho * Wo, Cx + Cy, LO)
    t1x = t1[:, :, :Cx, :].reshape(3, LX, LO)                   # x-channel block
    t1u = t1[:, :, Cx:, :].reshape(3, LU, LO)                   # up-channel block
    t2 = _conv_toeplitz_hw(p["c2_w"], Ho, Wo)                   # (3, LO, LO)
    t3 = _conv_toeplitz_hw(p["c3_w"], Ho, Wo)                   # (3, LO, LO)
    b1 = jnp.tile(p["c1_b"], Ho * Wo).reshape(1, LO)
    b2 = jnp.tile(p["c2_b"], Ho * Wo).reshape(1, LO)
    b3 = jnp.tile(p["c3_b"], Ho * Wo).reshape(1, LO)

    out = pl.pallas_call(
        _up_fused_kernel,
        out_shape=jax.ShapeDtypeStruct((N, Do, LO), jnp.float32),
        grid=(N,),
        in_specs=[
            pl.BlockSpec((1, Do + 2, LX), lambda n: (n, 0, 0)),   # xp
            pl.BlockSpec((1, D, LY), lambda n: (n, 0, 0)),        # y
            pl.BlockSpec((2, LY, LU), lambda n: (0, 0, 0)),       # upsample mats
            pl.BlockSpec((1, LU), lambda n: (0, 0)),              # up bias plane
            pl.BlockSpec((3, LX, LO), lambda n: (0, 0, 0)),       # conv1 (x part)
            pl.BlockSpec((3, LU, LO), lambda n: (0, 0, 0)),       # conv1 (up part)
            pl.BlockSpec((1, LO), lambda n: (0, 0)),              # b1
            pl.BlockSpec((3, LO, LO), lambda n: (0, 0, 0)),       # conv2
            pl.BlockSpec((1, LO), lambda n: (0, 0)),              # b2
            pl.BlockSpec((3, LO, LO), lambda n: (0, 0, 0)),       # conv3
            pl.BlockSpec((1, LO), lambda n: (0, 0)),              # b3
        ],
        out_specs=pl.BlockSpec((1, Do, LO), lambda n: (n, 0, 0)),
        scratch_shapes=[
            pltpu.VMEM((Do + 2, LU), jnp.float32),   # depth-padded up planes
            pltpu.VMEM((Do + 2, LO), jnp.float32),   # depth-padded t planes
            pltpu.VMEM((Do + 2, LO), jnp.float32),   # depth-padded u planes
        ],
        compiler_params=pltpu.CompilerParams(
            dimension_semantics=("parallel",),
            vmem_limit_bytes=32 * 1024 * 1024,
        ),
    )(xp, y, u_mats, bup, t1x, t1u, b1, t2, b2, t3, b3)

    out = out.reshape(N, Do, Ho, Wo, Co)
    return jnp.transpose(out, (0, 4, 1, 2, 3))


# ----------------------------------------------------------------------------
# Pure-JAX reference (sanity check only)
# ----------------------------------------------------------------------------

def _conv3d_ref(x, w_t, b):
    w = jnp.transpose(w_t, (2, 3, 4, 1, 0))  # DHWIO
    out = jax.lax.conv_general_dilated(
        x, w, window_strides=(1, 1, 1), padding="SAME",
        dimension_numbers=("NDHWC", "DHWIO", "NDHWC"),
        precision=jax.lax.Precision.HIGHEST)
    return out + b


def up_forward_ref(x_ncdhw, y_ncdhw, p):
    x = jnp.transpose(x_ncdhw, (0, 2, 3, 4, 1))
    y = jnp.transpose(y_ncdhw, (0, 2, 3, 4, 1))
    N, D, H, W, Cin = y.shape
    Cout = p["up_w"].shape[1]
    wt = jnp.transpose(p["up_w"], (0, 2, 3, 4, 1))  # (Cin, 2,2,2, Cout)
    up = jnp.einsum("ndhwc,cijko->ndhwijko", y, wt,
                    precision=jax.lax.Precision.HIGHEST) + p["up_b"]
    up = jnp.transpose(up, (0, 1, 4, 2, 5, 3, 6, 7)).reshape(
        N, 2 * D, 2 * H, 2 * W, Cout)
    cat = jnp.concatenate([x, up], axis=-1)
    t = jax.nn.relu(_conv3d_ref(cat, p["c1_w"], p["c1_b"]))
    u = jax.nn.relu(_conv3d_ref(t, p["c2_w"], p["c2_b"]))
    out = jax.nn.relu(_conv3d_ref(u, p["c3_w"], p["c3_b"]) + t)
    return jnp.transpose(out, (0, 4, 1, 2, 3))


# ----------------------------------------------------------------------------
# Main
# ----------------------------------------------------------------------------

if __name__ == "__main__":
    # Up(in_channels=8, out_channels=4):
    #   y: (N, in_channels, D, H, W)      -> decoder feature (to be upsampled)
    #   x: (N, out_channels, 2D, 2H, 2W)  -> encoder skip connection
    N = 2
    Cin_up, Cout = 8, 4
    D = H = W = 4

    key = jax.random.PRNGKey(0)
    keys = jax.random.split(key, 10)

    x = jax.random.normal(keys[0], (N, Cout, 2 * D, 2 * H, 2 * W), jnp.float32)
    y = jax.random.normal(keys[1], (N, Cin_up, D, H, W), jnp.float32)

    params = {
        # ConvTranspose3d(Cin_up, Cin_up, 2, stride=2): weight (Cin, Cout, 2,2,2)
        "up_w": 0.1 * jax.random.normal(keys[2], (Cin_up, Cin_up, 2, 2, 2), jnp.float32),
        "up_b": 0.1 * jax.random.normal(keys[3], (Cin_up,), jnp.float32),
        # CR: Conv3d(Cin_up + Cout, Cout, 3, padding=1)
        "c1_w": 0.1 * jax.random.normal(keys[4], (Cout, Cin_up + Cout, 3, 3, 3), jnp.float32),
        "c1_b": 0.1 * jax.random.normal(keys[5], (Cout,), jnp.float32),
        # RB.cr: Conv3d(Cout, Cout, 3, padding=1)
        "c2_w": 0.1 * jax.random.normal(keys[6], (Cout, Cout, 3, 3, 3), jnp.float32),
        "c2_b": 0.1 * jax.random.normal(keys[7], (Cout,), jnp.float32),
        # RB.conv: Conv3d(Cout, Cout, 3, padding=1)
        "c3_w": 0.1 * jax.random.normal(keys[8], (Cout, Cout, 3, 3, 3), jnp.float32),
        "c3_b": 0.1 * jax.random.normal(keys[9], (Cout,), jnp.float32),
    }

    out = jax.jit(up_forward)(x, y, params)
    out = jax.block_until_ready(out)

    ref = up_forward_ref(x, y, params)
    assert out.shape == (N, Cout, 2 * D, 2 * H, 2 * W), out.shape
    assert jnp.allclose(out, ref, atol=2e-3, rtol=2e-3), float(
        jnp.max(jnp.abs(out - ref)))

    print("KERNEL_OK")
</pallas_src>

<mosaic_0001>
module attributes {stable_mosaic.version = 11 : i64} {
  func.func @_up_fused_kernel(%arg0: i32, %arg1: memref<1x10x256xf32, #tpu.memory_space<vmem>>, %arg2: memref<1x4x128xf32, #tpu.memory_space<vmem>>, %arg3: memref<2x128x512xf32, #tpu.memory_space<vmem>>, %arg4: memref<1x512xf32, #tpu.memory_space<vmem>>, %arg5: memref<3x256x256xf32, #tpu.memory_space<vmem>>, %arg6: memref<3x512x256xf32, #tpu.memory_space<vmem>>, %arg7: memref<1x256xf32, #tpu.memory_space<vmem>>, %arg8: memref<3x256x256xf32, #tpu.memory_space<vmem>>, %arg9: memref<1x256xf32, #tpu.memory_space<vmem>>, %arg10: memref<3x256x256xf32, #tpu.memory_space<vmem>>, %arg11: memref<1x256xf32, #tpu.memory_space<vmem>>, %arg12: memref<1x8x256xf32, #tpu.memory_space<vmem>>, %arg13: memref<10x512xf32, #tpu.memory_space<vmem>>, %arg14: memref<10x256xf32, #tpu.memory_space<vmem>>, %arg15: memref<10x256xf32, #tpu.memory_space<vmem>>) attributes {dimension_semantics = [#tpu.dimension_semantics<parallel>], iteration_bounds = array<i64: 2>, scalar_prefetch = 0 : i64, scratch_operands = 3 : i64, tpu.core_type = #tpu.core_type<tc>, window_params = [{transform_indices = @transform_0, window_bounds = array<i64: 1, 10, 256>}, {transform_indices = @transform_1, window_bounds = array<i64: 1, 4, 128>}, {pipeline_mode = #tpu.pipeline_mode<synchronous>, transform_indices = @transform_2, window_bounds = array<i64: 2, 128, 512>}, {pipeline_mode = #tpu.pipeline_mode<synchronous>, transform_indices = @transform_3, window_bounds = array<i64: 1, 512>}, {pipeline_mode = #tpu.pipeline_mode<synchronous>, transform_indices = @transform_4, window_bounds = array<i64: 3, 256, 256>}, {pipeline_mode = #tpu.pipeline_mode<synchronous>, transform_indices = @transform_5, window_bounds = array<i64: 3, 512, 256>}, {pipeline_mode = #tpu.pipeline_mode<synchronous>, transform_indices = @transform_6, window_bounds = array<i64: 1, 256>}, {pipeline_mode = #tpu.pipeline_mode<synchronous>, transform_indices = @transform_7, window_bounds = array<i64: 3, 256, 256>}, {pipeline_mode = #tpu.pipeline_mode<synchronous>, transform_indices = @transform_8, window_bounds = array<i64: 1, 256>}, {pipeline_mode = #tpu.pipeline_mode<synchronous>, transform_indices = @transform_9, window_bounds = array<i64: 3, 256, 256>}, {pipeline_mode = #tpu.pipeline_mode<synchronous>, transform_indices = @transform_10, window_bounds = array<i64: 1, 256>}, {transform_indices = @transform_11, window_bounds = array<i64: 1, 8, 256>}]} {
    %c0 = arith.constant 0 : index
    %c0_0 = arith.constant 0 : index
    %c0_1 = arith.constant 0 : index
    %0 = vector.load %arg2[%c0, %c0_0, %c0_1] : memref<1x4x128xf32, #tpu.memory_space<vmem>>, vector<1x4x128xf32>
    %1 = vector.shape_cast %0 : vector<1x4x128xf32> to vector<4x128xf32>
    %c0_2 = arith.constant 0 : index
    %c0_3 = arith.constant 0 : index
    %2 = vector.load %arg4[%c0_2, %c0_3] : memref<1x512xf32, #tpu.memory_space<vmem>>, vector<1x512xf32>
    %c0_4 = arith.constant 0 : index
    %c0_5 = arith.constant 0 : index
    %c0_6 = arith.constant 0 : index
    %3 = vector.load %arg3[%c0_4, %c0_5, %c0_6] : memref<2x128x512xf32, #tpu.memory_space<vmem>>, vector<1x128x512xf32>
    %4 = vector.shape_cast %3 : vector<1x128x512xf32> to vector<128x512xf32>
    %cst = arith.constant dense<0.000000e+00> : vector<4x512xf32>
    %5 = tpu.matmul %1, %4, %cst {dimension_numbers = #tpu.dot_dimension_numbers<[1], [0], [0], [1], [0, 0, 1, 1], [], []>} : vector<4x128xf32>, vector<128x512xf32>, vector<4x512xf32> -> vector<4x512xf32>
    %6 = vector.broadcast %2 : vector<1x512xf32> to vector<4x512xf32>
    %7 = arith.addf %5, %6 : vector<4x512xf32>
    %c1 = arith.constant 1 : index
    %c0_7 = arith.constant 0 : index
    %c0_8 = arith.constant 0 : index
    %8 = vector.load %arg3[%c1, %c0_7, %c0_8] : memref<2x128x512xf32, #tpu.memory_space<vmem>>, vector<1x128x512xf32>
    %9 = vector.shape_cast %8 : vector<1x128x512xf32> to vector<128x512xf32>
    %cst_9 = arith.constant dense<0.000000e+00> : vector<4x512xf32>
    %10 = tpu.matmul %1, %9, %cst_9 {dimension_numbers = #tpu.dot_dimension_numbers<[1], [0], [0], [1], [0, 0, 1, 1], [], []>} : vector<4x128xf32>, vector<128x512xf32>, vector<4x512xf32> -> vector<4x512xf32>
    %11 = vector.broadcast %2 : vector<1x512xf32> to vector<4x512xf32>
    %12 = arith.addf %10, %11 : vector<4x512xf32>
    %cst_10 = arith.constant 0.000000e+00 : f32
    %13 = vector.broadcast %cst_10 : f32 to vector<1x512xf32>
    %c0_11 = arith.constant 0 : index
    %c0_12 = arith.constant 0 : index
    %14 = vector.load %arg13[%c0_11, %c0_12] : memref<10x512xf32, #tpu.memory_space<vmem>>, vector<1x512xf32>
    tpu.vector_store %arg13[%c0_11, %c0_12], %13 {strides = array<i32>} : memref<10x512xf32, #tpu.memory_space<vmem>>, vector<1x512xf32>,
    %c9 = arith.constant 9 : index
    %c0_13 = arith.constant 0 : index
    %15 = vector.load %arg13[%c9, %c0_13] : memref<10x512xf32, #tpu.memory_space<vmem>>, vector<1x512xf32>
    tpu.vector_store %arg13[%c9, %c0_13], %13 {strides = array<i32>} : memref<10x512xf32, #tpu.memory_space<vmem>>, vector<1x512xf32>,
    %16 = vector.extract_strided_slice %7 {offsets = [0, 0], sizes = [1, 512], strides = [1, 1]} : vector<4x512xf32> to vector<1x512xf32>
    %c1_14 = arith.constant 1 : index
    %c0_15 = arith.constant 0 : index
    %17 = vector.load %arg13[%c1_14, %c0_15] : memref<10x512xf32, #tpu.memory_space<vmem>>, vector<1x512xf32>
    tpu.vector_store %arg13[%c1_14, %c0_15], %16 {strides = array<i32>} : memref<10x512xf32, #tpu.memory_space<vmem>>, vector<1x512xf32>,
    %18 = vector.extract_strided_slice %12 {offsets = [0, 0], sizes = [1, 512], strides = [1, 1]} : vector<4x512xf32> to vector<1x512xf32>
    %c2 = arith.constant 2 : index
    %c0_16 = arith.constant 0 : index
    %19 = vector.load %arg13[%c2, %c0_16] : memref<10x512xf32, #tpu.memory_space<vmem>>, vector<1x512xf32>
    tpu.vector_store %arg13[%c2, %c0_16], %18 {strides = array<i32>} : memref<10x512xf32, #tpu.memory_space<vmem>>, vector<1x512xf32>,
    %20 = vector.extract_strided_slice %7 {offsets = [1, 0], sizes = [1, 512], strides = [1, 1]} : vector<4x512xf32> to vector<1x512xf32>
    %c3 = arith.constant 3 : index
    %c0_17 = arith.constant 0 : index
    %21 = vector.load %arg13[%c3, %c0_17] : memref<10x512xf32, #tpu.memory_space<vmem>>, vector<1x512xf32>
    tpu.vector_store %arg13[%c3, %c0_17], %20 {strides = array<i32>} : memref<10x512xf32, #tpu.memory_space<vmem>>, vector<1x512xf32>,
    %22 = vector.extract_strided_slice %12 {offsets = [1, 0], sizes = [1, 512], strides = [1, 1]} : vector<4x512xf32> to vector<1x512xf32>
    %c4 = arith.constant 4 : index
    %c0_18 = arith.constant 0 : index
    %23 = vector.load %arg13[%c4, %c0_18] : memref<10x512xf32, #tpu.memory_space<vmem>>, vector<1x512xf32>
    tpu.vector_store %arg13[%c4, %c0_18], %22 {strides = array<i32>} : memref<10x512xf32, #tpu.memory_space<vmem>>, vector<1x512xf32>,
    %24 = vector.extract_strided_slice %7 {offsets = [2, 0], sizes = [1, 512], strides = [1, 1]} : vector<4x512xf32> to vector<1x512xf32>
    %c5 = arith.constant 5 : index
    %c0_19 = arith.constant 0 : index
    %25 = vector.load %arg13[%c5, %c0_19] : memref<10x512xf32, #tpu.memory_space<vmem>>, vector<1x512xf32>
    tpu.vector_store %arg13[%c5, %c0_19], %24 {strides = array<i32>} : memref<10x512xf32, #tpu.memory_space<vmem>>, vector<1x512xf32>,
    %26 = vector.extract_strided_slice %12 {offsets = [2, 0], sizes = [1, 512], strides = [1, 1]} : vector<4x512xf32> to vector<1x512xf32>
    %c6 = arith.constant 6 : index
    %c0_20 = arith.constant 0 : index
    %27 = vector.load %arg13[%c6, %c0_20] : memref<10x512xf32, #tpu.memory_space<vmem>>, vector<1x512xf32>
    tpu.vector_store %arg13[%c6, %c0_20], %26 {strides = array<i32>} : memref<10x512xf32, #tpu.memory_space<vmem>>, vector<1x512xf32>,
    %28 = vector.extract_strided_slice %7 {offsets = [3, 0], sizes = [1, 512], strides = [1, 1]} : vector<4x512xf32> to vector<1x512xf32>
    %c7 = arith.constant 7 : index
    %c0_21 = arith.constant 0 : index
    %29 = vector.load %arg13[%c7, %c0_21] : memref<10x512xf32, #tpu.memory_space<vmem>>, vector<1x512xf32>
    tpu.vector_store %arg13[%c7, %c0_21], %28 {strides = array<i32>} : memref<10x512xf32, #tpu.memory_space<vmem>>, vector<1x512xf32>,
    %30 = vector.extract_strided_slice %12 {offsets = [3, 0], sizes = [1, 512], strides = [1, 1]} : vector<4x512xf32> to vector<1x512xf32>
    %c8 = arith.constant 8 : index
    %c0_22 = arith.constant 0 : index
    %31 = vector.load %arg13[%c8, %c0_22] : memref<10x512xf32, #tpu.memory_space<vmem>>, vector<1x512xf32>
    tpu.vector_store %arg13[%c8, %c0_22], %30 {strides = array<i32>} : memref<10x512xf32, #tpu.memory_space<vmem>>, vector<1x512xf32>,
    %c0_23 = arith.constant 0 : index
    %c0_24 = arith.constant 0 : index
    %c0_25 = arith.constant 0 : index
    %32 = vector.load %arg1[%c0_23, %c0_24, %c0_25] : memref<1x10x256xf32, #tpu.memory_space<vmem>>, vector<1x8x256xf32>
    %33 = vector.shape_cast %32 : vector<1x8x256xf32> to vector<8x256xf32>
    %c0_26 = arith.constant 0 : index
    %c0_27 = arith.constant 0 : index
    %c0_28 = arith.constant 0 : index
    %34 = vector.load %arg5[%c0_26, %c0_27, %c0_28] : memref<3x256x256xf32, #tpu.memory_space<vmem>>, vector<1x256x256xf32>
    %35 = vector.shape_cast %34 : vector<1x256x256xf32> to vector<256x256xf32>
    %cst_29 = arith.constant dense<0.000000e+00> : vector<8x256xf32>
    %36 = tpu.matmul %33, %35, %cst_29 {dimension_numbers = #tpu.dot_dimension_numbers<[1], [0], [0], [1], [0, 0, 1, 1], [], []>} : vector<8x256xf32>, vector<256x256xf32>, vector<8x256xf32> -> vector<8x256xf32>
    %c0_30 = arith.constant 0 : index
    %c1_31 = arith.constant 1 : index
    %c0_32 = arith.constant 0 : index
    %37 = vector.load %arg1[%c0_30, %c1_31, %c0_32] : memref<1x10x256xf32, #tpu.memory_space<vmem>>, vector<1x8x256xf32>
    %38 = vector.shape_cast %37 : vector<1x8x256xf32> to vector<8x256xf32>
    %c1_33 = arith.constant 1 : index
    %c0_34 = arith.constant 0 : index
    %c0_35 = arith.constant 0 : index
    %39 = vector.load %arg5[%c1_33, %c0_34, %c0_35] : memref<3x256x256xf32, #tpu.memory_space<vmem>>, vector<1x256x256xf32>
    %40 = vector.shape_cast %39 : vector<1x256x256xf32> to vector<256x256xf32>
    %cst_36 = arith.constant dense<0.000000e+00> : vector<8x256xf32>
    %41 = tpu.matmul %38, %40, %cst_36 {dimension_numbers = #tpu.dot_dimension_numbers<[1], [0], [0], [1], [0, 0, 1, 1], [], []>} : vector<8x256xf32>, vector<256x256xf32>, vector<8x256xf32> -> vector<8x256xf32>
    %42 = arith.addf %36, %41 : vector<8x256xf32>
    %c0_37 = arith.constant 0 : index
    %c2_38 = arith.constant 2 : index
    %c0_39 = arith.constant 0 : index
    %43 = vector.load %arg1[%c0_37, %c2_38, %c0_39] : memref<1x10x256xf32, #tpu.memory_space<vmem>>, vector<1x8x256xf32>
    %44 = vector.shape_cast %43 : vector<1x8x256xf32> to vector<8x256xf32>
    %c2_40 = arith.constant 2 : index
    %c0_41 = arith.constant 0 : index
    %c0_42 = arith.constant 0 : index
    %45 = vector.load %arg5[%c2_40, %c0_41, %c0_42] : memref<3x256x256xf32, #tpu.memory_space<vmem>>, vector<1x256x256xf32>
    %46 = vector.shape_cast %45 : vector<1x256x256xf32> to vector<256x256xf32>
    %cst_43 = arith.constant dense<0.000000e+00> : vector<8x256xf32>
    %47 = tpu.matmul %44, %46, %cst_43 {dimension_numbers = #tpu.dot_dimension_numbers<[1], [0], [0], [1], [0, 0, 1, 1], [], []>} : vector<8x256xf32>, vector<256x256xf32>, vector<8x256xf32> -> vector<8x256xf32>
    %48 = arith.addf %42, %47 : vector<8x256xf32>
    %c0_44 = arith.constant 0 : index
    %c0_45 = arith.constant 0 : index
    %49 = vector.load %arg13[%c0_44, %c0_45] : memref<10x512xf32, #tpu.memory_space<vmem>>, vector<8x512xf32>
    %c0_46 = arith.constant 0 : index
    %c0_47 = arith.constant 0 : index
    %c0_48 = arith.constant 0 : index
    %50 = vector.load %arg6[%c0_46, %c0_47, %c0_48] : memref<3x512x256xf32, #tpu.memory_space<vmem>>, vector<1x512x256xf32>
    %51 = vector.shape_cast %50 : vector<1x512x256xf32> to vector<512x256xf32>
    %cst_49 = arith.constant dense<0.000000e+00> : vector<8x256xf32>
    %52 = tpu.matmul %49, %51, %cst_49 {dimension_numbers = #tpu.dot_dimension_numbers<[1], [0], [0], [1], [0, 0, 1, 1], [], []>} : vector<8x512xf32>, vector<512x256xf32>, vector<8x256xf32> -> vector<8x256xf32>
    %c1_50 = arith.constant 1 : index
    %c0_51 = arith.constant 0 : index
    %53 = vector.load %arg13[%c1_50, %c0_51] : memref<10x512xf32, #tpu.memory_space<vmem>>, vector<8x512xf32>
    %c1_52 = arith.constant 1 : index
    %c0_53 = arith.constant 0 : index
    %c0_54 = arith.constant 0 : index
    %54 = vector.load %arg6[%c1_52, %c0_53, %c0_54] : memref<3x512x256xf32, #tpu.memory_space<vmem>>, vector<1x512x256xf32>
    %55 = vector.shape_cast %54 : vector<1x512x256xf32> to vector<512x256xf32>
    %cst_55 = arith.constant dense<0.000000e+00> : vector<8x256xf32>
    %56 = tpu.matmul %53, %55, %cst_55 {dimension_numbers = #tpu.dot_dimension_numbers<[1], [0], [0], [1], [0, 0, 1, 1], [], []>} : vector<8x512xf32>, vector<512x256xf32>, vector<8x256xf32> -> vector<8x256xf32>
    %57 = arith.addf %52, %56 : vector<8x256xf32>
    %c2_56 = arith.constant 2 : index
    %c0_57 = arith.constant 0 : index
    %58 = vector.load %arg13[%c2_56, %c0_57] : memref<10x512xf32, #tpu.memory_space<vmem>>, vector<8x512xf32>
    %c2_58 = arith.constant 2 : index
    %c0_59 = arith.constant 0 : index
    %c0_60 = arith.constant 0 : index
    %59 = vector.load %arg6[%c2_58, %c0_59, %c0_60] : memref<3x512x256xf32, #tpu.memory_space<vmem>>, vector<1x512x256xf32>
    %60 = vector.shape_cast %59 : vector<1x512x256xf32> to vector<512x256xf32>
    %cst_61 = arith.constant dense<0.000000e+00> : vector<8x256xf32>
    %61 = tpu.matmul %58, %60, %cst_61 {dimension_numbers = #tpu.dot_dimension_numbers<[1], [0], [0], [1], [0, 0, 1, 1], [], []>} : vector<8x512xf32>, vector<512x256xf32>, vector<8x256xf32> -> vector<8x256xf32>
    %62 = arith.addf %57, %61 : vector<8x256xf32>
    %63 = arith.addf %48, %62 : vector<8x256xf32>
    %c0_62 = arith.constant 0 : index
    %c0_63 = arith.constant 0 : index
    %64 = vector.load %arg7[%c0_62, %c0_63] : memref<1x256xf32, #tpu.memory_space<vmem>>, vector<1x256xf32>
    %65 = vector.broadcast %64 : vector<1x256xf32> to vector<8x256xf32>
    %66 = arith.addf %63, %65 : vector<8x256xf32>
    %cst_64 = arith.constant 0.000000e+00 : f32
    %67 = vector.broadcast %cst_64 : f32 to vector<8x256xf32>
    %68 = arith.maximumf %66, %67 : vector<8x256xf32>
    %cst_65 = arith.constant 0.000000e+00 : f32
    %69 = vector.broadcast %cst_65 : f32 to vector<1x256xf32>
    %c0_66 = arith.constant 0 : index
    %c0_67 = arith.constant 0 : index
    %70 = vector.load %arg14[%c0_66, %c0_67] : memref<10x256xf32, #tpu.memory_space<vmem>>, vector<1x256xf32>
    tpu.vector_store %arg14[%c0_66, %c0_67], %69 {strides = array<i32>} : memref<10x256xf32, #tpu.memory_space<vmem>>, vector<1x256xf32>,
    %c9_68 = arith.constant 9 : index
    %c0_69 = arith.constant 0 : index
    %71 = vector.load %arg14[%c9_68, %c0_69] : memref<10x256xf32, #tpu.memory_space<vmem>>, vector<1x256xf32>
    tpu.vector_store %arg14[%c9_68, %c0_69], %69 {strides = array<i32>} : memref<10x256xf32, #tpu.memory_space<vmem>>, vector<1x256xf32>,
    %c1_70 = arith.constant 1 : index
    %c0_71 = arith.constant 0 : index
    %72 = vector.load %arg14[%c1_70, %c0_71] : memref<10x256xf32, #tpu.memory_space<vmem>>, vector<8x256xf32>
    tpu.vector_store %arg14[%c1_70, %c0_71], %68 {strides = array<i32>} : memref<10x256xf32, #tpu.memory_space<vmem>>, vector<8x256xf32>,
    %c0_72 = arith.constant 0 : index
    %c0_73 = arith.constant 0 : index
    %73 = vector.load %arg14[%c0_72, %c0_73] : memref<10x256xf32, #tpu.memory_space<vmem>>, vector<8x256xf32>
    %c0_74 = arith.constant 0 : index
    %c0_75 = arith.constant 0 : index
    %c0_76 = arith.constant 0 : index
    %74 = vector.load %arg8[%c0_74, %c0_75, %c0_76] : memref<3x256x256xf32, #tpu.memory_space<vmem>>, vector<1x256x256xf32>
    %75 = vector.shape_cast %74 : vector<1x256x256xf32> to vector<256x256xf32>
    %cst_77 = arith.constant dense<0.000000e+00> : vector<8x256xf32>
    %76 = tpu.matmul %73, %75, %cst_77 {dimension_numbers = #tpu.dot_dimension_numbers<[1], [0], [0], [1], [0, 0, 1, 1], [], []>} : vector<8x256xf32>, vector<256x256xf32>, vector<8x256xf32> -> vector<8x256xf32>
    %c1_78 = arith.constant 1 : index
    %c0_79 = arith.constant 0 : index
    %77 = vector.load %arg14[%c1_78, %c0_79] : memref<10x256xf32, #tpu.memory_space<vmem>>, vector<8x256xf32>
    %c1_80 = arith.constant 1 : index
    %c0_81 = arith.constant 0 : index
    %c0_82 = arith.constant 0 : index
    %78 = vector.load %arg8[%c1_80, %c0_81, %c0_82] : memref<3x256x256xf32, #tpu.memory_space<vmem>>, vector<1x256x256xf32>
    %79 = vector.shape_cast %78 : vector<1x256x256xf32> to vector<256x256xf32>
    %cst_83 = arith.constant dense<0.000000e+00> : vector<8x256xf32>
    %80 = tpu.matmul %77, %79, %cst_83 {dimension_numbers = #tpu.dot_dimension_numbers<[1], [0], [0], [1], [0, 0, 1, 1], [], []>} : vector<8x256xf32>, vector<256x256xf32>, vector<8x256xf32> -> vector<8x256xf32>
    %81 = arith.addf %76, %80 : vector<8x256xf32>
    %c2_84 = arith.constant 2 : index
    %c0_85 = arith.constant 0 : index
    %82 = vector.load %arg14[%c2_84, %c0_85] : memref<10x256xf32, #tpu.memory_space<vmem>>, vector<8x256xf32>
    %c2_86 = arith.constant 2 : index
    %c0_87 = arith.constant 0 : index
    %c0_88 = arith.constant 0 : index
    %83 = vector.load %arg8[%c2_86, %c0_87, %c0_88] : memref<3x256x256xf32, #tpu.memory_space<vmem>>, vector<1x256x256xf32>
    %84 = vector.shape_cast %83 : vector<1x256x256xf32> to vector<256x256xf32>
    %cst_89 = arith.constant dense<0.000000e+00> : vector<8x256xf32>
    %85 = tpu.matmul %82, %84, %cst_89 {dimension_numbers = #tpu.dot_dimension_numbers<[1], [0], [0], [1], [0, 0, 1, 1], [], []>} : vector<8x256xf32>, vector<256x256xf32>, vector<8x256xf32> -> vector<8x256xf32>
    %86 = arith.addf %81, %85 : vector<8x256xf32>
    %c0_90 = arith.constant 0 : index
    %c0_91 = arith.constant 0 : index
    %87 = vector.load %arg9[%c0_90, %c0_91] : memref<1x256xf32, #tpu.memory_space<vmem>>, vector<1x256xf32>
    %88 = vector.broadcast %87 : vector<1x256xf32> to vector<8x256xf32>
    %89 = arith.addf %86, %88 : vector<8x256xf32>
    %cst_92 = arith.constant 0.000000e+00 : f32
    %90 = vector.broadcast %cst_92 : f32 to vector<8x256xf32>
    %91 = arith.maximumf %89, %90 : vector<8x256xf32>
    %c0_93 = arith.constant 0 : index
    %c0_94 = arith.constant 0 : index
    %92 = vector.load %arg15[%c0_93, %c0_94] : memref<10x256xf32, #tpu.memory_space<vmem>>, vector<1x256xf32>
    tpu.vector_store %arg15[%c0_93, %c0_94], %69 {strides = array<i32>} : memref<10x256xf32, #tpu.memory_space<vmem>>, vector<1x256xf32>,
    %c9_95 = arith.constant 9 : index
    %c0_96 = arith.constant 0 : index
    %93 = vector.load %arg15[%c9_95, %c0_96] : memref<10x256xf32, #tpu.memory_space<vmem>>, vector<1x256xf32>
    tpu.vector_store %arg15[%c9_95, %c0_96], %69 {strides = array<i32>} : memref<10x256xf32, #tpu.memory_space<vmem>>, vector<1x256xf32>,
    %c1_97 = arith.constant 1 : index
    %c0_98 = arith.constant 0 : index
    %94 = vector.load %arg15[%c1_97, %c0_98] : memref<10x256xf32, #tpu.memory_space<vmem>>, vector<8x256xf32>
    tpu.vector_store %arg15[%c1_97, %c0_98], %91 {strides = array<i32>} : memref<10x256xf32, #tpu.memory_space<vmem>>, vector<8x256xf32>,
    %c0_99 = arith.constant 0 : index
    %c0_100 = arith.constant 0 : index
    %95 = vector.load %arg15[%c0_99, %c0_100] : memref<10x256xf32, #tpu.memory_space<vmem>>, vector<8x256xf32>
    %c0_101 = arith.constant 0 : index
    %c0_102 = arith.constant 0 : index
    %c0_103 = arith.constant 0 : index
    %96 = vector.load %arg10[%c0_101, %c0_102, %c0_103] : memref<3x256x256xf32, #tpu.memory_space<vmem>>, vector<1x256x256xf32>
    %97 = vector.shape_cast %96 : vector<1x256x256xf32> to vector<256x256xf32>
    %cst_104 = arith.constant dense<0.000000e+00> : vector<8x256xf32>
    %98 = tpu.matmul %95, %97, %cst_104 {dimension_numbers = #tpu.dot_dimension_numbers<[1], [0], [0], [1], [0, 0, 1, 1], [], []>} : vector<8x256xf32>, vector<256x256xf32>, vector<8x256xf32> -> vector<8x256xf32>
    %c1_105 = arith.constant 1 : index
    %c0_106 = arith.constant 0 : index
    %99 = vector.load %arg15[%c1_105, %c0_106] : memref<10x256xf32, #tpu.memory_space<vmem>>, vector<8x256xf32>
    %c1_107 = arith.constant 1 : index
    %c0_108 = arith.constant 0 : index
    %c0_109 = arith.constant 0 : index
    %100 = vector.load %arg10[%c1_107, %c0_108, %c0_109] : memref<3x256x256xf32, #tpu.memory_space<vmem>>, vector<1x256x256xf32>
    %101 = vector.shape_cast %100 : vector<1x256x256xf32> to vector<256x256xf32>
    %cst_110 = arith.constant dense<0.000000e+00> : vector<8x256xf32>
    %102 = tpu.matmul %99, %101, %cst_110 {dimension_numbers = #tpu.dot_dimension_numbers<[1], [0], [0], [1], [0, 0, 1, 1], [], []>} : vector<8x256xf32>, vector<256x256xf32>, vector<8x256xf32> -> vector<8x256xf32>
    %103 = arith.addf %98, %102 : vector<8x256xf32>
    %c2_111 = arith.constant 2 : index
    %c0_112 = arith.constant 0 : index
    %104 = vector.load %arg15[%c2_111, %c0_112] : memref<10x256xf32, #tpu.memory_space<vmem>>, vector<8x256xf32>
    %c2_113 = arith.constant 2 : index
    %c0_114 = arith.constant 0 : index
    %c0_115 = arith.constant 0 : index
    %105 = vector.load %arg10[%c2_113, %c0_114, %c0_115] : memref<3x256x256xf32, #tpu.memory_space<vmem>>, vector<1x256x256xf32>
    %106 = vector.shape_cast %105 : vector<1x256x256xf32> to vector<256x256xf32>
    %cst_116 = arith.constant dense<0.000000e+00> : vector<8x256xf32>
    %107 = tpu.matmul %104, %106, %cst_116 {dimension_numbers = #tpu.dot_dimension_numbers<[1], [0], [0], [1], [0, 0, 1, 1], [], []>} : vector<8x256xf32>, vector<256x256xf32>, vector<8x256xf32> -> vector<8x256xf32>
    %108 = arith.addf %103, %107 : vector<8x256xf32>
    %c0_117 = arith.constant 0 : index
    %c0_118 = arith.constant 0 : index
    %109 = vector.load %arg11[%c0_117, %c0_118] : memref<1x256xf32, #tpu.memory_space<vmem>>, vector<1x256xf32>
    %110 = vector.broadcast %109 : vector<1x256xf32> to vector<8x256xf32>
    %111 = arith.addf %108, %110 : vector<8x256xf32>
    %112 = arith.addf %111, %68 : vector<8x256xf32>
    %cst_119 = arith.constant 0.000000e+00 : f32
    %113 = vector.broadcast %cst_119 : f32 to vector<8x256xf32>
    %114 = arith.maximumf %112, %113 : vector<8x256xf32>
    %c0_120 = arith.constant 0 : index
    %c0_121 = arith.constant 0 : index
    %c0_122 = arith.constant 0 : index
    %115 = vector.load %arg12[%c0_120, %c0_121, %c0_122] : memref<1x8x256xf32, #tpu.memory_space<vmem>>, vector<1x8x256xf32>
    %116 = vector.shape_cast %115 : vector<1x8x256xf32> to vector<8x256xf32>
    %117 = vector.shape_cast %114 : vector<8x256xf32> to vector<1x8x256xf32>
    tpu.vector_store %arg12[%c0_120, %c0_121, %c0_122], %117 {strides = array<i32>} : memref<1x8x256xf32, #tpu.memory_space<vmem>>, vector<1x8x256xf32>,
    return
  }
  func.func @transform_0(%arg0: i32) -> (i32, i32, i32) {
    %c0_i32 = arith.constant 0 : i32
    %c0_i32_0 = arith.constant 0 : i32
    %c0_i32_1 = arith.constant 0 : i32
    return %arg0, %c0_i32, %c0_i32_0 : i32, i32, i32
  }
  func.func @transform_1(%arg0: i32) -> (i32, i32, i32) {
    %c0_i32 = arith.constant 0 : i32
    %c0_i32_0 = arith.constant 0 : i32
    %c0_i32_1 = arith.constant 0 : i32
    return %arg0, %c0_i32, %c0_i32_0 : i32, i32, i32
  }
  func.func @transform_2(%arg0: i32) -> (i32, i32, i32) {
    %c0_i32 = arith.constant 0 : i32
    %c0_i32_0 = arith.constant 0 : i32
    %c0_i32_1 = arith.constant 0 : i32
    %c0_i32_2 = arith.constant 0 : i32
    return %c0_i32, %c0_i32_0, %c0_i32_1 : i32, i32, i32
  }
  func.func @transform_3(%arg0: i32) -> (i32, i32) {
    %c0_i32 = arith.constant 0 : i32
    %c0_i32_0 = arith.constant 0 : i32
    %c0_i32_1 = arith.constant 0 : i32
    return %c0_i32, %c0_i32_0 : i32, i32
  }
  func.func @transform_4(%arg0: i32) -> (i32, i32, i32) {
    %c0_i32 = arith.constant 0 : i32
    %c0_i32_0 = arith.constant 0 : i32
    %c0_i32_1 = arith.constant 0 : i32
    %c0_i32_2 = arith.constant 0 : i32
    return %c0_i32, %c0_i32_0, %c0_i32_1 : i32, i32, i32
  }
  func.func @transform_5(%arg0: i32) -> (i32, i32, i32) {
    %c0_i32 = arith.constant 0 : i32
    %c0_i32_0 = arith.constant 0 : i32
    %c0_i32_1 = arith.constant 0 : i32
    %c0_i32_2 = arith.constant 0 : i32
    return %c0_i32, %c0_i32_0, %c0_i32_1 : i32, i32, i32
  }
  func.func @transform_6(%arg0: i32) -> (i32, i32) {
    %c0_i32 = arith.constant 0 : i32
    %c0_i32_0 = arith.constant 0 : i32
    %c0_i32_1 = arith.constant 0 : i32
    return %c0_i32, %c0_i32_0 : i32, i32
  }
  func.func @transform_7(%arg0: i32) -> (i32, i32, i32) {
    %c0_i32 = arith.constant 0 : i32
    %c0_i32_0 = arith.constant 0 : i32
    %c0_i32_1 = arith.constant 0 : i32
    %c0_i32_2 = arith.constant 0 : i32
    return %c0_i32, %c0_i32_0, %c0_i32_1 : i32, i32, i32
  }
  func.func @transform_8(%arg0: i32) -> (i32, i32) {
    %c0_i32 = arith.constant 0 : i32
    %c0_i32_0 = arith.constant 0 : i32
    %c0_i32_1 = arith.constant 0 : i32
    return %c0_i32, %c0_i32_0 : i32, i32
  }
  func.func @transform_9(%arg0: i32) -> (i32, i32, i32) {
    %c0_i32 = arith.constant 0 : i32
    %c0_i32_0 = arith.constant 0 : i32
    %c0_i32_1 = arith.constant 0 : i32
    %c0_i32_2 = arith.constant 0 : i32
    return %c0_i32, %c0_i32_0, %c0_i32_1 : i32, i32, i32
  }
  func.func @transform_10(%arg0: i32) -> (i32, i32) {
    %c0_i32 = arith.constant 0 : i32
    %c0_i32_0 = arith.constant 0 : i32
    %c0_i32_1 = arith.constant 0 : i32
    return %c0_i32, %c0_i32_0 : i32, i32
  }
  func.func @transform_11(%arg0: i32) -> (i32, i32, i32) {
    %c0_i32 = arith.constant 0 : i32
    %c0_i32_0 = arith.constant 0 : i32
    %c0_i32_1 = arith.constant 0 : i32
    return %arg0, %c0_i32, %c0_i32_0 : i32, i32, i32
  }
}

</mosaic_0001>

<bundles_post_ra>
// kernel: tile.23
= control target key start
LH: loop header
LB: loop body
LE: loop exit
PB: predicated region body
PF: predicated region fallthrough
CT: control target
= control target key end

     0   :  { %s64_s0 = inlined_call_operand.vmem [shape: f32[8], index: 0, kind: input, shape index: {}]   ;;  %s65_s1 = inlined_call_operand.vmem [shape: f32[64,8], index: 1, kind: output, shape index: {}]  }
   0x1   :  { %v4_v0 = vld [vmem:[%s64_s0] ss:$0 sm:$0xff] }
   0x2   :  { %5 = vst [vmem:[%s65_s1] sm:$0xff] %v4_v0  ;;  %20 = vst [vmem:[%s65_s1 + $0x8] sm:$0xff] %v4_v0 }
   0x3   :  { %21 = vst [vmem:[%s65_s1 + $0x10] sm:$0xff] %v4_v0  ;;  %22 = vst [vmem:[%s65_s1 + $0x18] sm:$0xff] %v4_v0 }
   0x4   :  { %23 = vst [vmem:[%s65_s1 + $0x20] sm:$0xff] %v4_v0  ;;  %24 = vst [vmem:[%s65_s1 + $0x28] sm:$0xff] %v4_v0 }
   0x5   :  { %25 = vst [vmem:[%s65_s1 + $0x30] sm:$0xff] %v4_v0  ;;  %26 = vst [vmem:[%s65_s1 + $0x38] sm:$0xff] %v4_v0 }

// kernel: tile.24
= control target key start
LH: loop header
LB: loop body
LE: loop exit
PB: predicated region body
PF: predicated region fallthrough
CT: control target
= control target key end

     0   :  { %vm6_vm0 = vcmask 1043458   ;;  %s11_s6 = smov 3  ;;  %s14_s7 = smov 12  ;;  %vm8_vm1 = vcmask 64512   ;;  %vm20_vm2 = vcmask 1048512   ;;  %vm32_vm3 = vcmask 982912   ;;  %s417_s0 = inlined_call_operand.vmem [shape: f32[64,8], index: 0, kind: input, shape index: {}]   ;;  %s418_s1 = inlined_call_operand.vmem [shape: f32[1,512], index: 1, kind: output, shape index: {}]  }
   0x1   :  { %v220_v0 = vld [vmem:[%s417_s0 + $0xf] ss:$16 sm:%s11_s6]   ;;  %s35_s12 = smov 3  ;;  %s38_s15 = smov 12  ;;  %vm44_vm4 = vcmask 917312   ;;  %vm56_vm5 = vcmask 851712  }
   0x2   :  { %v221_v1 = vld [vmem:[%s417_s0 + $0xf] ss:$16 sm:%s14_s7]   ;;  %v224_v3 = vld [vmem:[%s417_s0 + $0xd] ss:$16 sm:%s35_s12]   ;;  %s268_s16 = smov 120   ;;  %s23_s19 = smov 3 }
   0x3   :  { %v17_v2 = vsel %vm6_vm0, %v221_v1, %v220_v0  ;;  %v225_v4 = vld [vmem:[%s417_s0 + $0xd] ss:$16 sm:%s38_s15]   ;;  %s26_s20 = smov 12  ;;  %v222_v6 = vld [vmem:[%s417_s0 + $0xe] ss:$16 sm:%s23_s19]   ;;  %s47_s25 = smov 3 }
   0x4   :  { %18 = vrot.lane.b32.xlu0 %v17_v2, %s268_s16  ;;  %v41_v5 = vsel %vm6_vm0, %v225_v4, %v224_v3  ;;  %v223_v7 = vld [vmem:[%s417_s0 + $0xe] ss:$16 sm:%s26_s20]   ;;  %s269_s26 = smov 104   ;;  %s50_s29 = smov 12  ;;  %vm68_vm6 = vcmask 786112   ;;  %vm80_vm7 = vcmask 720512  }
   0x5   :  { %42 = vrot.lane.b32.xlu1 %v41_v5, %s269_s26  ;;  %v29_v8 = vsel %vm6_vm0, %v223_v7, %v222_v6  ;;  %v226_v9 = vld [vmem:[%s417_s0 + $0xc] ss:$16 sm:%s47_s25]   ;;  %s59_s3 = smov 3  ;;  %s62_s4 = smov 12  ;;  %vm92_vm8 = vcmask 654912   ;;  %vm104_vm9 = vcmask 589312  }
   0x6   :  { %v227_v10 = vld [vmem:[%s417_s0 + $0xc] ss:$16 sm:%s50_s29]   ;;  %s270_s5 = smov 112   ;;  %v228_v12 = vld [vmem:[%s417_s0 + $0xb] ss:$16 sm:%s59_s3]   ;;  %s71_s8 = smov 3 }
   0x7   :  { %v53_v11 = vsel %vm6_vm0, %v227_v10, %v226_v9  ;;  %v229_v13 = vld [vmem:[%s417_s0 + $0xb] ss:$16 sm:%s62_s4]   ;;  %v230_v14 = vld [vmem:[%s417_s0 + $0xa] ss:$16 sm:%s71_s8]   ;;  %s74_s13 = smov 12  ;;  %s271_s14 = smov 96  }
   0x8   :  { %30 = vrot.lane.b32.xlu0 %v29_v8, %s270_s5  ;;  %v65_v15 = vsel %vm6_vm0, %v229_v13, %v228_v12  ;;  %v231_v16 = vld [vmem:[%s417_s0 + $0xa] ss:$16 sm:%s74_s13]   ;;  %s83_s17 = smov 3  ;;  %s86_s18 = smov 12  ;;  %vm116_vm10 = vcmask 523712   ;;  %vm128_vm11 = vcmask 458112  }
   0x9   :  { %54 = vrot.lane.b32.xlu1 %v53_v11, %s271_s14  ;;  %v77_v17 = vsel %vm6_vm0, %v231_v16, %v230_v14  ;;  %v232_v18 = vld [vmem:[%s417_s0 + $0x9] ss:$16 sm:%s83_s17]   ;;  %s95_s23 = smov 3  ;;  %s272_s24 = smov 88   ;;  %vm140_vm12 = vcmask 392512   ;;  %vm152_vm13 = vcmask 326912  }
   0xa   :  { %v233_v19 = vld [vmem:[%s417_s0 + $0x9] ss:$16 sm:%s86_s18]   ;;  %v234_v20 = vld [vmem:[%s417_s0 + $0x8] ss:$16 sm:%s95_s23]   ;;  %s98_s27 = smov 12  ;;  %s107_s30 = smov 3 }
   0xb   :  { %v89_v21 = vsel %vm6_vm0, %v233_v19, %v232_v18  ;;  %v235_v22 = vld [vmem:[%s417_s0 + $0x8] ss:$16 sm:%s98_s27]   ;;  %s110_s2 = smov 12  ;;  %s273_s3 = smov 80   ;;  %v236_v23 = vld [vmem:[%s417_s0 + $0x7] ss:$16 sm:%s107_s30]  }
   0xc   :  { %66 = vrot.lane.b32.xlu0 %v65_v15, %s272_s24  ;;  %s119_s6 = smov 3  ;;  %v101_v24 = vsel %vm6_vm0, %v235_v22, %v234_v20  ;;  %v237_v25 = vld [vmem:[%s417_s0 + $0x7] ss:$16 sm:%s110_s2]   ;;  %s122_s11 = smov 12  ;;  %vm164_vm14 = vcmask 261312   ;;  %vm176_vm15 = vcmask 195712  }
   0xd   :  { %78 = vrot.lane.b32.xlu1 %v77_v17, %s273_s3  ;;  %v238_v26 = vld [vmem:[%s417_s0 + $0x6] ss:$16 sm:%s119_s6]   ;;  %s274_s12 = smov 72   ;;  %s131_s15 = smov 3  ;;  %v113_v28 = vsel %vm6_vm0, %v237_v25, %v236_v23 }
   0xe   :  { %v239_v27 = vld [vmem:[%s417_s0 + $0x6] ss:$16 sm:%s122_s11]   ;;  %s134_s16 = smov 12  ;;  %v240_v29 = vld [vmem:[%s417_s0 + $0x5] ss:$16 sm:%s131_s15]   ;;  %s143_s19 = smov 3 }
   0xf   :  { %s275_s20 = smov 64   ;;  %v241_v30 = vld [vmem:[%s417_s0 + $0x5] ss:$16 sm:%s134_s16]   ;;  %s146_s23 = smov 12  ;;  %v125_v31 = vsel %vm6_vm0, %v239_v27, %v238_v26  ;;  %v242_v32 = vld [vmem:[%s417_s0 + $0x4] ss:$16 sm:%s143_s19]  }
  0x10   :  { %90 = vrot.lane.b32.xlu0 %v89_v21, %s274_s12  ;;  %s155_s26 = smov 3  ;;  %s158_s27 = smov 12  ;;  %v243_v33 = vld [vmem:[%s417_s0 + $0x4] ss:$16 sm:%s146_s23]   ;;  %v137_v34 = vsel %vm6_vm0, %v241_v30, %v240_v29 }
  0x11   :  { %102 = vrot.lane.b32.xlu1 %v101_v24, %s275_s20  ;;  %s276_s28 = smov 56   ;;  %s167_s2 = smov 3  ;;  %v244_v35 = vld [vmem:[%s417_s0 + $0x3] ss:$16 sm:%s155_s26]   ;;  %v149_v37 = vsel %vm6_vm0, %v243_v33, %v242_v32 }
  0x12   :  { %s170_s5 = smov 12  ;;  %s277_s6 = smov 48   ;;  %v245_v36 = vld [vmem:[%s417_s0 + $0x3] ss:$16 sm:%s158_s27]   ;;  %v246_v38 = vld [vmem:[%s417_s0 + $0x2] ss:$16 sm:%s167_s2]  }
  0x13   :  { %s179_s9 = smov 3  ;;  %v247_v39 = vld [vmem:[%s417_s0 + $0x2] ss:$16 sm:%s170_s5]   ;;  %s182_s14 = smov 12  ;;  %v161_v41 = vsel %vm6_vm0, %v245_v36, %v244_v35 }
  0x14   :  { %114 = vrot.lane.b32.xlu0 %v113_v28, %s276_s28  ;;  %s2_s15 = smov 3  ;;  %s278_s16 = smov 40   ;;  %v248_v42 = vld [vmem:[%s417_s0 + $0x1] ss:$16 sm:%s179_s9]   ;;  %v173_v46 = vsel %vm6_vm0, %v247_v39, %v246_v38 }
  0x15   :  { %126 = vrot.lane.b32.xlu1 %v125_v31, %s277_s6  ;;  %v3_v40 = vld [vmem:[%s417_s0] ss:$16 sm:%s2_s15]   ;;  %s4_s19 = smov 12  ;;  %s279_s24 = smov 32  }
  0x16   :  { %v5_v43 = vld [vmem:[%s417_s0] ss:$16 sm:%s4_s19]   ;;  %v249_v44 = vld [vmem:[%s417_s0 + $0x1] ss:$16 sm:%s182_s14]   ;;  %s280_s0 = smov 24   ;;  %s281_s27 = smov 16  }
  0x17   :  { %v7_v45 = vsel %vm6_vm0, %v5_v43, %v3_v40  ;;  %v185_v47 = vsel %vm6_vm0, %v249_v44, %v248_v42  ;;  %s282_s28 = smov 8   ;;  %vm188_vm0 = vcmask 130112  }
  0x18   :  { %138 = vrot.lane.b32.xlu0 %v137_v34, %s278_s16  ;;  %9 = vst.msk [vmem:[#allocation0] ss:$8 sm:$0xf] %vm8_vm1, %v7_v45  }
  0x19   :  { %150 = vrot.lane.b32.xlu1 %v149_v37, %s279_s24 }
  0x1c   :  { %162 = vrot.lane.b32.xlu0 %v161_v41, %s280_s0 }
  0x1d   :  { %174 = vrot.lane.b32.xlu1 %v173_v46, %s281_s27 }
  0x20   :  { %186 = vrot.lane.b32.xlu0 %v185_v47, %s282_s28 }
  0x76   :  { %v19_v48 = vpop.permute.xlu0 %18  }
  0x77   :  { %21 = vst.msk [vmem:[#allocation0] ss:$8 sm:$0xf] %vm20_vm2, %v19_v48   ;;  %v43_v49 = vpop.permute.xlu1 %42  }
  0x7a   :  { %v31_v50 = vpop.permute.xlu0 %30  }
  0x7b   :  { %33 = vst.msk [vmem:[#allocation0] ss:$8 sm:$0xf] %vm32_vm3, %v31_v50   ;;  %v55_v51 = vpop.permute.xlu1 %54  }
  0x7c   :  { %45 = vst.msk [vmem:[#allocation0] ss:$8 sm:$0xf] %vm44_vm4, %v43_v49  }
  0x7d   :  { %57 = vst.msk [vmem:[#allocation0] ss:$8 sm:$0xf] %vm56_vm5, %v55_v51  }
  0x7e   :  { %v67_v52 = vpop.permute.xlu0 %66  }
  0x7f   :  { %69 = vst.msk [vmem:[#allocation0] ss:$8 sm:$0xf] %vm68_vm6, %v67_v52   ;;  %v79_v53 = vpop.permute.xlu1 %78  }
  0x80   :  { %81 = vst.msk [vmem:[#allocation0] ss:$8 sm:$0xf] %vm80_vm7, %v79_v53  }
  0x82   :  { %v91_v54 = vpop.permute.xlu0 %90  }
  0x83   :  { %93 = vst.msk [vmem:[#allocation0] ss:$8 sm:$0xf] %vm92_vm8, %v91_v54   ;;  %v103_v55 = vpop.permute.xlu1 %102  }
  0x84   :  { %105 = vst.msk [vmem:[#allocation0] ss:$8 sm:$0xf] %vm104_vm9, %v103_v55  }
  0x86   :  { %v115_v56 = vpop.permute.xlu0 %114  }
  0x87   :  { %117 = vst.msk [vmem:[#allocation0] ss:$8 sm:$0xf] %vm116_vm10, %v115_v56   ;;  %v127_v57 = vpop.permute.xlu1 %126  }
  0x88   :  { %129 = vst.msk [vmem:[#allocation0] ss:$8 sm:$0xf] %vm128_vm11, %v127_v57  }
  0x8a   :  { %v139_v58 = vpop.permute.xlu0 %138  }
  0x8b   :  { %141 = vst.msk [vmem:[#allocation0] ss:$8 sm:$0xf] %vm140_vm12, %v139_v58   ;;  %v151_v59 = vpop.permute.xlu1 %150  }
  0x8c   :  { %153 = vst.msk [vmem:[#allocation0] ss:$8 sm:$0xf] %vm152_vm13, %v151_v59  }
  0x8e   :  { %v163_v60 = vpop.permute.xlu0 %162  }
  0x8f   :  { %165 = vst.msk [vmem:[#allocation0] ss:$8 sm:$0xf] %vm164_vm14, %v163_v60   ;;  %v175_v61 = vpop.permute.xlu1 %174  }
  0x90   :  { %177 = vst.msk [vmem:[#allocation0] ss:$8 sm:$0xf] %vm176_vm15, %v175_v61  }
  0x92   :  { %v187_v62 = vpop.permute.xlu0 %186  }
  0x93   :  { %189 = vst.msk [vmem:[#allocation0] ss:$8 sm:$0xf] %vm188_vm0, %v187_v62  }
  0x9a   :  { %v194_v63 = vld [vmem:[#allocation0] sm:$0x1]  ;;  %v199_v0 = vld [vmem:[#allocation0 + $0x8] sm:$0x1]  ;;  %v205_v1 = vld [vmem:[#allocation0 + $0x10] sm:$0x1] }
  0x9b   :  { %197 = vst [vmem:[%s418_s1] sm:$0x1] %v194_v63  ;;  %250 = vst [vmem:[%s418_s1 + $0x1] sm:$0x1] %v199_v0  ;;  %v212_v2 = vld [vmem:[#allocation0 + $0x18] sm:$0x1] }
  0x9c   :  { %251 = vst [vmem:[%s418_s1 + $0x2] sm:$0x1] %v205_v1  ;;  %252 = vst [vmem:[%s418_s1 + $0x3] sm:$0x1] %v212_v2 }

// kernel: tile.28
= control target key start
LH: loop header
LB: loop body
LE: loop exit
PB: predicated region body
PF: predicated region fallthrough
CT: control target
= control target key end

     0   :  { %s64_s0 = inlined_call_operand.vmem [shape: f32[4], index: 0, kind: input, shape index: {}]   ;;  %s65_s1 = inlined_call_operand.vmem [shape: f32[64,4], index: 1, kind: output, shape index: {}]  }
   0x1   :  { %v4_v0 = vld [vmem:[%s64_s0] ss:$0 sm:$0xff] }
   0x2   :  { %5 = vst [vmem:[%s65_s1] sm:$0xff] %v4_v0  ;;  %20 = vst [vmem:[%s65_s1 + $0x8] sm:$0xff] %v4_v0 }
   0x3   :  { %21 = vst [vmem:[%s65_s1 + $0x10] sm:$0xff] %v4_v0  ;;  %22 = vst [vmem:[%s65_s1 + $0x18] sm:$0xff] %v4_v0 }
   0x4   :  { %23 = vst [vmem:[%s65_s1 + $0x20] sm:$0xff] %v4_v0  ;;  %24 = vst [vmem:[%s65_s1 + $0x28] sm:$0xff] %v4_v0 }
   0x5   :  { %25 = vst [vmem:[%s65_s1 + $0x30] sm:$0xff] %v4_v0  ;;  %26 = vst [vmem:[%s65_s1 + $0x38] sm:$0xff] %v4_v0 }

// kernel: tile.29
= control target key start
LH: loop header
LB: loop body
LE: loop exit
PB: predicated region body
PF: predicated region fallthrough
CT: control target
= control target key end

     0   :  { %vm5_vm0 = vcmask 1041409   ;;  %s428_s14 = smov 124   ;;  %s429_s21 = smov 116   ;;  %vm7_vm1 = vcmask 31744   ;;  %vm17_vm2 = vcmask 1048544   ;;  %vm27_vm3 = vcmask 1015744   ;;  %s699_s0 = inlined_call_operand.vmem [shape: f32[64,4], index: 0, kind: input, shape index: {}]   ;;  %s700_s1 = inlined_call_operand.vmem [shape: f32[1,256], index: 1, kind: output, shape index: {}]  }
   0x1   :  { %v334_v0 = vld [vmem:[%s699_s0 + $0x1f] sm:$0x1]   ;;  %v338_v3 = vld [vmem:[%s699_s0 + $0x1d] sm:$0x1]   ;;  %v336_v6 = vld [vmem:[%s699_s0 + $0x1e] sm:$0x1]  }
   0x2   :  { %v335_v1 = vld [vmem:[%s699_s0 + $0x3e] sm:$0x2]   ;;  %v339_v4 = vld [vmem:[%s699_s0 + $0x3c] sm:$0x2]   ;;  %v337_v7 = vld [vmem:[%s699_s0 + $0x3d] sm:$0x2]  }
   0x3   :  { %v14_v2 = vsel %vm5_vm0, %v335_v1, %v334_v0  ;;  %v34_v5 = vsel %vm5_vm0, %v339_v4, %v338_v3  ;;  %v340_v8 = vld [vmem:[%s699_s0 + $0x1c] sm:$0x1]   ;;  %v24_v9 = vsel %vm5_vm0, %v337_v7, %v336_v6  ;;  %v342_v12 = vld [vmem:[%s699_s0 + $0x1b] sm:$0x1]   ;;  %v344_v14 = vld [vmem:[%s699_s0 + $0x1a] sm:$0x1]  }
   0x4   :  { %15 = vrot.lane.b32.xlu0 %v14_v2, %s428_s14  ;;  %35 = vrot.lane.b32.xlu1 %v34_v5, %s429_s21  ;;  %v341_v10 = vld [vmem:[%s699_s0 + $0x3b] sm:$0x2]   ;;  %v343_v13 = vld [vmem:[%s699_s0 + $0x3a] sm:$0x2]   ;;  %s430_s3 = smov 120   ;;  %s431_s4 = smov 112  }
   0x5   :  { %v44_v11 = vsel %vm5_vm0, %v341_v10, %v340_v8  ;;  %v345_v15 = vld [vmem:[%s699_s0 + $0x39] sm:$0x2]   ;;  %v54_v16 = vsel %vm5_vm0, %v343_v13, %v342_v12  ;;  %v346_v18 = vld [vmem:[%s699_s0 + $0x19] sm:$0x1]   ;;  %v348_v20 = vld [vmem:[%s699_s0 + $0x18] sm:$0x1]  }
   0x6   :  { %v64_v17 = vsel %vm5_vm0, %v345_v15, %v344_v14  ;;  %v347_v19 = vld [vmem:[%s699_s0 + $0x38] sm:$0x2]   ;;  %v349_v21 = vld [vmem:[%s699_s0 + $0x37] sm:$0x2]   ;;  %s432_s13 = smov 108   ;;  %s433_s14 = smov 104  }
   0x7   :  { %v74_v22 = vsel %vm5_vm0, %v347_v19, %v346_v18  ;;  %v84_v23 = vsel %vm5_vm0, %v349_v21, %v348_v20  ;;  %v350_v24 = vld [vmem:[%s699_s0 + $0x17] sm:$0x1]   ;;  %v352_v26 = vld [vmem:[%s699_s0 + $0x16] sm:$0x1]   ;;  %s434_s23 = smov 100   ;;  %s435_s24 = smov 96  }
   0x8   :  { %25 = vrot.lane.b32.xlu0 %v24_v9, %s430_s3  ;;  %45 = vrot.lane.b32.xlu1 %v44_v11, %s431_s4  ;;  %v351_v25 = vld [vmem:[%s699_s0 + $0x36] sm:$0x2]   ;;  %v353_v27 = vld [vmem:[%s699_s0 + $0x35] sm:$0x2]   ;;  %s436_s4 = smov 92   ;;  %s437_s5 = smov 88  }
   0x9   :  { %v94_v28 = vsel %vm5_vm0, %v351_v25, %v350_v24  ;;  %v104_v29 = vsel %vm5_vm0, %v353_v27, %v352_v26  ;;  %v354_v30 = vld [vmem:[%s699_s0 + $0x15] sm:$0x1]   ;;  %v356_v32 = vld [vmem:[%s699_s0 + $0x14] sm:$0x1]   ;;  %v358_v36 = vld [vmem:[%s699_s0 + $0x13] sm:$0x1]  }
   0xa   :  { %v355_v31 = vld [vmem:[%s699_s0 + $0x34] sm:$0x2]   ;;  %v357_v33 = vld [vmem:[%s699_s0 + $0x33] sm:$0x2]   ;;  %v359_v37 = vld [vmem:[%s699_s0 + $0x32] sm:$0x2]  }
   0xb   :  { %v114_v34 = vsel %vm5_vm0, %v355_v31, %v354_v30  ;;  %v124_v35 = vsel %vm5_vm0, %v357_v33, %v356_v32  ;;  %v360_v38 = vld [vmem:[%s699_s0 + $0x12] sm:$0x1]   ;;  %s439_s15 = smov 80   ;;  %v134_v40 = vsel %vm5_vm0, %v359_v37, %v358_v36  ;;  %v362_v42 = vld [vmem:[%s699_s0 + $0x11] sm:$0x1]   ;;  %s441_s29 = smov 72  }
   0xc   :  { %55 = vrot.lane.b32.xlu0 %v54_v16, %s432_s13  ;;  %65 = vrot.lane.b32.xlu1 %v64_v17, %s433_s14  ;;  %v361_v39 = vld [vmem:[%s699_s0 + $0x31] sm:$0x2]   ;;  %s438_s14 = smov 84   ;;  %v363_v43 = vld [vmem:[%s699_s0 + $0x30] sm:$0x2]   ;;  %s442_s9 = smov 68  }
   0xd   :  { %v144_v41 = vsel %vm5_vm0, %v361_v39, %v360_v38  ;;  %v364_v44 = vld [vmem:[%s699_s0 + $0x10] sm:$0x1]   ;;  %v2_v46 = vld [vmem:[%s699_s0] sm:$0x1]   ;;  %v154_v48 = vsel %vm5_vm0, %v363_v43, %v362_v42  ;;  %v366_v51 = vld [vmem:[%s699_s0 + $0xf] sm:$0x1]  }
   0xe   :  { %v365_v45 = vld [vmem:[%s699_s0 + $0x2f] sm:$0x2]   ;;  %v333_v47 = vld [vmem:[%s699_s0 + $0x1f] sm:$0x2]   ;;  %v367_v52 = vld [vmem:[%s699_s0 + $0x2e] sm:$0x2]  }
   0xf   :  { %v6_v49 = vsel %vm5_vm0, %v333_v47, %v2_v46  ;;  %v164_v50 = vsel %vm5_vm0, %v365_v45, %v364_v44  ;;  %v368_v53 = vld [vmem:[%s699_s0 + $0xe] sm:$0x1]   ;;  %s443_s10 = smov 64   ;;  %v174_v55 = vsel %vm5_vm0, %v367_v52, %v366_v51  ;;  %v370_v57 = vld [vmem:[%s699_s0 + $0xd] sm:$0x1]   ;;  %s444_s19 = smov 60  }
  0x10   :  { %75 = vrot.lane.b32.xlu0 %v74_v22, %s434_s23  ;;  %85 = vrot.lane.b32.xlu1 %v84_v23, %s435_s24  ;;  %s440_s24 = smov 76   ;;  %8 = vst.msk [vmem:[#allocation0] ss:$8 sm:$0x3] %vm7_vm1, %v6_v49   ;;  %v369_v54 = vld [vmem:[%s699_s0 + $0x2d] sm:$0x2]  }
  0x11   :  { %v184_v56 = vsel %vm5_vm0, %v369_v54, %v368_v53  ;;  %v371_v58 = vld [vmem:[%s699_s0 + $0x2c] sm:$0x2]   ;;  %v372_v59 = vld [vmem:[%s699_s0 + $0xc] sm:$0x1]   ;;  %s445_s20 = smov 56   ;;  %s447_s30 = smov 48  }
  0x12   :  { %v373_v60 = vld [vmem:[%s699_s0 + $0x2b] sm:$0x2]   ;;  %v194_v61 = vsel %vm5_vm0, %v371_v58, %v370_v57  ;;  %v374_v63 = vld [vmem:[%s699_s0 + $0xb] sm:$0x1]   ;;  %v376_v1 = vld [vmem:[%s699_s0 + $0xa] sm:$0x1]  }
  0x13   :  { %v204_v62 = vsel %vm5_vm0, %v373_v60, %v372_v59  ;;  %v375_v0 = vld [vmem:[%s699_s0 + $0x2a] sm:$0x2]   ;;  %v377_v2 = vld [vmem:[%s699_s0 + $0x29] sm:$0x2]   ;;  %v378_v5 = vld [vmem:[%s699_s0 + $0x9] sm:$0x1]  }
  0x14   :  { %95 = vrot.lane.b32.xlu0 %v94_v28, %s436_s4  ;;  %105 = vrot.lane.b32.xlu1 %v104_v29, %s437_s5  ;;  %v214_v3 = vsel %vm5_vm0, %v375_v0, %v374_v63  ;;  %v224_v4 = vsel %vm5_vm0, %v377_v2, %v376_v1  ;;  %v379_v6 = vld [vmem:[%s699_s0 + $0x28] sm:$0x2]   ;;  %v380_v7 = vld [vmem:[%s699_s0 + $0x8] sm:$0x1]   ;;  %s449_s11 = smov 40   ;;  %s451_s21 = smov 32  }
  0x15   :  { %v381_v8 = vld [vmem:[%s699_s0 + $0x27] sm:$0x2]   ;;  %v234_v9 = vsel %vm5_vm0, %v379_v6, %v378_v5  ;;  %v382_v11 = vld [vmem:[%s699_s0 + $0x7] sm:$0x1]   ;;  %v384_v13 = vld [vmem:[%s699_s0 + $0x6] sm:$0x1]  }
  0x16   :  { %v244_v10 = vsel %vm5_vm0, %v381_v8, %v380_v7  ;;  %v383_v12 = vld [vmem:[%s699_s0 + $0x26] sm:$0x2]   ;;  %v385_v14 = vld [vmem:[%s699_s0 + $0x25] sm:$0x2]   ;;  %v386_v17 = vld [vmem:[%s699_s0 + $0x5] sm:$0x1]  }
  0x17   :  { %v254_v15 = vsel %vm5_vm0, %v383_v12, %v382_v11  ;;  %v264_v16 = vsel %vm5_vm0, %v385_v14, %v384_v13  ;;  %v387_v18 = vld [vmem:[%s699_s0 + $0x24] sm:$0x2]   ;;  %v388_v19 = vld [vmem:[%s699_s0 + $0x4] sm:$0x1]   ;;  %s453_s2 = smov 24   ;;  %s455_s12 = smov 16  }
  0x18   :  { %115 = vrot.lane.b32.xlu0 %v114_v34, %s438_s14  ;;  %125 = vrot.lane.b32.xlu1 %v124_v35, %s439_s15  ;;  %v389_v20 = vld [vmem:[%s699_s0 + $0x23] sm:$0x2]   ;;  %v274_v21 = vsel %vm5_vm0, %v387_v18, %v386_v17  ;;  %v390_v23 = vld [vmem:[%s699_s0 + $0x3] sm:$0x1]   ;;  %s457_s17 = smov 8   ;;  %s458_s18 = smov 4  }
  0x19   :  { %v284_v22 = vsel %vm5_vm0, %v389_v20, %v388_v19  ;;  %v391_v24 = vld [vmem:[%s699_s0 + $0x22] sm:$0x2]   ;;  %v392_v25 = vld [vmem:[%s699_s0 + $0x2] sm:$0x1]   ;;  %v394_v29 = vld [vmem:[%s699_s0 + $0x1] sm:$0x1]  }
  0x1a   :  { %v393_v26 = vld [vmem:[%s699_s0 + $0x21] sm:$0x2]   ;;  %v294_v27 = vsel %vm5_vm0, %v391_v24, %v390_v23  ;;  %v395_v30 = vld [vmem:[%s699_s0 + $0x20] sm:$0x2]   ;;  %s456_s0 = smov 12   ;;  %vm37_vm4 = vcmask 982944  }
  0x1b   :  { %v304_v28 = vsel %vm5_vm0, %v393_v26, %v392_v25  ;;  %v314_v31 = vsel %vm5_vm0, %v395_v30, %v394_v29  ;;  %vm47_vm5 = vcmask 950144   ;;  %vm57_vm6 = vcmask 917344  }
  0x1c   :  { %135 = vrot.lane.b32.xlu0 %v134_v40, %s440_s24  ;;  %145 = vrot.lane.b32.xlu1 %v144_v41, %s441_s29  ;;  %s446_s29 = smov 52   ;;  %vm67_vm7 = vcmask 884544   ;;  %vm77_vm8 = vcmask 851744   ;;  %vm87_vm9 = vcmask 818944   ;;  %vm97_vm10 = vcmask 786144  }
  0x1d   :  { %vm107_vm11 = vcmask 753344   ;;  %vm117_vm12 = vcmask 720544   ;;  %vm127_vm13 = vcmask 687744   ;;  %vm137_vm14 = vcmask 654944  }
  0x1e   :  { %vm147_vm15 = vcmask 622144   ;;  %vm157_vm0 = vcmask 589344   ;;  %vm167_vm1 = vcmask 556544  }
  0x20   :  { %155 = vrot.lane.b32.xlu0 %v154_v48, %s442_s9  ;;  %165 = vrot.lane.b32.xlu1 %v164_v50, %s443_s10  ;;  %s448_s10 = smov 44  }
  0x24   :  { %175 = vrot.lane.b32.xlu0 %v174_v55, %s444_s19  ;;  %185 = vrot.lane.b32.xlu1 %v184_v56, %s445_s20  ;;  %s450_s20 = smov 36  }
  0x28   :  { %195 = vrot.lane.b32.xlu0 %v194_v61, %s446_s29  ;;  %205 = vrot.lane.b32.xlu1 %v204_v62, %s447_s30  ;;  %s452_s30 = smov 28  }
  0x2c   :  { %215 = vrot.lane.b32.xlu0 %v214_v3, %s448_s10  ;;  %225 = vrot.lane.b32.xlu1 %v224_v4, %s449_s11  ;;  %s454_s11 = smov 20  }
  0x30   :  { %235 = vrot.lane.b32.xlu0 %v234_v9, %s450_s20  ;;  %245 = vrot.lane.b32.xlu1 %v244_v10, %s451_s21 }
  0x34   :  { %255 = vrot.lane.b32.xlu0 %v254_v15, %s452_s30  ;;  %265 = vrot.lane.b32.xlu1 %v264_v16, %s453_s2 }
  0x38   :  { %275 = vrot.lane.b32.xlu0 %v274_v21, %s454_s11  ;;  %285 = vrot.lane.b32.xlu1 %v284_v22, %s455_s12 }
  0x3c   :  { %295 = vrot.lane.b32.xlu0 %v294_v27, %s456_s0  ;;  %305 = vrot.lane.b32.xlu1 %v304_v28, %s457_s17 }
  0x40   :  { %315 = vrot.lane.b32.xlu0 %v314_v31, %s458_s18 }
  0x76   :  { %v16_v32 = vpop.permute.xlu0 %15   ;;  %v36_v33 = vpop.permute.xlu1 %35  }
  0x77   :  { %18 = vst.msk [vmem:[#allocation0] ss:$8 sm:$0x3] %vm17_vm2, %v16_v32   ;;  %vm177_vm2 = vcmask 523744  }
  0x7a   :  { %v26_v34 = vpop.permute.xlu0 %25   ;;  %v46_v35 = vpop.permute.xlu1 %45  }
  0x7b   :  { %28 = vst.msk [vmem:[#allocation0] ss:$8 sm:$0x3] %vm27_vm3, %v26_v34   ;;  %vm187_vm3 = vcmask 490944  }
  0x7c   :  { %38 = vst.msk [vmem:[#allocation0] ss:$8 sm:$0x3] %vm37_vm4, %v36_v33   ;;  %vm197_vm4 = vcmask 458144  }
  0x7d   :  { %48 = vst.msk [vmem:[#allocation0] ss:$8 sm:$0x3] %vm47_vm5, %v46_v35   ;;  %vm207_vm5 = vcmask 425344  }
  0x7e   :  { %v56_v36 = vpop.permute.xlu0 %55   ;;  %v66_v37 = vpop.permute.xlu1 %65  }
  0x7f   :  { %58 = vst.msk [vmem:[#allocation0] ss:$8 sm:$0x3] %vm57_vm6, %v56_v36   ;;  %vm217_vm6 = vcmask 392544  }
  0x80   :  { %68 = vst.msk [vmem:[#allocation0] ss:$8 sm:$0x3] %vm67_vm7, %v66_v37   ;;  %vm227_vm7 = vcmask 359744  }
  0x82   :  { %v76_v38 = vpop.permute.xlu0 %75   ;;  %v86_v39 = vpop.permute.xlu1 %85  }
  0x83   :  { %78 = vst.msk [vmem:[#allocation0] ss:$8 sm:$0x3] %vm77_vm8, %v76_v38   ;;  %vm237_vm8 = vcmask 326944  }
  0x84   :  { %88 = vst.msk [vmem:[#allocation0] ss:$8 sm:$0x3] %vm87_vm9, %v86_v39   ;;  %vm247_vm9 = vcmask 294144  }
  0x86   :  { %v96_v40 = vpop.permute.xlu0 %95   ;;  %v106_v41 = vpop.permute.xlu1 %105  }
  0x87   :  { %98 = vst.msk [vmem:[#allocation0] ss:$8 sm:$0x3] %vm97_vm10, %v96_v40   ;;  %vm257_vm10 = vcmask 261344  }
  0x88   :  { %108 = vst.msk [vmem:[#allocation0] ss:$8 sm:$0x3] %vm107_vm11, %v106_v41   ;;  %vm267_vm11 = vcmask 228544  }
  0x8a   :  { %v116_v42 = vpop.permute.xlu0 %115   ;;  %v126_v43 = vpop.permute.xlu1 %125  }
  0x8b   :  { %118 = vst.msk [vmem:[#allocation0] ss:$8 sm:$0x3] %vm117_vm12, %v116_v42   ;;  %vm277_vm12 = vcmask 195744  }
  0x8c   :  { %128 = vst.msk [vmem:[#allocation0] ss:$8 sm:$0x3] %vm127_vm13, %v126_v43   ;;  %vm287_vm13 = vcmask 162944  }
  0x8e   :  { %v136_v44 = vpop.permute.xlu0 %135   ;;  %v146_v45 = vpop.permute.xlu1 %145  }
  0x8f   :  { %138 = vst.msk [vmem:[#allocation0] ss:$8 sm:$0x3] %vm137_vm14, %v136_v44   ;;  %vm297_vm14 = vcmask 130144  }
  0x90   :  { %148 = vst.msk [vmem:[#allocation0] ss:$8 sm:$0x3] %vm147_vm15, %v146_v45   ;;  %vm307_vm15 = vcmask 97344  }
  0x92   :  { %v156_v46 = vpop.permute.xlu0 %155   ;;  %v166_v47 = vpop.permute.xlu1 %165  }
  0x93   :  { %158 = vst.msk [vmem:[#allocation0] ss:$8 sm:$0x3] %vm157_vm0, %v156_v46   ;;  %vm317_vm0 = vcmask 64544  }
  0x94   :  { %168 = vst.msk [vmem:[#allocation0] ss:$8 sm:$0x3] %vm167_vm1, %v166_v47  }
  0x96   :  { %v176_v48 = vpop.permute.xlu0 %175   ;;  %v186_v49 = vpop.permute.xlu1 %185  }
  0x97   :  { %178 = vst.msk [vmem:[#allocation0] ss:$8 sm:$0x3] %vm177_vm2, %v176_v48  }
  0x98   :  { %188 = vst.msk [vmem:[#allocation0] ss:$8 sm:$0x3] %vm187_vm3, %v186_v49  }
  0x9a   :  { %v196_v50 = vpop.permute.xlu0 %195   ;;  %v206_v51 = vpop.permute.xlu1 %205  }
  0x9b   :  { %198 = vst.msk [vmem:[#allocation0] ss:$8 sm:$0x3] %vm197_vm4, %v196_v50  }
  0x9c   :  { %208 = vst.msk [vmem:[#allocation0] ss:$8 sm:$0x3] %vm207_vm5, %v206_v51  }
  0x9e   :  { %v216_v52 = vpop.permute.xlu0 %215   ;;  %v226_v53 = vpop.permute.xlu1 %225  }
  0x9f   :  { %218 = vst.msk [vmem:[#allocation0] ss:$8 sm:$0x3] %vm217_vm6, %v216_v52  }
  0xa0   :  { %228 = vst.msk [vmem:[#allocation0] ss:$8 sm:$0x3] %vm227_vm7, %v226_v53  }
  0xa2   :  { %v236_v54 = vpop.permute.xlu0 %235   ;;  %v246_v55 = vpop.permute.xlu1 %245  }
  0xa3   :  { %238 = vst.msk [vmem:[#allocation0] ss:$8 sm:$0x3] %vm237_vm8, %v236_v54  }
  0xa4   :  { %248 = vst.msk [vmem:[#allocation0] ss:$8 sm:$0x3] %vm247_vm9, %v246_v55  }
  0xa6   :  { %v256_v56 = vpop.permute.xlu0 %255   ;;  %v266_v57 = vpop.permute.xlu1 %265  }
  0xa7   :  { %258 = vst.msk [vmem:[#allocation0] ss:$8 sm:$0x3] %vm257_vm10, %v256_v56  }
  0xa8   :  { %268 = vst.msk [vmem:[#allocation0] ss:$8 sm:$0x3] %vm267_vm11, %v266_v57  }
  0xaa   :  { %v276_v58 = vpop.permute.xlu0 %275   ;;  %v286_v59 = vpop.permute.xlu1 %285  }
  0xab   :  { %278 = vst.msk [vmem:[#allocation0] ss:$8 sm:$0x3] %vm277_vm12, %v276_v58  }
  0xac   :  { %288 = vst.msk [vmem:[#allocation0] ss:$8 sm:$0x3] %vm287_vm13, %v286_v59  }
  0xae   :  { %v296_v60 = vpop.permute.xlu0 %295   ;;  %v306_v61 = vpop.permute.xlu1 %305  }
  0xaf   :  { %298 = vst.msk [vmem:[#allocation0] ss:$8 sm:$0x3] %vm297_vm14, %v296_v60  }
  0xb0   :  { %308 = vst.msk [vmem:[#allocation0] ss:$8 sm:$0x3] %vm307_vm15, %v306_v61  }
  0xb2   :  { %v316_v62 = vpop.permute.xlu0 %315  }
  0xb3   :  { %318 = vst.msk [vmem:[#allocation0] ss:$8 sm:$0x3] %vm317_vm0, %v316_v62  }
  0xba   :  { %v323_v63 = vld [vmem:[#allocation0] sm:$0x1]  ;;  %v328_v0 = vld [vmem:[#allocation0 + $0x8] sm:$0x1] }
  0xbb   :  { %326 = vst [vmem:[%s700_s1] sm:$0x1] %v323_v63  ;;  %396 = vst [vmem:[%s700_s1 + $0x1] sm:$0x1] %v328_v0 }

// kernel: up_forward.1
= control target key start
LH: loop header
LB: loop body
LE: loop exit
PB: predicated region body
PF: predicated region fallthrough
CT: control target
= control target key end

     0   :  { %s4121_s17 = smov 0   ;;  %s7533_s0 = inlined_call_operand.vmem [shape: f32[2,10,256], index: 0, kind: input, shape index: {}]   ;;  %s7534_s1 = inlined_call_operand.vmem [shape: f32[2,4,128], index: 1, kind: input, shape index: {}]   ;;  %s7535_s2 = inlined_call_operand.vmem [shape: f32[2,128,512], index: 2, kind: input, shape index: {}]   ;;  %s7536_s3 = inlined_call_operand.vmem [shape: f32[1,512], index: 3, kind: input, shape index: {}]   ;;  %s7537_s4 = inlined_call_operand.vmem [shape: f32[3,256,256], index: 4, kind: input, shape index: {}]   ;;  %s7538_s5 = inlined_call_operand.vmem [shape: f32[3,512,256], index: 5, kind: input, shape index: {}]   ;;  %s7539_s6 = inlined_call_operand.vmem [shape: f32[1,256], index: 6, kind: input, shape index: {}]   ;;  %s7540_s7 = inlined_call_operand.vmem [shape: f32[3,256,256], index: 7, kind: input, shape index: {}]   ;;  %s7541_s8 = inlined_call_operand.vmem [shape: f32[1,256], index: 8, kind: input, shape index: {}]   ;;  %s7542_s9 = inlined_call_operand.vmem [shape: f32[3,256,256], index: 9, kind: input, shape index: {}]   ;;  %s7543_s10 = inlined_call_operand.vmem [shape: f32[1,256], index: 10, kind: input, shape index: {}]   ;;  %s7544_s11 = inlined_call_operand.vmem [shape: f32[2,8,256], index: 11, kind: output, shape index: {}]  }
   0x1 LB: > { %s3323_s18 = sadd.s32 4294967295, %s4057_s17   ;;  %p3327_p0 = scmp.ge.s32.totalorder %s4057_s17, 1  ;;  %s4057_s17 = sphi %s4121_s17, %s21_s17  }
   0x2   : > { %p346_p1 = scmp.lt.s32.totalorder %s4057_s17, 3 }
   0x4   : > { %p347_p2 = pnand %p3327_p0, %p346_p1 }
   0x5   : > { %p4217_p3 = scmp.lt.s32.totalorder (!%p347_p2), %s3323_s18, 1 }
   0x6   : > { %350 = sbr.rel (%p347_p2) target bundleno = 1228 (0x4cc), region = 64 }
   0xb   : > { %v467_v0 = vld [vmem:[%s7535_s2 + $0x1e8] sm:$0xff]  ;;  %v466_v1 = vld [vmem:[%s7535_s2 + $0x1e0] sm:$0xff]  ;;  %v4059_v4 = vmov 0.0   ;;  %s7549_s18 = smov (!%p4217_p3, %s3323_s18), 1  ;;  %v469_v57 = vld [vmem:[%s7535_s2 + $0x1f8] sm:$0xff]  ;;  %vm1096_vm0 = vcmask 1046528  }
   0xc   : > { %v463_v2 = vld [vmem:[%s7535_s2 + $0x1c8] sm:$0xff]  ;;  %491 = vmatprep.subr.mxu1 %v467_v0  ;;  %v462_v3 = vld [vmem:[%s7535_s2 + $0x1c0] sm:$0xff]  ;;  %555 = vmatprep.mubr.f32.mxu1 %v4059_v4  ;;  %s3330_s23 = sshll.u32 %s7549_s18, 2  ;;  %v468_v58 = vld [vmem:[%s7535_s2 + $0x1f0] sm:$0xff]  ;;  %s4039_s15 = sshll.u32 %s7549_s18, 5  ;;  %vm1320_vm3 = vcmask 1045504  }
   0xd   : > { %492 = vmatpush1.msra.mxu1 %v466_v1  ;;  %v459_v5 = vld [vmem:[%s7535_s2 + $0x1a8] sm:$0xff]  ;;  %762 = vmatprep.mubr.f32.mxu0 %v4059_v4  ;;  %v458_v6 = vld [vmem:[%s7535_s2 + $0x1a0] sm:$0xff]  ;;  %s398_s21 = scalar_lea.vmem %s7534_s1, %s3330_s23  ;;  %v465_v60 = vld [vmem:[%s7535_s2 + $0x1d8] sm:$0xff]  ;;  %s4650_s13 = scalar_lea.vmem %s7533_s0, %s4039_s15 }
   0xe   : > { %493 = vmatprep.subr.mxu1 %v463_v2  ;;  %v455_v7 = vld [vmem:[%s7535_s2 + $0x188] sm:$0xff]  ;;  %v454_v8 = vld [vmem:[%s7535_s2 + $0x180] sm:$0xff]  ;;  %v464_v62 = vld [vmem:[%s7535_s2 + $0x1d0] sm:$0xff]  ;;  %s4040_s25 = sshll.u32 %s7549_s18, 4 }
   0xf   : > { %494 = vmatpush1.msra.mxu1 %v462_v3  ;;  %v451_v9 = vld [vmem:[%s7535_s2 + $0x168] sm:$0xff]  ;;  %v450_v10 = vld [vmem:[%s7535_s2 + $0x160] sm:$0xff]  ;;  %v461_v0 = vld [vmem:[%s7535_s2 + $0x1b8] sm:$0xff] }
  0x10   : > { %495 = vmatprep.subr.mxu1 %v459_v5  ;;  %v447_v11 = vld [vmem:[%s7535_s2 + $0x148] sm:$0xff]  ;;  %v446_v12 = vld [vmem:[%s7535_s2 + $0x140] sm:$0xff]  ;;  %v460_v2 = vld [vmem:[%s7535_s2 + $0x1b0] sm:$0xff] }
  0x11   : > { %496 = vmatpush1.msra.mxu1 %v458_v6  ;;  %v3394_v13 = vld [vmem:[%s7535_s2 + $0x3e8] sm:$0xff]  ;;  %v3393_v15 = vld [vmem:[%s7535_s2 + $0x3e0] sm:$0xff]  ;;  %v457_v5 = vld [vmem:[%s7535_s2 + $0x198] sm:$0xff] }
  0x12   : > { %497 = vmatprep.subr.mxu1 %v455_v7  ;;  %v443_v14 = vld [vmem:[%s7535_s2 + $0x128] sm:$0xff]  ;;  %698 = vmatprep.subr.mxu0 %v3394_v13  ;;  %v442_v17 = vld [vmem:[%s7535_s2 + $0x120] sm:$0xff]  ;;  %v456_v7 = vld [vmem:[%s7535_s2 + $0x190] sm:$0xff] }
  0x13   : > { %498 = vmatpush1.msra.mxu1 %v454_v8  ;;  %v3390_v16 = vld [vmem:[%s7535_s2 + $0x3c8] sm:$0xff]  ;;  %699 = vmatpush1.msra.mxu0 %v3393_v15  ;;  %v3389_v18 = vld [vmem:[%s7535_s2 + $0x3c0] sm:$0xff]  ;;  %v449_v13 = vld [vmem:[%s7535_s2 + $0x158] sm:$0xff] }
  0x14   : > { %499 = vmatprep.subr.mxu1 %v451_v9  ;;  %v439_v19 = vld [vmem:[%s7535_s2 + $0x108] sm:$0xff]  ;;  %700 = vmatprep.subr.mxu0 %v3390_v16  ;;  %v438_v21 = vld [vmem:[%s7535_s2 + $0x100] sm:$0xff]  ;;  %v453_v9 = vld [vmem:[%s7535_s2 + $0x178] sm:$0xff] }
  0x15   : > { %500 = vmatpush1.msra.mxu1 %v450_v10  ;;  %v3386_v20 = vld [vmem:[%s7535_s2 + $0x3a8] sm:$0xff]  ;;  %701 = vmatpush1.msra.mxu0 %v3389_v18  ;;  %v3385_v22 = vld [vmem:[%s7535_s2 + $0x3a0] sm:$0xff]  ;;  %v448_v15 = vld [vmem:[%s7535_s2 + $0x150] sm:$0xff] }
  0x16   : > { %501 = vmatprep.subr.mxu1 %v447_v11  ;;  %v3382_v23 = vld [vmem:[%s7535_s2 + $0x388] sm:$0xff]  ;;  %702 = vmatprep.subr.mxu0 %v3386_v20  ;;  %v3381_v25 = vld [vmem:[%s7535_s2 + $0x380] sm:$0xff]  ;;  %v452_v11 = vld [vmem:[%s7535_s2 + $0x170] sm:$0xff] }
  0x17   : > { %502 = vmatpush1.msra.mxu1 %v446_v12  ;;  %v435_v24 = vld [vmem:[%s7535_s2 + $0xe8] sm:$0xff]  ;;  %v434_v26 = vld [vmem:[%s7535_s2 + $0xe0] sm:$0xff]  ;;  %703 = vmatpush1.msra.mxu0 %v3385_v22  ;;  %v445_v16 = vld [vmem:[%s7535_s2 + $0x138] sm:$0xff] }
  0x18   : > { %503 = vmatprep.subr.mxu1 %v443_v14  ;;  %v3378_v27 = vld [vmem:[%s7535_s2 + $0x368] sm:$0xff]  ;;  %704 = vmatprep.subr.mxu0 %v3382_v23  ;;  %v3377_v29 = vld [vmem:[%s7535_s2 + $0x360] sm:$0xff]  ;;  %v3428_v14 = vld [vmem:[%s7537_s4 + $0x2f8] sm:$0xff] }
  0x19   : > { %504 = vmatpush1.msra.mxu1 %v442_v17  ;;  %v431_v28 = vld [vmem:[%s7535_s2 + $0xc8] sm:$0xff]  ;;  %v430_v30 = vld [vmem:[%s7535_s2 + $0xc0] sm:$0xff]  ;;  %705 = vmatpush1.msra.mxu0 %v3381_v25  ;;  %v3427_v17 = vld [vmem:[%s7537_s4 + $0x2f0] sm:$0xff] }
  0x1a   : > { %505 = vmatprep.subr.mxu1 %v439_v19  ;;  %v3374_v31 = vld [vmem:[%s7535_s2 + $0x348] sm:$0xff]  ;;  %706 = vmatprep.subr.mxu0 %v3378_v27  ;;  %v3373_v33 = vld [vmem:[%s7535_s2 + $0x340] sm:$0xff]  ;;  %v444_v18 = vld [vmem:[%s7535_s2 + $0x130] sm:$0xff] }
  0x1b   : > { %506 = vmatpush1.msra.mxu1 %v438_v21  ;;  %v427_v32 = vld [vmem:[%s7535_s2 + $0xa8] sm:$0xff]  ;;  %v426_v34 = vld [vmem:[%s7535_s2 + $0xa0] sm:$0xff]  ;;  %707 = vmatpush1.msra.mxu0 %v3377_v29  ;;  %v441_v20 = vld [vmem:[%s7535_s2 + $0x118] sm:$0xff] }
  0x1c   : > { %507 = vmatprep.subr.mxu1 %v435_v24  ;;  %v3370_v35 = vld [vmem:[%s7535_s2 + $0x328] sm:$0xff]  ;;  %708 = vmatprep.subr.mxu0 %v3374_v31  ;;  %v3369_v37 = vld [vmem:[%s7535_s2 + $0x320] sm:$0xff]  ;;  %v440_v22 = vld [vmem:[%s7535_s2 + $0x110] sm:$0xff] }
  0x1d   : > { %508 = vmatpush1.msra.mxu1 %v434_v26  ;;  %v423_v36 = vld [vmem:[%s7535_s2 + $0x88] sm:$0xff]  ;;  %v422_v38 = vld [vmem:[%s7535_s2 + $0x80] sm:$0xff]  ;;  %709 = vmatpush1.msra.mxu0 %v3373_v33  ;;  %v437_v23 = vld [vmem:[%s7535_s2 + $0xf8] sm:$0xff] }
  0x1e   : > { %509 = vmatprep.subr.mxu1 %v431_v28  ;;  %v3366_v39 = vld [vmem:[%s7535_s2 + $0x308] sm:$0xff]  ;;  %710 = vmatprep.subr.mxu0 %v3370_v35  ;;  %v3365_v41 = vld [vmem:[%s7535_s2 + $0x300] sm:$0xff]  ;;  %v3424_v24 = vld [vmem:[%s7537_s4 + $0x2d8] sm:$0xff] }
  0x1f   : > { %510 = vmatpush1.msra.mxu1 %v430_v30  ;;  %v419_v40 = vld [vmem:[%s7535_s2 + $0x68] sm:$0xff]  ;;  %v418_v42 = vld [vmem:[%s7535_s2 + $0x60] sm:$0xff]  ;;  %711 = vmatpush1.msra.mxu0 %v3369_v37  ;;  %v436_v25 = vld [vmem:[%s7535_s2 + $0xf0] sm:$0xff] }
  0x20   : > { %511 = vmatprep.subr.mxu1 %v427_v32  ;;  %v3362_v43 = vld [vmem:[%s7535_s2 + $0x2e8] sm:$0xff]  ;;  %712 = vmatprep.subr.mxu0 %v3366_v39  ;;  %v3361_v45 = vld [vmem:[%s7535_s2 + $0x2e0] sm:$0xff]  ;;  %v3423_v26 = vld [vmem:[%s7537_s4 + $0x2d0] sm:$0xff] }
  0x21   : > { %512 = vmatpush1.msra.mxu1 %v426_v34  ;;  %v415_v44 = vld [vmem:[%s7535_s2 + $0x48] sm:$0xff]  ;;  %v414_v46 = vld [vmem:[%s7535_s2 + $0x40] sm:$0xff]  ;;  %713 = vmatpush1.msra.mxu0 %v3365_v41  ;;  %v433_v27 = vld [vmem:[%s7535_s2 + $0xd8] sm:$0xff] }
  0x22   : > { %513 = vmatprep.subr.mxu1 %v423_v36  ;;  %v3358_v47 = vld [vmem:[%s7535_s2 + $0x2c8] sm:$0xff]  ;;  %714 = vmatprep.subr.mxu0 %v3362_v43  ;;  %v3357_v49 = vld [vmem:[%s7535_s2 + $0x2c0] sm:$0xff]  ;;  %v432_v29 = vld [vmem:[%s7535_s2 + $0xd0] sm:$0xff] }
  0x23   : > { %514 = vmatpush1.msra.mxu1 %v422_v38  ;;  %v411_v48 = vld [vmem:[%s7535_s2 + $0x28] sm:$0xff]  ;;  %v410_v50 = vld [vmem:[%s7535_s2 + $0x20] sm:$0xff]  ;;  %715 = vmatpush1.msra.mxu0 %v3361_v45  ;;  %v429_v31 = vld [vmem:[%s7535_s2 + $0xb8] sm:$0xff] }
  0x24   : > { %515 = vmatprep.subr.mxu1 %v419_v40  ;;  %v3354_v51 = vld [vmem:[%s7535_s2 + $0x2a8] sm:$0xff]  ;;  %716 = vmatprep.subr.mxu0 %v3358_v47  ;;  %v3353_v53 = vld [vmem:[%s7535_s2 + $0x2a0] sm:$0xff]  ;;  %v3420_v32 = vld [vmem:[%s7537_s4 + $0x2b8] sm:$0xff] }
  0x25   : > { %516 = vmatpush1.msra.mxu1 %v418_v42  ;;  %v407_v52 = vld [vmem:[%s7535_s2 + $0x8] sm:$0xff]  ;;  %v406_v54 = vld [vmem:[%s7535_s2] sm:$0xff]  ;;  %717 = vmatpush1.msra.mxu0 %v3357_v49  ;;  %v428_v33 = vld [vmem:[%s7535_s2 + $0xb0] sm:$0xff] }
  0x26   : > { %517 = vmatprep.subr.mxu1 %v415_v44  ;;  %v3350_v55 = vld [vmem:[%s7535_s2 + $0x288] sm:$0xff]  ;;  %v4312_v56 = vld [vmem:[%s398_s21] sm:$0xf]  ;;  %718 = vmatprep.subr.mxu0 %v3354_v51  ;;  %v3419_v34 = vld [vmem:[%s7537_s4 + $0x2b0] sm:$0xff]  ;;  %s403_s21 = scalar_lea.vmem %s7544_s11, %s4040_s25 }
  0x27   : > { %518 = vmatpush1.msra.mxu1 %v414_v46  ;;  %719 = vmatpush1.msra.mxu0 %v3353_v53  ;;  %v3349_v59 = vld [vmem:[%s7535_s2 + $0x280] sm:$0xff]  ;;  %v3346_v61 = vld [vmem:[%s7535_s2 + $0x268] sm:$0xff]  ;;  %v425_v35 = vld [vmem:[%s7535_s2 + $0x98] sm:$0xff] }
  0x28   : > { %519 = vmatprep.subr.mxu1 %v411_v48  ;;  %720 = vmatprep.subr.mxu0 %v3350_v55  ;;  %v3345_v63 = vld [vmem:[%s7535_s2 + $0x260] sm:$0xff]  ;;  %v3342_v1 = vld [vmem:[%s7535_s2 + $0x248] sm:$0xff]  ;;  %v424_v37 = vld [vmem:[%s7535_s2 + $0x90] sm:$0xff] }
  0x29   : > { %520 = vmatpush1.msra.mxu1 %v410_v50  ;;  %721 = vmatpush1.msra.mxu0 %v3349_v59  ;;  %v3341_v3 = vld [vmem:[%s7535_s2 + $0x240] sm:$0xff]  ;;  %v3338_v6 = vld [vmem:[%s7535_s2 + $0x228] sm:$0xff]  ;;  %v421_v39 = vld [vmem:[%s7535_s2 + $0x78] sm:$0xff] }
  0x2a   : > { %521 = vmatprep.subr.mxu1 %v407_v52  ;;  %722 = vmatprep.subr.mxu0 %v3346_v61  ;;  %v3337_v8 = vld [vmem:[%s7535_s2 + $0x220] sm:$0xff]  ;;  %v3334_v10 = vld [vmem:[%s7535_s2 + $0x208] sm:$0xff]  ;;  %v3416_v40 = vld [vmem:[%s7537_s4 + $0x298] sm:$0xff] }
  0x2b   : > { %522 = vmatpush1.msra.mxu1 %v406_v54  ;;  %723 = vmatpush1.msra.mxu0 %v3345_v63  ;;  %v3333_v12 = vld [vmem:[%s7535_s2 + $0x200] sm:$0xff]  ;;  %v3426_v19 = vld [vmem:[%s7537_s4 + $0x2e8] sm:$0xff]  ;;  %v420_v41 = vld [vmem:[%s7535_s2 + $0x70] sm:$0xff] }
  0x2c   : > { %556 = vmatmul.mubr.f32.vlgmr.msra.gmra.mxu1 %v4312_v56  ;;  %562 = vmatprep.subr.mxu1 %v469_v57  ;;  %v3425_v21 = vld [vmem:[%s7537_s4 + $0x2e0] sm:$0xff]  ;;  %v3422_v28 = vld [vmem:[%s7537_s4 + $0x2c8] sm:$0xff]  ;;  %v3415_v42 = vld [vmem:[%s7537_s4 + $0x290] sm:$0xff] }
  0x2d   : > { %563 = vmatpush1.msra.mxu1 %v468_v58  ;;  %724 = vmatprep.subr.mxu0 %v3342_v1  ;;  %v3421_v30 = vld [vmem:[%s7537_s4 + $0x2c0] sm:$0xff]  ;;  %v3418_v36 = vld [vmem:[%s7537_s4 + $0x2a8] sm:$0xff]  ;;  %v417_v43 = vld [vmem:[%s7535_s2 + $0x58] sm:$0xff] }
  0x2e   : > { %564 = vmatprep.subr.mxu1 %v465_v60  ;;  %725 = vmatpush1.msra.mxu0 %v3341_v3  ;;  %v3417_v38 = vld [vmem:[%s7537_s4 + $0x2a0] sm:$0xff]  ;;  %v3414_v44 = vld [vmem:[%s7537_s4 + $0x288] sm:$0xff]  ;;  %v416_v45 = vld [vmem:[%s7535_s2 + $0x50] sm:$0xff] }
  0x2f   : > { %565 = vmatpush1.msra.mxu1 %v464_v62  ;;  %726 = vmatprep.subr.mxu0 %v3338_v6  ;;  %v3413_v46 = vld [vmem:[%s7537_s4 + $0x280] sm:$0xff]  ;;  %v413_v47 = vld [vmem:[%s7535_s2 + $0x38] sm:$0xff]  ;;  %v412_v49 = vld [vmem:[%s7535_s2 + $0x30] sm:$0xff] }
  0x30   : > { %566 = vmatprep.subr.mxu1 %v461_v0  ;;  %727 = vmatpush1.msra.mxu0 %v3337_v8  ;;  %v3412_v48 = vld [vmem:[%s7537_s4 + $0x278] sm:$0xff]  ;;  %v3411_v50 = vld [vmem:[%s7537_s4 + $0x270] sm:$0xff]  ;;  %v3410_v52 = vld [vmem:[%s7537_s4 + $0x268] sm:$0xff] }
  0x31   : > { %567 = vmatpush1.msra.mxu1 %v460_v2  ;;  %728 = vmatprep.subr.mxu0 %v3334_v10  ;;  %v409_v51 = vld [vmem:[%s7535_s2 + $0x18] sm:$0xff]  ;;  %v408_v53 = vld [vmem:[%s7535_s2 + $0x10] sm:$0xff]  ;;  %v3409_v54 = vld [vmem:[%s7537_s4 + $0x260] sm:$0xff] }
  0x32   : > { %568 = vmatprep.subr.mxu1 %v457_v5  ;;  %729 = vmatpush1.msra.mxu0 %v3333_v12  ;;  %v3396_v55 = vld [vmem:[%s7535_s2 + $0x3f8] sm:$0xff]  ;;  %v3395_v57 = vld [vmem:[%s7535_s2 + $0x3f0] sm:$0xff]  ;;  %v3406_v62 = vld [vmem:[%s7537_s4 + $0x248] sm:$0xff] }
  0x33   : > { %569 = vmatpush1.msra.mxu1 %v456_v7  ;;  %1105 = vmatprep.subr.mxu0 %v3428_v14  ;;  %v3408_v58 = vld [vmem:[%s7537_s4 + $0x258] sm:$0xff]  ;;  %v3407_v60 = vld [vmem:[%s7537_s4 + $0x250] sm:$0xff]  ;;  %v3405_v0 = vld [vmem:[%s7537_s4 + $0x240] sm:$0xff] }
  0x34   : > { %570 = vmatprep.subr.mxu1 %v453_v9  ;;  %763 = vmatmul.mubr.f32.vlgmr.msra.gmra.mxu0 %v4312_v56  ;;  %v3392_v59 = vld [vmem:[%s7535_s2 + $0x3d8] sm:$0xff]  ;;  %v3391_v61 = vld [vmem:[%s7535_s2 + $0x3d0] sm:$0xff]  ;;  %v3402_v7 = vld [vmem:[%s7537_s4 + $0x228] sm:$0xff] }
  0x35   : > { %571 = vmatpush1.msra.mxu1 %v452_v11  ;;  %1106 = vmatpush1.msra.mxu0 %v3427_v17  ;;  %v3388_v63 = vld [vmem:[%s7535_s2 + $0x3b8] sm:$0xff]  ;;  %v3387_v1 = vld [vmem:[%s7535_s2 + $0x3b0] sm:$0xff]  ;;  %v3401_v9 = vld [vmem:[%s7537_s4 + $0x220] sm:$0xff] }
  0x36   : > { %572 = vmatprep.subr.mxu1 %v449_v13  ;;  %1107 = vmatprep.subr.mxu0 %v3426_v19  ;;  %v3404_v2 = vld [vmem:[%s7537_s4 + $0x238] sm:$0xff]  ;;  %v3403_v5 = vld [vmem:[%s7537_s4 + $0x230] sm:$0xff]  ;;  %v3397_v17 = vld [vmem:[%s7537_s4 + $0x200] sm:$0xff] }
  0x37   : > { %573 = vmatpush1.msra.mxu1 %v448_v15  ;;  %1108 = vmatpush1.msra.mxu0 %v3425_v21  ;;  %v3384_v3 = vld [vmem:[%s7535_s2 + $0x398] sm:$0xff]  ;;  %v3383_v6 = vld [vmem:[%s7535_s2 + $0x390] sm:$0xff]  ;;  %v3398_v15 = vld [vmem:[%s7537_s4 + $0x208] sm:$0xff] }
  0x38   : > { %574 = vmatprep.subr.mxu1 %v445_v16  ;;  %626 = vmatprep.mubr.f32.mxu1 %v4059_v4  ;;  %v3380_v8 = vld [vmem:[%s7535_s2 + $0x378] sm:$0xff]  ;;  %v3379_v10 = vld [vmem:[%s7535_s2 + $0x370] sm:$0xff] }
  0x39   : > { %575 = vmatpush1.msra.mxu1 %v444_v18  ;;  %1109 = vmatprep.subr.mxu0 %v3424_v24  ;;  %v3400_v11 = vld [vmem:[%s7537_s4 + $0x218] sm:$0xff]  ;;  %v3399_v13 = vld [vmem:[%s7537_s4 + $0x210] sm:$0xff] }
  0x3a   : > { %576 = vmatprep.subr.mxu1 %v441_v20  ;;  %1110 = vmatpush1.msra.mxu0 %v3423_v26  ;;  %v3376_v12 = vld [vmem:[%s7535_s2 + $0x358] sm:$0xff]  ;;  %v3375_v14 = vld [vmem:[%s7535_s2 + $0x350] sm:$0xff] }
  0x3b   : > { %577 = vmatpush1.msra.mxu1 %v440_v22  ;;  %1111 = vmatprep.subr.mxu0 %v3422_v28  ;;  %v3372_v16 = vld [vmem:[%s7535_s2 + $0x338] sm:$0xff]  ;;  %v3371_v18 = vld [vmem:[%s7535_s2 + $0x330] sm:$0xff] }
  0x3c   : > { %578 = vmatprep.subr.mxu1 %v437_v23  ;;  %1112 = vmatpush1.msra.mxu0 %v3421_v30  ;;  %v3460_v19 = vld [vmem:[%s7537_s4 + $0x3f8] sm:$0xff]  ;;  %v3459_v21 = vld [vmem:[%s7537_s4 + $0x3f0] sm:$0xff]  ;;  %v3458_v23 = vld [vmem:[%s7537_s4 + $0x3e8] sm:$0xff] }
  0x3d   : > { %579 = vmatpush1.msra.mxu1 %v436_v25  ;;  %1113 = vmatprep.subr.mxu0 %v3420_v32  ;;  %v3368_v20 = vld [vmem:[%s7535_s2 + $0x318] sm:$0xff]  ;;  %v3367_v22 = vld [vmem:[%s7535_s2 + $0x310] sm:$0xff]  ;;  %v3457_v25 = vld [vmem:[%s7537_s4 + $0x3e0] sm:$0xff] }
  0x3e   : > { %580 = vmatprep.subr.mxu1 %v433_v27  ;;  %1114 = vmatpush1.msra.mxu0 %v3419_v34  ;;  %v3364_v24 = vld [vmem:[%s7535_s2 + $0x2f8] sm:$0xff]  ;;  %v3363_v26 = vld [vmem:[%s7535_s2 + $0x2f0] sm:$0xff]  ;;  %v3454_v32 = vld [vmem:[%s7537_s4 + $0x3c8] sm:$0xff] }
  0x3f   : > { %581 = vmatpush1.msra.mxu1 %v432_v29  ;;  %1115 = vmatprep.subr.mxu0 %v3418_v36  ;;  %v3360_v27 = vld [vmem:[%s7535_s2 + $0x2d8] sm:$0xff]  ;;  %v3359_v29 = vld [vmem:[%s7535_s2 + $0x2d0] sm:$0xff]  ;;  %v3453_v34 = vld [vmem:[%s7537_s4 + $0x3c0] sm:$0xff] }
  0x40   : > { %582 = vmatprep.subr.mxu1 %v429_v31  ;;  %1116 = vmatpush1.msra.mxu0 %v3417_v38  ;;  %v3456_v28 = vld [vmem:[%s7537_s4 + $0x3d8] sm:$0xff]  ;;  %v3455_v30 = vld [vmem:[%s7537_s4 + $0x3d0] sm:$0xff] }
  0x41   : > { %583 = vmatpush1.msra.mxu1 %v428_v33  ;;  %1117 = vmatprep.subr.mxu0 %v3416_v40  ;;  %v3356_v31 = vld [vmem:[%s7535_s2 + $0x2b8] sm:$0xff]  ;;  %v3355_v33 = vld [vmem:[%s7535_s2 + $0x2b0] sm:$0xff]  ;;  %v3450_v40 = vld [vmem:[%s7537_s4 + $0x3a8] sm:$0xff] }
  0x42   : > { %584 = vmatprep.subr.mxu1 %v425_v35  ;;  %1118 = vmatpush1.msra.mxu0 %v3415_v42  ;;  %v3352_v35 = vld [vmem:[%s7535_s2 + $0x298] sm:$0xff]  ;;  %v3451_v38 = vld [vmem:[%s7537_s4 + $0x3b0] sm:$0xff]  ;;  %v3449_v42 = vld [vmem:[%s7537_s4 + $0x3a0] sm:$0xff] }
  0x43   : > { %585 = vmatpush1.msra.mxu1 %v424_v37  ;;  %1119 = vmatprep.subr.mxu0 %v3414_v44  ;;  %v3452_v36 = vld [vmem:[%s7537_s4 + $0x3b8] sm:$0xff]  ;;  %v3351_v37 = vld [vmem:[%s7535_s2 + $0x290] sm:$0xff] }
  0x44   : > { %586 = vmatprep.subr.mxu1 %v421_v39  ;;  %1120 = vmatpush1.msra.mxu0 %v3413_v46  ;;  %v3348_v39 = vld [vmem:[%s7535_s2 + $0x278] sm:$0xff] }
  0x45   : > { %587 = vmatpush1.msra.mxu1 %v420_v41  ;;  %1121 = vmatprep.subr.mxu0 %v3412_v48  ;;  %v3347_v41 = vld [vmem:[%s7535_s2 + $0x270] sm:$0xff]  ;;  %v3448_v44 = vld [vmem:[%s7537_s4 + $0x398] sm:$0xff]  ;;  %v3446_v48 = vld [vmem:[%s7537_s4 + $0x388] sm:$0xff] }
  0x46   : > { %588 = vmatprep.subr.mxu1 %v417_v43  ;;  %1122 = vmatpush1.msra.mxu0 %v3411_v50  ;;  %v3344_v43 = vld [vmem:[%s7535_s2 + $0x258] sm:$0xff] }
  0x47   : > { %589 = vmatpush1.msra.mxu1 %v416_v45  ;;  %1123 = vmatprep.subr.mxu0 %v3410_v52  ;;  %v3343_v45 = vld [vmem:[%s7535_s2 + $0x250] sm:$0xff]  ;;  %v3340_v46 = vld [vmem:[%s7535_s2 + $0x238] sm:$0xff]  ;;  %v3445_v52 = vld [vmem:[%s7537_s4 + $0x380] sm:$0xff] }
  0x48   : > { %590 = vmatprep.subr.mxu1 %v413_v47  ;;  %1124 = vmatpush1.msra.mxu0 %v3409_v54  ;;  %v3447_v47 = vld [vmem:[%s7537_s4 + $0x390] sm:$0xff]  ;;  %v1026_v50 = vld [vmem:[%s4650_s13 + $0x18] sm:$0x1] }
  0x49   : > { %591 = vmatpush1.msra.mxu1 %v412_v49  ;;  %1125 = vmatprep.subr.mxu0 %v3408_v58  ;;  %v1024_v49 = vld [vmem:[%s4650_s13 + $0x8] sm:$0xfe]  ;;  %v3444_v54 = vld [vmem:[%s7537_s4 + $0x378] sm:$0xff] }
  0x4a   : > { %592 = vmatprep.subr.mxu1 %v409_v51  ;;  %1126 = vmatpush1.msra.mxu0 %v3407_v60  ;;  %v3339_v51 = vld [vmem:[%s7535_s2 + $0x230] sm:$0xff]  ;;  %v1100_v58 = vrot.slane %v1024_v49, 1  ;;  %v3442_v60 = vld [vmem:[%s7537_s4 + $0x368] sm:$0xff] }
  0x4b   : > { %593 = vmatpush1.msra.mxu1 %v408_v53  ;;  %1127 = vmatprep.subr.mxu0 %v3406_v62  ;;  %v3336_v53 = vld [vmem:[%s7535_s2 + $0x218] sm:$0xff]  ;;  %v969_v49 = vld [vmem:[%s7537_s4 + $0x50] sm:$0xff] }
  0x4c   : > { %627 = vmatmul.mubr.f32.vlgmr.msra.gmra.mxu1 %v4312_v56  ;;  %769 = vmatprep.subr.mxu1 %v3396_v55  ;;  %v3335_v55 = vld [vmem:[%s7535_s2 + $0x210] sm:$0xff]  ;;  %v990_v62 = vld [vmem:[%s7537_s4 + $0xf8] sm:$0xff] }
  0x4d   : > { %770 = vmatpush1.msra.mxu1 %v3395_v57  ;;  %1128 = vmatpush1.msra.mxu0 %v3405_v0  ;;  %v3443_v57 = vld [vmem:[%s7537_s4 + $0x370] sm:$0xff] }
  0x4e   : > { %771 = vmatprep.subr.mxu1 %v3392_v59  ;;  %1129 = vmatprep.subr.mxu0 %v3404_v2  ;;  %v1101_v59 = vrot.slane %v1026_v50, 1  ;;  %v989_v0 = vld [vmem:[%s7537_s4 + $0xf0] sm:$0xff]  ;;  %v3481_v50 = vld [vmem:[%s7537_s4 + $0x4a0] sm:$0xff] }
  0x4f   : > { %772 = vmatpush1.msra.mxu1 %v3391_v61  ;;  %1130 = vmatpush1.msra.mxu0 %v3403_v5  ;;  %v3441_v61 = vld [vmem:[%s7537_s4 + $0x360] sm:$0xff]  ;;  %v3439_v2 = vld [vmem:[%s7537_s4 + $0x350] sm:$0xff]  ;;  %v3438_v5 = vld [vmem:[%s7537_s4 + $0x348] sm:$0xff] }
  0x50   : > { %773 = vmatprep.subr.mxu1 %v3388_v63  ;;  %1131 = vmatprep.subr.mxu0 %v3402_v7  ;;  %v3440_v63 = vld [vmem:[%s7537_s4 + $0x358] sm:$0xff]  ;;  %v3437_v7 = vld [vmem:[%s7537_s4 + $0x340] sm:$0xff] }
  0x51   : > { %774 = vmatpush1.msra.mxu1 %v3387_v1  ;;  %1132 = vmatpush1.msra.mxu0 %v3401_v9  ;;  %v471_v1 = vlaneseq  ;;  %v3436_v9 = vld [vmem:[%s7537_s4 + $0x338] sm:$0xff] }
  0x52   : > { %775 = vmatprep.subr.mxu1 %v3384_v3  ;;  %1133 = vmatprep.subr.mxu0 %v3400_v11  ;;  %v1102_v3 = vsel %vm1096_vm0, %v1100_v58, %v1101_v59  ;;  %v986_v11 = vld [vmem:[%s7537_s4 + $0xd8] sm:$0xff]  ;;  %v965_v58 = vld [vmem:[%s7537_s4 + $0x30] sm:$0xff]  ;;  %v3477_v59 = vld [vmem:[%s7537_s4 + $0x480] sm:$0xff] }
  0x53   : > { %776 = vmatpush1.msra.mxu1 %v3383_v6  ;;  %1134 = vmatpush1.msra.mxu0 %v3399_v13  ;;  %v988_v6 = vld [vmem:[%s7537_s4 + $0xe8] sm:$0xff]  ;;  %vm4723_vm1 = vcmp.lt.s32.totalorder %v471_v1, 512  ;;  %vm2302_vm2 = vcmp.lt.s32.totalorder %v471_v1, 256  ;;  %v1025_v13 = vld [vmem:[%s4650_s13 + $0x10] sm:$0x1] }
  0x54   : > { %777 = vmatprep.subr.mxu1 %v3380_v8  ;;  %1135 = vmatprep.subr.mxu0 %v3398_v15  ;;  %v987_v8 = vld [vmem:[%s7537_s4 + $0xe0] sm:$0xff]  ;;  %2307 = vst.msk [vmem:[#allocation3 + $0x11] ss:$8 sm:$0x3] %vm2302_vm2, %v4059_v4  ;;  %v984_v15 = vld [vmem:[%s7537_s4 + $0xc8] sm:$0xff] }
  0x55   : > { %778 = vmatpush1.msra.mxu1 %v3379_v10  ;;  %1136 = vmatpush1.msra.mxu0 %v3397_v17  ;;  %2781 = vst.msk [vmem:[#allocation4 + $0x11] ss:$8 sm:$0x3] %vm2302_vm2, %v4059_v4  ;;  %2304 = vst.msk [vmem:[#allocation3] ss:$8 sm:$0x3] %vm2302_vm2, %v4059_v4 }
  0x56   : > { %779 = vmatprep.subr.mxu1 %v3376_v12  ;;  %1137 = vmatprep.subr.mxu0 %v3460_v19  ;;  %844 = vst.msk [vmem:[#allocation2] ss:$8 sm:$0xf] %vm4723_vm1, %v4059_v4  ;;  %847 = vst.msk [vmem:[#allocation2 + $0x21] ss:$8 sm:$0xf] %vm4723_vm1, %v4059_v4 }
  0x57   : > { %780 = vmatpush1.msra.mxu1 %v3375_v14  ;;  %1138 = vmatpush2.msra.mxu0 %v3459_v21  ;;  %2778 = vst.msk [vmem:[#allocation4] ss:$8 sm:$0x3] %vm2302_vm2, %v4059_v4  ;;  %v3435_v10 = vld [vmem:[%s7537_s4 + $0x330] sm:$0xff]  ;;  %v1023_v12 = vld [vmem:[%s4650_s13] sm:$0xfe] }
  0x58   : > { %781 = vmatprep.subr.mxu1 %v3372_v16  ;;  %1139 = vmatprep.subr.mxu0 %v3458_v23  ;;  %v3434_v14 = vld [vmem:[%s7537_s4 + $0x328] sm:$0xff]  ;;  %v3433_v16 = vld [vmem:[%s7537_s4 + $0x320] sm:$0xff]  ;;  %v1097_v19 = vrot.slane %v1023_v12, 1  ;;  %v982_v21 = vld [vmem:[%s7537_s4 + $0xb8] sm:$0xff] }
  0x59   : > { %782 = vmatpush1.msra.mxu1 %v3371_v18  ;;  %1140 = vmatpush2.msra.mxu0 %v3457_v25  ;;  %v983_v17 = vld [vmem:[%s7537_s4 + $0xc0] sm:$0xff]  ;;  %v3432_v18 = vld [vmem:[%s7537_s4 + $0x318] sm:$0xff]  ;;  %v981_v23 = vld [vmem:[%s7537_s4 + $0xb0] sm:$0xff] }
  0x5a   : > { %783 = vmatprep.subr.mxu1 %v3368_v20  ;;  %833 = vmatprep.mubr.f32.mxu1 %v4059_v4  ;;  %v985_v4 = vld [vmem:[%s7537_s4 + $0xd0] sm:$0xff]  ;;  %v1098_v20 = vrot.slane %v1025_v13, 1  ;;  %v980_v25 = vld [vmem:[%s7537_s4 + $0xa8] sm:$0xff]  ;;  %v3469_v13 = vld [vmem:[%s7537_s4 + $0x440] sm:$0xff] }
  0x5b   : > { %784 = vmatpush1.msra.mxu1 %v3367_v22  ;;  %1141 = vmatprep.subr.mxu0 %v3456_v28  ;;  %v3431_v22 = vld [vmem:[%s7537_s4 + $0x310] sm:$0xff]  ;;  %v3492_v28 = vld [vmem:[%s7537_s4 + $0x4f8] sm:$0xff] }
  0x5c   : > { %785 = vmatprep.subr.mxu1 %v3364_v24  ;;  %1142 = vmatpush2.msra.mxu0 %v3455_v30  ;;  %v3430_v24 = vld [vmem:[%s7537_s4 + $0x308] sm:$0xff]  ;;  %v3491_v30 = vld [vmem:[%s7537_s4 + $0x4f0] sm:$0xff] }
  0x5d   : > { %786 = vmatpush1.msra.mxu1 %v3363_v26  ;;  %1143 = vmatprep.subr.mxu0 %v3454_v32  ;;  %v3429_v26 = vld [vmem:[%s7537_s4 + $0x300] sm:$0xff]  ;;  %v3490_v32 = vld [vmem:[%s7537_s4 + $0x4e8] sm:$0xff]  ;;  %v1021_v12 = vld [vmem:[%s7537_s4 + $0x1f0] sm:$0xff] }
  0x5e   : > { %787 = vmatprep.subr.mxu1 %v3360_v27  ;;  %1144 = vmatpush2.msra.mxu0 %v3453_v34  ;;  %v979_v27 = vld [vmem:[%s7537_s4 + $0xa0] sm:$0xff] }
  0x5f   : > { %788 = vmatpush1.msra.mxu1 %v3359_v29  ;;  %1145 = vmatprep.subr.mxu0 %v3452_v36  ;;  %v1099_v29 = vsel %vm1096_vm0, %v1097_v19, %v1098_v20  ;;  %v3489_v34 = vld [vmem:[%s7537_s4 + $0x4e0] sm:$0xff]  ;;  %v3488_v36 = vld [vmem:[%s7537_s4 + $0x4d8] sm:$0xff]  ;;  %v1017_v19 = vld [vmem:[%s7537_s4 + $0x1d0] sm:$0xff] }
  0x60   : > { %789 = vmatprep.subr.mxu1 %v3356_v31  ;;  %1146 = vmatpush2.msra.mxu0 %v3451_v38  ;;  %v978_v31 = vld [vmem:[%s7537_s4 + $0x98] sm:$0xff]  ;;  %v3487_v38 = vld [vmem:[%s7537_s4 + $0x4d0] sm:$0xff]  ;;  %v3465_v20 = vld [vmem:[%s7537_s4 + $0x420] sm:$0xff] }
  0x61   : > { %790 = vmatpush1.msra.mxu1 %v3355_v33  ;;  %1147 = vmatprep.subr.mxu0 %v3450_v40  ;;  %v977_v33 = vld [vmem:[%s7537_s4 + $0x90] sm:$0xff]  ;;  %v3486_v40 = vld [vmem:[%s7537_s4 + $0x4c8] sm:$0xff] }
  0x62   : > { %791 = vmatprep.subr.mxu1 %v3352_v35  ;;  %1148 = vmatpush2.msra.mxu0 %v3449_v42  ;;  %v976_v35 = vld [vmem:[%s7537_s4 + $0x88] sm:$0xff]  ;;  %v3485_v42 = vld [vmem:[%s7537_s4 + $0x4c0] sm:$0xff] }
  0x63   : > { %792 = vmatpush1.msra.mxu1 %v3351_v37  ;;  %1149 = vmatprep.subr.mxu0 %v3448_v44  ;;  %v975_v37 = vld [vmem:[%s7537_s4 + $0x80] sm:$0xff]  ;;  %v3484_v44 = vld [vmem:[%s7537_s4 + $0x4b8] sm:$0xff] }
  0x64   : > { %793 = vmatprep.subr.mxu1 %v3348_v39  ;;  %1150 = vmatpush2.msra.mxu0 %v3447_v47  ;;  %v974_v39 = vld [vmem:[%s7537_s4 + $0x78] sm:$0xff] }
  0x65   : > { %794 = vmatpush1.msra.mxu1 %v3347_v41  ;;  %1151 = vmatprep.subr.mxu0 %v3446_v48  ;;  %v973_v41 = vld [vmem:[%s7537_s4 + $0x70] sm:$0xff]  ;;  %v970_v47 = vld [vmem:[%s7537_s4 + $0x58] sm:$0xff]  ;;  %v3482_v48 = vld [vmem:[%s7537_s4 + $0x4a8] sm:$0xff] }
  0x66   : > { %795 = vmatprep.subr.mxu1 %v3344_v43  ;;  %1152 = vmatpush2.msra.mxu0 %v3445_v52  ;;  %v972_v43 = vld [vmem:[%s7537_s4 + $0x68] sm:$0xff]  ;;  %v3480_v52 = vld [vmem:[%s7537_s4 + $0x498] sm:$0xff] }
  0x67   : > { %796 = vmatpush1.msra.mxu1 %v3343_v45  ;;  %1153 = vmatprep.subr.mxu0 %v3444_v54  ;;  %v971_v45 = vld [vmem:[%s7537_s4 + $0x60] sm:$0xff]  ;;  %v3479_v54 = vld [vmem:[%s7537_s4 + $0x490] sm:$0xff] }
  0x68   : > { %797 = vmatprep.subr.mxu1 %v3340_v46  ;;  %1154 = vmatpush2.msra.mxu0 %v3443_v57  ;;  %v3483_v46 = vld [vmem:[%s7537_s4 + $0x4b0] sm:$0xff]  ;;  %v3478_v57 = vld [vmem:[%s7537_s4 + $0x488] sm:$0xff] }
  0x69   : > { %798 = vmatpush1.msra.mxu1 %v3339_v51  ;;  %1155 = vmatprep.subr.mxu0 %v3442_v60  ;;  %v968_v51 = vld [vmem:[%s7537_s4 + $0x48] sm:$0xff] }
  0x6a   : > { %799 = vmatprep.subr.mxu1 %v3336_v53  ;;  %1156 = vmatpush2.msra.mxu0 %v3441_v61  ;;  %v967_v53 = vld [vmem:[%s7537_s4 + $0x40] sm:$0xff]  ;;  %v964_v60 = vld [vmem:[%s7537_s4 + $0x28] sm:$0xff]  ;;  %v3476_v61 = vld [vmem:[%s7537_s4 + $0x478] sm:$0xff] }
  0x6b   : > { %800 = vmatpush1.msra.mxu1 %v3335_v55  ;;  %1157 = vmatprep.subr.mxu0 %v3440_v63  ;;  %v966_v55 = vld [vmem:[%s7537_s4 + $0x38] sm:$0xff]  ;;  %v3475_v63 = vld [vmem:[%s7537_s4 + $0x470] sm:$0xff] }
  0x6c   : > { %834 = vmatmul.mubr.f32.vlgmr.msra.gmra.mxu1 %v4312_v56  ;;  %1176 = vmatprep.subr.mxu1 %v990_v62  ;;  %v963_v62 = vld [vmem:[%s7537_s4 + $0x20] sm:$0xff] }
  0x6d   : > { %1177 = vmatpush1.msra.mxu1 %v989_v0  ;;  %1158 = vmatpush2.msra.mxu0 %v3439_v2  ;;  %v962_v0 = vld [vmem:[%s7537_s4 + $0x18] sm:$0xff]  ;;  %v3474_v2 = vld [vmem:[%s7537_s4 + $0x468] sm:$0xff] }
  0x6e   : > { %1169 = vmatprep.mubr.f32.mxu0 %v1102_v3  ;;  %1159 = vmatprep.subr.mxu0 %v3438_v5  ;;  %v961_v3 = vld [vmem:[%s7537_s4 + $0x10] sm:$0xff]  ;;  %v3473_v5 = vld [vmem:[%s7537_s4 + $0x460] sm:$0xff] }
  0x6f   : > { %1178 = vmatprep.subr.mxu1 %v988_v6  ;;  %1160 = vmatpush2.msra.mxu0 %v3437_v7  ;;  %v960_v6 = vld [vmem:[%s7537_s4 + $0x8] sm:$0xff]  ;;  %v3472_v7 = vld [vmem:[%s7537_s4 + $0x458] sm:$0xff] }
  0x70   : > { %1179 = vmatpush1.msra.mxu1 %v987_v8  ;;  %1161 = vmatprep.subr.mxu0 %v3436_v9  ;;  %v959_v8 = vld [vmem:[%s7537_s4] sm:$0xff]  ;;  %v3471_v9 = vld [vmem:[%s7537_s4 + $0x450] sm:$0xff] }
  0x71   : > { %1180 = vmatprep.subr.mxu1 %v986_v11  ;;  %1162 = vmatpush2.msra.mxu0 %v3435_v10  ;;  %v1022_v10 = vld [vmem:[%s7537_s4 + $0x1f8] sm:$0xff]  ;;  %v3470_v11 = vld [vmem:[%s7537_s4 + $0x448] sm:$0xff] }
  0x72   : > { %1181 = vmatpush1.msra.mxu1 %v985_v4  ;;  %1163 = vmatprep.subr.mxu0 %v3434_v14  ;;  %v1020_v4 = vld [vmem:[%s7537_s4 + $0x1e8] sm:$0xff]  ;;  %v3468_v14 = vld [vmem:[%s7537_s4 + $0x438] sm:$0xff] }
  0x73   : > { %1182 = vmatprep.subr.mxu1 %v984_v15  ;;  %1164 = vmatpush2.msra.mxu0 %v3433_v16  ;;  %v1019_v15 = vld [vmem:[%s7537_s4 + $0x1e0] sm:$0xff]  ;;  %v3467_v16 = vld [vmem:[%s7537_s4 + $0x430] sm:$0xff] }
  0x74   : > { %1183 = vmatpush1.msra.mxu1 %v983_v17  ;;  %1165 = vmatprep.subr.mxu0 %v3432_v18  ;;  %v1018_v17 = vld [vmem:[%s7537_s4 + $0x1d8] sm:$0xff]  ;;  %v3466_v18 = vld [vmem:[%s7537_s4 + $0x428] sm:$0xff] }
  0x75   : > { %1184 = vmatprep.subr.mxu1 %v982_v21  ;;  %1166 = vmatpush2.msra.mxu0 %v3431_v22  ;;  %v1016_v21 = vld [vmem:[%s7537_s4 + $0x1c8] sm:$0xff]  ;;  %v3464_v22 = vld [vmem:[%s7537_s4 + $0x418] sm:$0xff] }
  0x76   : > { %1185 = vmatpush1.msra.mxu1 %v981_v23  ;;  %1167 = vmatprep.subr.mxu0 %v3430_v24  ;;  %v1015_v23 = vld [vmem:[%s7537_s4 + $0x1c0] sm:$0xff]  ;;  %v3463_v24 = vld [vmem:[%s7537_s4 + $0x410] sm:$0xff] }
  0x77   : > { %1186 = vmatprep.subr.mxu1 %v980_v25  ;;  %1168 = vmatpush2.msra.mxu0 %v3429_v26  ;;  %v1014_v25 = vld [vmem:[%s7537_s4 + $0x1b8] sm:$0xff]  ;;  %v3462_v26 = vld [vmem:[%s7537_s4 + $0x408] sm:$0xff] }
  0x78   : > { %1187 = vmatpush1.msra.mxu1 %v979_v27  ;;  %1329 = vmatprep.subr.mxu0 %v3492_v28  ;;  %v1013_v27 = vld [vmem:[%s7537_s4 + $0x1b0] sm:$0xff]  ;;  %v3461_v28 = vld [vmem:[%s7537_s4 + $0x400] sm:$0xff] }
  0x79   : > { %1170 = vmatmul.mubr.f32.vlgmr.msra.gmra.mxu0 %v1099_v29  ;;  %1188 = vmatprep.subr.mxu1 %v978_v31  ;;  %v1012_v29 = vld [vmem:[%s7537_s4 + $0x1a8] sm:$0xff]  ;;  %v1011_v31 = vld [vmem:[%s7537_s4 + $0x1a0] sm:$0xff] }
  0x7a   : > { %1330 = vmatpush1.msra.mxu0 %v3491_v30  ;;  %1189 = vmatpush1.msra.mxu1 %v977_v33  ;;  %v3524_v30 = vld [vmem:[%s7537_s4 + $0x5f8] sm:$0xff] }
  0x7b   : > { %1331 = vmatprep.subr.mxu0 %v3490_v32  ;;  %1190 = vmatprep.subr.mxu1 %v976_v35  ;;  %v3523_v32 = vld [vmem:[%s7537_s4 + $0x5f0] sm:$0xff]  ;;  %v1010_v33 = vld [vmem:[%s7537_s4 + $0x198] sm:$0xff] }
  0x7c   : > { %1332 = vmatpush1.msra.mxu0 %v3489_v34  ;;  %1191 = vmatpush1.msra.mxu1 %v975_v37  ;;  %v3522_v34 = vld [vmem:[%s7537_s4 + $0x5e8] sm:$0xff]  ;;  %v1009_v35 = vld [vmem:[%s7537_s4 + $0x190] sm:$0xff] }
  0x7d   : > { %1333 = vmatprep.subr.mxu0 %v3488_v36  ;;  %1192 = vmatprep.subr.mxu1 %v974_v39  ;;  %v3521_v36 = vld [vmem:[%s7537_s4 + $0x5e0] sm:$0xff]  ;;  %v1008_v37 = vld [vmem:[%s7537_s4 + $0x188] sm:$0xff] }
  0x7e   : > { %1334 = vmatpush1.msra.mxu0 %v3487_v38  ;;  %1193 = vmatpush1.msra.mxu1 %v973_v41  ;;  %v3520_v38 = vld [vmem:[%s7537_s4 + $0x5d8] sm:$0xff]  ;;  %v1007_v39 = vld [vmem:[%s7537_s4 + $0x180] sm:$0xff] }
  0x7f   : > { %1335 = vmatprep.subr.mxu0 %v3486_v40  ;;  %1194 = vmatprep.subr.mxu1 %v972_v43  ;;  %v3519_v40 = vld [vmem:[%s7537_s4 + $0x5d0] sm:$0xff]  ;;  %v1006_v41 = vld [vmem:[%s7537_s4 + $0x178] sm:$0xff] }
  0x80   : > { %1336 = vmatpush1.msra.mxu0 %v3485_v42  ;;  %1195 = vmatpush1.msra.mxu1 %v971_v45  ;;  %v3518_v42 = vld [vmem:[%s7537_s4 + $0x5c8] sm:$0xff]  ;;  %v1005_v43 = vld [vmem:[%s7537_s4 + $0x170] sm:$0xff] }
  0x81   : > { %1337 = vmatprep.subr.mxu0 %v3484_v44  ;;  %1196 = vmatprep.subr.mxu1 %v970_v47  ;;  %v3517_v44 = vld [vmem:[%s7537_s4 + $0x5c0] sm:$0xff]  ;;  %v1004_v45 = vld [vmem:[%s7537_s4 + $0x168] sm:$0xff] }
  0x82   : > { %1338 = vmatpush1.msra.mxu0 %v3483_v46  ;;  %1197 = vmatpush1.msra.mxu1 %v969_v49  ;;  %v3516_v46 = vld [vmem:[%s7537_s4 + $0x5b8] sm:$0xff]  ;;  %v1003_v47 = vld [vmem:[%s7537_s4 + $0x160] sm:$0xff] }
  0x83   : > { %1339 = vmatprep.subr.mxu0 %v3482_v48  ;;  %1198 = vmatprep.subr.mxu1 %v968_v51  ;;  %v3515_v48 = vld [vmem:[%s7537_s4 + $0x5b0] sm:$0xff]  ;;  %v1002_v49 = vld [vmem:[%s7537_s4 + $0x158] sm:$0xff] }
  0x84   : > { %1340 = vmatpush1.msra.mxu0 %v3481_v50  ;;  %1199 = vmatpush1.msra.mxu1 %v967_v53  ;;  %v3514_v50 = vld [vmem:[%s7537_s4 + $0x5a8] sm:$0xff]  ;;  %v1001_v51 = vld [vmem:[%s7537_s4 + $0x150] sm:$0xff] }
  0x85   : > { %1341 = vmatprep.subr.mxu0 %v3480_v52  ;;  %1200 = vmatprep.subr.mxu1 %v966_v55  ;;  %v3513_v52 = vld [vmem:[%s7537_s4 + $0x5a0] sm:$0xff]  ;;  %v1000_v53 = vld [vmem:[%s7537_s4 + $0x148] sm:$0xff] }
  0x86   : > { %1342 = vmatpush1.msra.mxu0 %v3479_v54  ;;  %1201 = vmatpush1.msra.mxu1 %v965_v58  ;;  %v3512_v54 = vld [vmem:[%s7537_s4 + $0x598] sm:$0xff]  ;;  %v999_v55 = vld [vmem:[%s7537_s4 + $0x140] sm:$0xff] }
  0x87   : > { %1343 = vmatprep.subr.mxu0 %v3478_v57  ;;  %1202 = vmatprep.subr.mxu1 %v964_v60  ;;  %v3511_v57 = vld [vmem:[%s7537_s4 + $0x590] sm:$0xff]  ;;  %v998_v58 = vld [vmem:[%s7537_s4 + $0x138] sm:$0xff] }
  0x88   : > { %1344 = vmatpush1.msra.mxu0 %v3477_v59  ;;  %1203 = vmatpush1.msra.mxu1 %v963_v62  ;;  %v3510_v59 = vld [vmem:[%s7537_s4 + $0x588] sm:$0xff]  ;;  %v997_v60 = vld [vmem:[%s7537_s4 + $0x130] sm:$0xff]  ;;  %v3508_v62 = vld [vmem:[%s7537_s4 + $0x578] sm:$0xff] }
  0x89   : > { %1345 = vmatprep.subr.mxu0 %v3476_v61  ;;  %1204 = vmatprep.subr.mxu1 %v962_v0  ;;  %v3509_v61 = vld [vmem:[%s7537_s4 + $0x580] sm:$0xff] }
  0x8a   : > { %1346 = vmatpush1.msra.mxu0 %v3475_v63  ;;  %1205 = vmatpush1.msra.mxu1 %v961_v3  ;;  %v996_v63 = vld [vmem:[%s7537_s4 + $0x128] sm:$0xff]  ;;  %v995_v0 = vld [vmem:[%s7537_s4 + $0x120] sm:$0xff]  ;;  %v1250_v3 = vld [vmem:[%s4650_s13 + $0x18] sm:$0x3] }
  0x8b   : > { %1347 = vmatprep.subr.mxu0 %v3474_v2  ;;  %1206 = vmatprep.subr.mxu1 %v960_v6  ;;  %v1248_v2 = vld [vmem:[%s4650_s13 + $0x8] sm:$0xfc]  ;;  %v994_v6 = vld [vmem:[%s7537_s4 + $0x118] sm:$0xff] }
  0x8c   : > { %1348 = vmatpush1.msra.mxu0 %v3473_v5  ;;  %1207 = vmatpush1.msra.mxu1 %v959_v8  ;;  %v3507_v5 = vld [vmem:[%s7537_s4 + $0x570] sm:$0xff] }
  0x8d   : > { %1349 = vmatprep.subr.mxu0 %v3472_v7  ;;  %1208 = vmatprep.subr.mxu1 %v1022_v10  ;;  %v3506_v7 = vld [vmem:[%s7537_s4 + $0x568] sm:$0xff]  ;;  %v993_v8 = vld [vmem:[%s7537_s4 + $0x110] sm:$0xff] }
  0x8e   : > { %1350 = vmatpush1.msra.mxu0 %v3471_v9  ;;  %1209 = vmatpush2.msra.mxu1 %v1021_v12  ;;  %v3505_v9 = vld [vmem:[%s7537_s4 + $0x560] sm:$0xff]  ;;  %v992_v10 = vld [vmem:[%s7537_s4 + $0x108] sm:$0xff]  ;;  %v1325_v12 = vrot.slane %v1250_v3, 2 }
  0x8f   : > { %1351 = vmatprep.subr.mxu0 %v3470_v11  ;;  %1210 = vmatprep.subr.mxu1 %v1020_v4  ;;  %v1324_v11 = vrot.slane %v1248_v2, 2  ;;  %v991_v4 = vld [vmem:[%s7537_s4 + $0x100] sm:$0xff]  ;;  %v3608_v2 = vld [vmem:[%s7538_s5 + $0x698] sm:$0xff] }
  0x90   : > { %1352 = vmatpush1.msra.mxu0 %v3469_v13  ;;  %1211 = vmatpush2.msra.mxu1 %v1019_v15  ;;  %v3504_v13 = vld [vmem:[%s7537_s4 + $0x558] sm:$0xff]  ;;  %v958_v15 = vld [vmem:[%s4650_s13 + $0x8] sm:$0xff]  ;;  %v3537_v3 = vld [vmem:[%s7538_s5 + $0x460] sm:$0xff] }
  0x91   : > { %1353 = vmatprep.subr.mxu0 %v3468_v14  ;;  %1212 = vmatprep.subr.mxu1 %v1018_v17  ;;  %v3503_v14 = vld [vmem:[%s7537_s4 + $0x550] sm:$0xff]  ;;  %v957_v17 = vld [vmem:[%s4650_s13] sm:$0xff] }
  0x92   : > { %1354 = vmatpush1.msra.mxu0 %v3467_v16  ;;  %1213 = vmatpush2.msra.mxu1 %v1017_v19  ;;  %v3502_v16 = vld [vmem:[%s7537_s4 + $0x548] sm:$0xff]  ;;  %v1326_v19 = vsel %vm1320_vm3, %v1324_v11, %v1325_v12  ;;  %v3604_v11 = vld [vmem:[%s7538_s5 + $0x678] sm:$0xff]  ;;  %v3533_v12 = vld [vmem:[%s7538_s5 + $0x440] sm:$0xff] }
  0x93   : > { %1355 = vmatprep.subr.mxu0 %v3466_v18  ;;  %1214 = vmatprep.subr.mxu1 %v1016_v21  ;;  %v3501_v18 = vld [vmem:[%s7537_s4 + $0x540] sm:$0xff]  ;;  %v3499_v21 = vld [vmem:[%s7537_s4 + $0x530] sm:$0xff] }
  0x94   : > { %1356 = vmatpush1.msra.mxu0 %v3465_v20  ;;  %1215 = vmatpush2.msra.mxu1 %v1015_v23  ;;  %v3500_v20 = vld [vmem:[%s7537_s4 + $0x538] sm:$0xff]  ;;  %v1247_v23 = vld [vmem:[%s4650_s13] sm:$0xfc] }
  0x95   : > { %1357 = vmatprep.subr.mxu0 %v3464_v22  ;;  %1216 = vmatprep.subr.mxu1 %v1014_v25  ;;  %v3556_v22 = vld [vmem:[%s7538_s5 + $0x4f8] sm:$0xff]  ;;  %v3555_v25 = vld [vmem:[%s7538_s5 + $0x4f0] sm:$0xff] }
  0x96   : > { %1358 = vmatpush1.msra.mxu0 %v3463_v24  ;;  %1217 = vmatpush2.msra.mxu1 %v1013_v27  ;;  %v1249_v24 = vld [vmem:[%s4650_s13 + $0x10] sm:$0x3]  ;;  %v3554_v27 = vld [vmem:[%s7538_s5 + $0x4e8] sm:$0xff] }
  0x97   : > { %1359 = vmatprep.subr.mxu0 %v3462_v26  ;;  %1218 = vmatprep.subr.mxu1 %v1012_v29  ;;  %v3498_v26 = vld [vmem:[%s7537_s4 + $0x528] sm:$0xff]  ;;  %v3553_v29 = vld [vmem:[%s7538_s5 + $0x4e0] sm:$0xff] }
  0x98   : > { %1360 = vmatpush1.msra.mxu0 %v3461_v28  ;;  %1219 = vmatpush2.msra.mxu1 %v1011_v31  ;;  %v3497_v28 = vld [vmem:[%s7537_s4 + $0x520] sm:$0xff]  ;;  %v1321_v31 = vrot.slane %v1247_v23, 2  ;;  %v3527_v23 = vld [vmem:[%s7538_s5 + $0x410] sm:$0xff] }
  0x99   : > { %1361 = vmatprep.subr.mxu0 %v3524_v30  ;;  %1220 = vmatprep.subr.mxu1 %v1010_v33  ;;  %v3496_v30 = vld [vmem:[%s7537_s4 + $0x518] sm:$0xff] }
  0x9a   : > { %1362 = vmatpush2.msra.mxu0 %v3523_v32  ;;  %1221 = vmatpush2.msra.mxu1 %v1009_v35  ;;  %v1322_v32 = vrot.slane %v1249_v24, 2  ;;  %v3552_v33 = vld [vmem:[%s7538_s5 + $0x4d8] sm:$0xff]  ;;  %v3551_v35 = vld [vmem:[%s7538_s5 + $0x4d0] sm:$0xff]  ;;  %v3597_v24 = vld [vmem:[%s7538_s5 + $0x640] sm:$0xff] }
  0x9b   : > { %1363 = vmatprep.subr.mxu0 %v3522_v34  ;;  %1222 = vmatprep.subr.mxu1 %v1008_v37  ;;  %v3495_v34 = vld [vmem:[%s7537_s4 + $0x510] sm:$0xff]  ;;  %v3550_v37 = vld [vmem:[%s7538_s5 + $0x4c8] sm:$0xff] }
  0x9c   : > { %1364 = vmatpush2.msra.mxu0 %v3521_v36  ;;  %1223 = vmatpush2.msra.mxu1 %v1007_v39  ;;  %v3494_v36 = vld [vmem:[%s7537_s4 + $0x508] sm:$0xff]  ;;  %v3549_v39 = vld [vmem:[%s7538_s5 + $0x4c0] sm:$0xff] }
  0x9d   : > { %1365 = vmatprep.subr.mxu0 %v3520_v38  ;;  %1224 = vmatprep.subr.mxu1 %v1006_v41  ;;  %v3493_v38 = vld [vmem:[%s7537_s4 + $0x500] sm:$0xff]  ;;  %v3620_v41 = vld [vmem:[%s7538_s5 + $0x6f8] sm:$0xff] }
  0x9e   : > { %1366 = vmatpush2.msra.mxu0 %v3519_v40  ;;  %1225 = vmatpush2.msra.mxu1 %v1005_v43  ;;  %v1323_v40 = vsel %vm1320_vm3, %v1321_v31, %v1322_v32  ;;  %v3548_v43 = vld [vmem:[%s7538_s5 + $0x4b8] sm:$0xff]  ;;  %v3587_v31 = vld [vmem:[%s7538_s5 + $0x5f0] sm:$0xff]  ;;  %v3593_v32 = vld [vmem:[%s7538_s5 + $0x620] sm:$0xff] }
  0x9f   : > { %1367 = vmatprep.subr.mxu0 %v3518_v42  ;;  %1226 = vmatprep.subr.mxu1 %v1004_v45  ;;  %v3619_v42 = vld [vmem:[%s7538_s5 + $0x6f0] sm:$0xff] }
  0xa0   : > { %1368 = vmatpush2.msra.mxu0 %v3517_v44  ;;  %1227 = vmatpush2.msra.mxu1 %v1003_v47  ;;  %v3618_v44 = vld [vmem:[%s7538_s5 + $0x6e8] sm:$0xff]  ;;  %v3547_v45 = vld [vmem:[%s7538_s5 + $0x4b0] sm:$0xff] }
  0xa1   : > { %1369 = vmatprep.subr.mxu0 %v3516_v46  ;;  %1228 = vmatprep.subr.mxu1 %v1002_v49  ;;  %v3617_v46 = vld [vmem:[%s7538_s5 + $0x6e0] sm:$0xff]  ;;  %v3546_v47 = vld [vmem:[%s7538_s5 + $0x4a8] sm:$0xff] }
  0xa2   : > { %1370 = vmatpush2.msra.mxu0 %v3515_v48  ;;  %1229 = vmatpush2.msra.mxu1 %v1001_v51  ;;  %v3616_v48 = vld [vmem:[%s7538_s5 + $0x6d8] sm:$0xff]  ;;  %v3545_v49 = vld [vmem:[%s7538_s5 + $0x4a0] sm:$0xff] }
  0xa3   : > { %1371 = vmatprep.subr.mxu0 %v3514_v50  ;;  %1230 = vmatprep.subr.mxu1 %v1000_v53  ;;  %v3615_v50 = vld [vmem:[%s7538_s5 + $0x6d0] sm:$0xff]  ;;  %v3544_v51 = vld [vmem:[%s7538_s5 + $0x498] sm:$0xff] }
  0xa4   : > { %1372 = vmatpush2.msra.mxu0 %v3513_v52  ;;  %1231 = vmatpush2.msra.mxu1 %v999_v55  ;;  %v3614_v52 = vld [vmem:[%s7538_s5 + $0x6c8] sm:$0xff]  ;;  %v3543_v53 = vld [vmem:[%s7538_s5 + $0x490] sm:$0xff] }
  0xa5   : > { %1373 = vmatprep.subr.mxu0 %v3512_v54  ;;  %1232 = vmatprep.subr.mxu1 %v998_v58  ;;  %v3613_v54 = vld [vmem:[%s7538_s5 + $0x6c0] sm:$0xff]  ;;  %v3542_v55 = vld [vmem:[%s7538_s5 + $0x488] sm:$0xff] }
  0xa6   : > { %1374 = vmatpush2.msra.mxu0 %v3511_v57  ;;  %1233 = vmatpush2.msra.mxu1 %v997_v60  ;;  %v3612_v57 = vld [vmem:[%s7538_s5 + $0x6b8] sm:$0xff]  ;;  %v3541_v58 = vld [vmem:[%s7538_s5 + $0x480] sm:$0xff] }
  0xa7   : > { %1375 = vmatprep.subr.mxu0 %v3510_v59  ;;  %1234 = vmatprep.subr.mxu1 %v996_v63  ;;  %v3611_v59 = vld [vmem:[%s7538_s5 + $0x6b0] sm:$0xff]  ;;  %v3540_v60 = vld [vmem:[%s7538_s5 + $0x478] sm:$0xff]  ;;  %v3609_v63 = vld [vmem:[%s7538_s5 + $0x6a0] sm:$0xff] }
  0xa8   : > { %1376 = vmatpush2.msra.mxu0 %v3509_v61  ;;  %1235 = vmatpush2.msra.mxu1 %v995_v0  ;;  %v3610_v61 = vld [vmem:[%s7538_s5 + $0x6a8] sm:$0xff] }
  0xa9   : > { %1377 = vmatprep.subr.mxu0 %v3508_v62  ;;  %1236 = vmatprep.subr.mxu1 %v994_v6  ;;  %v3539_v62 = vld [vmem:[%s7538_s5 + $0x470] sm:$0xff]  ;;  %v3538_v0 = vld [vmem:[%s7538_s5 + $0x468] sm:$0xff]  ;;  %v3536_v6 = vld [vmem:[%s7538_s5 + $0x458] sm:$0xff] }
  0xaa   : > { %1378 = vmatpush2.msra.mxu0 %v3507_v5  ;;  %1237 = vmatpush2.msra.mxu1 %v993_v8  ;;  %v3607_v5 = vld [vmem:[%s7538_s5 + $0x690] sm:$0xff] }
  0xab   : > { %1379 = vmatprep.subr.mxu0 %v3506_v7  ;;  %1238 = vmatprep.subr.mxu1 %v992_v10  ;;  %v3606_v7 = vld [vmem:[%s7538_s5 + $0x688] sm:$0xff]  ;;  %v3535_v8 = vld [vmem:[%s7538_s5 + $0x450] sm:$0xff] }
  0xac   : > { %1380 = vmatpush2.msra.mxu0 %v3505_v9  ;;  %1239 = vmatpush2.msra.mxu1 %v991_v4  ;;  %v3605_v9 = vld [vmem:[%s7538_s5 + $0x680] sm:$0xff]  ;;  %v3534_v10 = vld [vmem:[%s7538_s5 + $0x448] sm:$0xff]  ;;  %v3532_v4 = vld [vmem:[%s7538_s5 + $0x438] sm:$0xff] }
  0xad   : > { %1381 = vmatprep.subr.mxu0 %v3504_v13  ;;  %1240 = vmatprep.mubr.f32.mxu1 %v958_v15  ;;  %v3603_v13 = vld [vmem:[%s7538_s5 + $0x670] sm:$0xff] }
  0xae   : > { %1382 = vmatpush2.msra.mxu0 %v3503_v14  ;;  %1241 = vmatmul.mubr.f32.vlgmr.msra.gmra.mxu1 %v957_v17  ;;  %v3602_v14 = vld [vmem:[%s7538_s5 + $0x668] sm:$0xff]  ;;  %v3531_v15 = vld [vmem:[%s7538_s5 + $0x430] sm:$0xff] }
  0xaf   : > { %1383 = vmatprep.subr.mxu0 %v3502_v16  ;;  %1393 = vmatprep.mubr.f32.mxu0 %v1326_v19  ;;  %v3601_v16 = vld [vmem:[%s7538_s5 + $0x660] sm:$0xff]  ;;  %v3530_v17 = vld [vmem:[%s7538_s5 + $0x428] sm:$0xff] }
  0xb0   : > { %1384 = vmatpush2.msra.mxu0 %v3501_v18  ;;  %1695 = vmatprep.subr.mxu1 %v3556_v22  ;;  %v3600_v18 = vld [vmem:[%s7538_s5 + $0x658] sm:$0xff]  ;;  %v3529_v19 = vld [vmem:[%s7538_s5 + $0x420] sm:$0xff]  ;;  %v3598_v22 = vld [vmem:[%s7538_s5 + $0x648] sm:$0xff] }
  0xb1   : > { %1385 = vmatprep.subr.mxu0 %v3500_v20  ;;  %1696 = vmatpush1.msra.mxu1 %v3555_v25  ;;  %v3599_v20 = vld [vmem:[%s7538_s5 + $0x650] sm:$0xff]  ;;  %v3526_v25 = vld [vmem:[%s7538_s5 + $0x408] sm:$0xff] }
  0xb2   : > { %1386 = vmatpush2.msra.mxu0 %v3499_v21  ;;  %1697 = vmatprep.subr.mxu1 %v3554_v27  ;;  %v3528_v21 = vld [vmem:[%s7538_s5 + $0x418] sm:$0xff]  ;;  %v3525_v27 = vld [vmem:[%s7538_s5 + $0x400] sm:$0xff] }
  0xb3   : > { %1387 = vmatprep.subr.mxu0 %v3498_v26  ;;  %1698 = vmatpush1.msra.mxu1 %v3553_v29  ;;  %v3596_v26 = vld [vmem:[%s7538_s5 + $0x638] sm:$0xff] }
  0xb4   : > { %1388 = vmatpush2.msra.mxu0 %v3497_v28  ;;  %1699 = vmatprep.subr.mxu1 %v3552_v33  ;;  %v3595_v28 = vld [vmem:[%s7538_s5 + $0x630] sm:$0xff]  ;;  %v3588_v29 = vld [vmem:[%s7538_s5 + $0x5f8] sm:$0xff]  ;;  %v3586_v33 = vld [vmem:[%s7538_s5 + $0x5e8] sm:$0xff] }
  0xb5   : > { %1389 = vmatprep.subr.mxu0 %v3496_v30  ;;  %1700 = vmatpush1.msra.mxu1 %v3551_v35  ;;  %v3594_v30 = vld [vmem:[%s7538_s5 + $0x628] sm:$0xff]  ;;  %v3585_v35 = vld [vmem:[%s7538_s5 + $0x5e0] sm:$0xff] }
  0xb6   : > { %1390 = vmatpush2.msra.mxu0 %v3495_v34  ;;  %1701 = vmatprep.subr.mxu1 %v3550_v37  ;;  %v3592_v34 = vld [vmem:[%s7538_s5 + $0x618] sm:$0xff] }
  0xb7   : > { %1391 = vmatprep.subr.mxu0 %v3494_v36  ;;  %1702 = vmatpush1.msra.mxu1 %v3549_v39  ;;  %v3591_v36 = vld [vmem:[%s7538_s5 + $0x610] sm:$0xff]  ;;  %v3584_v37 = vld [vmem:[%s7538_s5 + $0x5d8] sm:$0xff] }
  0xb8   : > { %1392 = vmatpush2.msra.mxu0 %v3493_v38  ;;  %1703 = vmatprep.subr.mxu1 %v3548_v43  ;;  %v3590_v38 = vld [vmem:[%s7538_s5 + $0x608] sm:$0xff]  ;;  %v3583_v39 = vld [vmem:[%s7538_s5 + $0x5d0] sm:$0xff]  ;;  %v3581_v43 = vld [vmem:[%s7538_s5 + $0x5c0] sm:$0xff] }
  0xb9   : > { %1394 = vmatmul.mubr.f32.vlgmr.msra.gmra.mxu0 %v1323_v40  ;;  %1766 = vmatprep.subr.mxu0 %v3620_v41  ;;  %v3589_v40 = vld [vmem:[%s7538_s5 + $0x600] sm:$0xff]  ;;  %v3582_v41 = vld [vmem:[%s7538_s5 + $0x5c8] sm:$0xff] }
  0xba   : > { %1767 = vmatpush1.msra.mxu0 %v3619_v42  ;;  %1704 = vmatpush1.msra.mxu1 %v3547_v45  ;;  %v3652_v42 = vld [vmem:[%s7538_s5 + $0x7f8] sm:$0xff] }
  0xbb   : > { %1768 = vmatprep.subr.mxu0 %v3618_v44  ;;  %1705 = vmatprep.subr.mxu1 %v3546_v47  ;;  %v3651_v44 = vld [vmem:[%s7538_s5 + $0x7f0] sm:$0xff]  ;;  %v3580_v45 = vld [vmem:[%s7538_s5 + $0x5b8] sm:$0xff] }
  0xbc   : > { %1769 = vmatpush1.msra.mxu0 %v3617_v46  ;;  %1706 = vmatpush1.msra.mxu1 %v3545_v49  ;;  %v3650_v46 = vld [vmem:[%s7538_s5 + $0x7e8] sm:$0xff]  ;;  %v3579_v47 = vld [vmem:[%s7538_s5 + $0x5b0] sm:$0xff] }
  0xbd   : > { %1770 = vmatprep.subr.mxu0 %v3616_v48  ;;  %1707 = vmatprep.subr.mxu1 %v3544_v51  ;;  %v3649_v48 = vld [vmem:[%s7538_s5 + $0x7e0] sm:$0xff]  ;;  %v3578_v49 = vld [vmem:[%s7538_s5 + $0x5a8] sm:$0xff] }
  0xbe   : > { %1771 = vmatpush1.msra.mxu0 %v3615_v50  ;;  %1708 = vmatpush1.msra.mxu1 %v3543_v53  ;;  %v3648_v50 = vld [vmem:[%s7538_s5 + $0x7d8] sm:$0xff]  ;;  %v3577_v51 = vld [vmem:[%s7538_s5 + $0x5a0] sm:$0xff] }
  0xbf   : > { %1772 = vmatprep.subr.mxu0 %v3614_v52  ;;  %1709 = vmatprep.subr.mxu1 %v3542_v55  ;;  %v3647_v52 = vld [vmem:[%s7538_s5 + $0x7d0] sm:$0xff]  ;;  %v3576_v53 = vld [vmem:[%s7538_s5 + $0x598] sm:$0xff] }
  0xc0   : > { %1773 = vmatpush1.msra.mxu0 %v3613_v54  ;;  %1710 = vmatpush1.msra.mxu1 %v3541_v58  ;;  %v3646_v54 = vld [vmem:[%s7538_s5 + $0x7c8] sm:$0xff]  ;;  %v3575_v55 = vld [vmem:[%s7538_s5 + $0x590] sm:$0xff] }
  0xc1   : > { %1774 = vmatprep.subr.mxu0 %v3612_v57  ;;  %1711 = vmatprep.subr.mxu1 %v3540_v60  ;;  %v3645_v57 = vld [vmem:[%s7538_s5 + $0x7c0] sm:$0xff]  ;;  %v3574_v58 = vld [vmem:[%s7538_s5 + $0x588] sm:$0xff] }
  0xc2   : > { %1775 = vmatpush1.msra.mxu0 %v3611_v59  ;;  %1712 = vmatpush1.msra.mxu1 %v3539_v62  ;;  %v3644_v59 = vld [vmem:[%s7538_s5 + $0x7b8] sm:$0xff]  ;;  %v3573_v60 = vld [vmem:[%s7538_s5 + $0x580] sm:$0xff] }
  0xc3   : > { %1776 = vmatprep.subr.mxu0 %v3610_v61  ;;  %1713 = vmatprep.subr.mxu1 %v3538_v0  ;;  %v3643_v61 = vld [vmem:[%s7538_s5 + $0x7b0] sm:$0xff]  ;;  %v3572_v62 = vld [vmem:[%s7538_s5 + $0x578] sm:$0xff] }
  0xc4   : > { %1777 = vmatpush1.msra.mxu0 %v3609_v63  ;;  %1714 = vmatpush1.msra.mxu1 %v3537_v3  ;;  %v3642_v63 = vld [vmem:[%s7538_s5 + $0x7a8] sm:$0xff]  ;;  %v3571_v0 = vld [vmem:[%s7538_s5 + $0x570] sm:$0xff] }
  0xc5   : > { %1778 = vmatprep.subr.mxu0 %v3608_v2  ;;  %1715 = vmatprep.subr.mxu1 %v3536_v6  ;;  %v3641_v2 = vld [vmem:[%s7538_s5 + $0x7a0] sm:$0xff]  ;;  %v3570_v3 = vld [vmem:[%s7538_s5 + $0x568] sm:$0xff] }
  0xc6   : > { %1779 = vmatpush1.msra.mxu0 %v3607_v5  ;;  %1716 = vmatpush1.msra.mxu1 %v3535_v8  ;;  %v3640_v5 = vld [vmem:[%s7538_s5 + $0x798] sm:$0xff]  ;;  %v3569_v6 = vld [vmem:[%s7538_s5 + $0x560] sm:$0xff] }
  0xc7   : > { %1780 = vmatprep.subr.mxu0 %v3606_v7  ;;  %1717 = vmatprep.subr.mxu1 %v3534_v10  ;;  %v3639_v7 = vld [vmem:[%s7538_s5 + $0x790] sm:$0xff]  ;;  %v3568_v8 = vld [vmem:[%s7538_s5 + $0x558] sm:$0xff] }
  0xc8   : > { %1781 = vmatpush1.msra.mxu0 %v3605_v9  ;;  %1718 = vmatpush1.msra.mxu1 %v3533_v12  ;;  %v3638_v9 = vld [vmem:[%s7538_s5 + $0x788] sm:$0xff]  ;;  %v3567_v10 = vld [vmem:[%s7538_s5 + $0x550] sm:$0xff] }
  0xc9   : > { %1782 = vmatprep.subr.mxu0 %v3604_v11  ;;  %1719 = vmatprep.subr.mxu1 %v3532_v4  ;;  %v3637_v11 = vld [vmem:[%s7538_s5 + $0x780] sm:$0xff]  ;;  %v3566_v12 = vld [vmem:[%s7538_s5 + $0x548] sm:$0xff] }
  0xca   : > { %1783 = vmatpush1.msra.mxu0 %v3603_v13  ;;  %1720 = vmatpush1.msra.mxu1 %v3531_v15  ;;  %v3636_v13 = vld [vmem:[%s7538_s5 + $0x778] sm:$0xff]  ;;  %v3565_v4 = vld [vmem:[%s7538_s5 + $0x540] sm:$0xff] }
  0xcb   : > { %1784 = vmatprep.subr.mxu0 %v3602_v14  ;;  %1721 = vmatprep.subr.mxu1 %v3530_v17  ;;  %v3635_v14 = vld [vmem:[%s7538_s5 + $0x770] sm:$0xff]  ;;  %v3564_v15 = vld [vmem:[%s7538_s5 + $0x538] sm:$0xff] }
  0xcc   : > { %1785 = vmatpush1.msra.mxu0 %v3601_v16  ;;  %1722 = vmatpush1.msra.mxu1 %v3529_v19  ;;  %v3634_v16 = vld [vmem:[%s7538_s5 + $0x768] sm:$0xff]  ;;  %v3563_v17 = vld [vmem:[%s7538_s5 + $0x530] sm:$0xff] }
  0xcd   : > { %1786 = vmatprep.subr.mxu0 %v3600_v18  ;;  %1723 = vmatprep.subr.mxu1 %v3528_v21  ;;  %v3633_v18 = vld [vmem:[%s7538_s5 + $0x760] sm:$0xff]  ;;  %v3562_v19 = vld [vmem:[%s7538_s5 + $0x528] sm:$0xff] }
  0xce   : > { %1787 = vmatpush1.msra.mxu0 %v3599_v20  ;;  %1724 = vmatpush1.msra.mxu1 %v3527_v23  ;;  %v3632_v20 = vld [vmem:[%s7538_s5 + $0x758] sm:$0xff]  ;;  %v3561_v21 = vld [vmem:[%s7538_s5 + $0x520] sm:$0xff] }
  0xcf   : > { %1788 = vmatprep.subr.mxu0 %v3598_v22  ;;  %1725 = vmatprep.subr.mxu1 %v3526_v25  ;;  %v3631_v22 = vld [vmem:[%s7538_s5 + $0x750] sm:$0xff]  ;;  %v3560_v23 = vld [vmem:[%s7538_s5 + $0x518] sm:$0xff] }
  0xd0   : > { %1789 = vmatpush1.msra.mxu0 %v3597_v24  ;;  %1726 = vmatpush1.msra.mxu1 %v3525_v27  ;;  %v3630_v24 = vld [vmem:[%s7538_s5 + $0x748] sm:$0xff]  ;;  %v3559_v25 = vld [vmem:[%s7538_s5 + $0x510] sm:$0xff] }
  0xd1   : > { %1790 = vmatprep.subr.mxu0 %v3596_v26  ;;  %1727 = vmatprep.subr.mxu1 %v3588_v29  ;;  %v3629_v26 = vld [vmem:[%s7538_s5 + $0x740] sm:$0xff]  ;;  %v3558_v27 = vld [vmem:[%s7538_s5 + $0x508] sm:$0xff] }
  0xd2   : > { %1791 = vmatpush1.msra.mxu0 %v3595_v28  ;;  %1728 = vmatpush2.msra.mxu1 %v3587_v31  ;;  %v3628_v28 = vld [vmem:[%s7538_s5 + $0x738] sm:$0xff]  ;;  %v3557_v29 = vld [vmem:[%s7538_s5 + $0x500] sm:$0xff] }
  0xd3   : > { %1792 = vmatprep.subr.mxu0 %v3594_v30  ;;  %1729 = vmatprep.subr.mxu1 %v3586_v33  ;;  %v3627_v30 = vld [vmem:[%s7538_s5 + $0x730] sm:$0xff]  ;;  %v1437_v31 = vld [vmem:[%s7538_s5 + $0xf8] sm:$0xff]  ;;  %v3625_v33 = vld [vmem:[%s7538_s5 + $0x720] sm:$0xff] }
  0xd4   : > { %1793 = vmatpush1.msra.mxu0 %v3593_v32  ;;  %1730 = vmatpush2.msra.mxu1 %v3585_v35  ;;  %v3626_v32 = vld [vmem:[%s7538_s5 + $0x728] sm:$0xff]  ;;  %v3623_v35 = vld [vmem:[%s7538_s5 + $0x710] sm:$0xff] }
  0xd5   : > { %1794 = vmatprep.subr.mxu0 %v3592_v34  ;;  %1731 = vmatprep.subr.mxu1 %v3584_v37  ;;  %v3624_v34 = vld [vmem:[%s7538_s5 + $0x718] sm:$0xff]  ;;  %v3621_v37 = vld [vmem:[%s7538_s5 + $0x700] sm:$0xff] }
  0xd6   : > { %1795 = vmatpush1.msra.mxu0 %v3591_v36  ;;  %1732 = vmatpush2.msra.mxu1 %v3583_v39  ;;  %v3622_v36 = vld [vmem:[%s7538_s5 + $0x708] sm:$0xff]  ;;  %v472_v39 = vshrl.u32 %v471_v1, 7 }
  0xd7   : > { %1796 = vmatprep.subr.mxu0 %v3590_v38  ;;  %1733 = vmatprep.subr.mxu1 %v3582_v41  ;;  %v1501_v38 = vld [vmem:[%s7538_s5 + $0x2f8] sm:$0xff] }
  0xd8   : > { %1797 = vmatpush1.msra.mxu0 %v3589_v40  ;;  %1734 = vmatpush2.msra.mxu1 %v3581_v43  ;;  %v5542_v40 = vsub.s32 0, %v472_v39  ;;  %v5544_v41 = vsub.s32 1, %v472_v39 }
  0xd9   : > { %1798 = vmatprep.subr.mxu0 %v3652_v42  ;;  %1735 = vmatprep.subr.mxu1 %v3580_v45  ;;  %v405_v42 = vld [vmem:[%s7536_s3] sm:$0xf] }
  0xda   : > { %1799 = vmatpush2.msra.mxu0 %v3651_v44  ;;  %1736 = vmatpush2.msra.mxu1 %v3579_v47  ;;  %v481_v44 = vsub.s32 2, %v472_v39  ;;  %v474_v45 = vrot.slane %v405_v42, %v5542_v40 }
  0xdb   : > { %1800 = vmatprep.subr.mxu0 %v3650_v46  ;;  %1737 = vmatprep.subr.mxu1 %v3578_v49  ;;  %v4060_v46 = vmov 1966171168   ;;  %v485_v49 = vsub.s32 3, %v472_v39 }
  0xdc   : > { %1801 = vmatpush2.msra.mxu0 %v3649_v48  ;;  %1738 = vmatpush2.msra.mxu1 %v3577_v51  ;;  %v856_v47 = vunpack.c.l.s4 %v4060_v46  ;;  %v478_v48 = vrot.slane %v405_v42, %v5544_v41  ;;  %v482_v51 = vrot.slane %v405_v42, %v481_v44 }
  0xdd   : > { %1802 = vmatprep.subr.mxu0 %v3648_v50  ;;  %1739 = vmatprep.subr.mxu1 %v3576_v53 }
  0xde   : > { %1803 = vmatpush2.msra.mxu0 %v3647_v52  ;;  %1740 = vmatpush2.msra.mxu1 %v3575_v55  ;;  %v857_v52 = vunpack.c.0.s8 %v856_v47  ;;  %v1500_v47 = vld [vmem:[%s7538_s5 + $0x2f0] sm:$0xff] }
  0xdf   : > { %1804 = vmatprep.subr.mxu0 %v3646_v54  ;;  %1741 = vmatprep.subr.mxu1 %v3574_v58  ;;  %v486_v54 = vrot.slane %v405_v42, %v485_v49 }
  0xe0   : > { %1805 = vmatpush2.msra.mxu0 %v3645_v57  ;;  %1742 = vmatpush2.msra.mxu1 %v3573_v60 }
  0xe1   : > { %1806 = vmatprep.subr.mxu0 %v3644_v59  ;;  %1743 = vmatprep.subr.mxu1 %v3572_v62  ;;  %v860_v59 = vsub.s32 %v857_v52, %v472_v39  ;;  %v1498_v52 = vld [vmem:[%s7538_s5 + $0x2e0] sm:$0xff] }
  0xe2   : > { %1807 = vmatpush2.msra.mxu0 %v3643_v61  ;;  %1744 = vmatpush2.msra.mxu1 %v3571_v0 }
  0xe3   : > { %1808 = vmatprep.subr.mxu0 %v3642_v63  ;;  %1745 = vmatprep.subr.mxu1 %v3570_v3 }
  0xe4   : > { %1809 = vmatpush2.msra.mxu0 %v3641_v2  ;;  %1746 = vmatpush2.msra.mxu1 %v3569_v6 }
  0xe5   : > { %1810 = vmatprep.subr.mxu0 %v3640_v5  ;;  %1747 = vmatprep.subr.mxu1 %v3568_v8 }
  0xe6   : > { %1811 = vmatpush2.msra.mxu0 %v3639_v7  ;;  %1748 = vmatpush2.msra.mxu1 %v3567_v10 }
  0xe7   : > { %1812 = vmatprep.subr.mxu0 %v3638_v9  ;;  %1749 = vmatprep.subr.mxu1 %v3566_v12 }
  0xe8   : > { %1813 = vmatpush2.msra.mxu0 %v3637_v11  ;;  %1750 = vmatpush2.msra.mxu1 %v3565_v4 }
  0xe9   : > { %1814 = vmatprep.subr.mxu0 %v3636_v13  ;;  %1751 = vmatprep.subr.mxu1 %v3564_v15 }
  0xea   : > { %1815 = vmatpush2.msra.mxu0 %v3635_v14  ;;  %1752 = vmatpush2.msra.mxu1 %v3563_v17 }
  0xeb   : > { %1816 = vmatprep.subr.mxu0 %v3634_v16  ;;  %1753 = vmatprep.subr.mxu1 %v3562_v19 }
  0xec   : > { %1817 = vmatpush2.msra.mxu0 %v3633_v18  ;;  %1754 = vmatpush2.msra.mxu1 %v3561_v21  ;;  %v557_v43 = vpop.f32.mrf.mxu1 }
  0xed   : > { %1818 = vmatprep.subr.mxu0 %v3632_v20  ;;  %1755 = vmatprep.subr.mxu1 %v3560_v23  ;;  %v558_v1 = vadd.f32 %v557_v43, %v474_v45 }
  0xee   : > { %1819 = vmatpush2.msra.mxu0 %v3631_v22  ;;  %1756 = vmatpush2.msra.mxu1 %v3559_v25  ;;  %v559_v50 = vpop.f32.mrf.mxu1 }
  0xef   : > { %1820 = vmatprep.subr.mxu0 %v3630_v24  ;;  %1757 = vmatprep.subr.mxu1 %v3558_v27  ;;  %v560_v53 = vadd.f32 %v559_v50, %v478_v48  ;;  %v1499_v50 = vld [vmem:[%s7538_s5 + $0x2e8] sm:$0xff] }
  0xf0   : > { %1821 = vmatpush2.msra.mxu0 %v3629_v26  ;;  %1758 = vmatpush2.msra.mxu1 %v3557_v29 }
  0xf1   : > { %1822 = vmatprep.subr.mxu0 %v3628_v28  ;;  %1837 = vmatprep.subr.mxu1 %v1437_v31  ;;  %v853_v60 = vcombine.low %v558_v1, %v560_v53  ;;  %v1433_v53 = vld [vmem:[%s7538_s5 + $0xd8] sm:$0xff] }
  0xf2   : > { %1823 = vmatpush2.msra.mxu0 %v3627_v30 }
  0xf3   : > { %1824 = vmatprep.subr.mxu0 %v3626_v32  ;;  %v861_v63 = vrot.slane %v853_v60, %v860_v59  ;;  %v1495_v60 = vld [vmem:[%s7538_s5 + $0x2c8] sm:$0xff] }
  0xf4   : > { %1825 = vmatpush2.msra.mxu0 %v3625_v33  ;;  %v764_v9 = vpop.f32.mrf.mxu0 }
  0xf5   : > { %1826 = vmatprep.subr.mxu0 %v3624_v34  ;;  %v765_v11 = vadd.f32 %v764_v9, %v474_v45  ;;  %v1436_v45 = vld [vmem:[%s7538_s5 + $0xf0] sm:$0xff]  ;;  %v1425_v9 = vld [vmem:[%s7538_s5 + $0x98] sm:$0xff] }
  0xf6   : > { %1827 = vmatpush2.msra.mxu0 %v3623_v35  ;;  %v766_v10 = vpop.f32.mrf.mxu0 }
  0xf7   : > { %1828 = vmatprep.subr.mxu0 %v3622_v36  ;;  %v767_v12 = vadd.f32 %v766_v10, %v478_v48  ;;  %v1435_v48 = vld [vmem:[%s7538_s5 + $0xe8] sm:$0xff]  ;;  %v1489_v10 = vld [vmem:[%s7538_s5 + $0x298] sm:$0xff] }
  0xf8   : > { %1829 = vmatpush2.msra.mxu0 %v3621_v37 }
  0xf9   : > { %1908 = vmatprep.subr.mxu0 %v1501_v38  ;;  %v885_v14 = vcombine.low %v765_v11, %v767_v12  ;;  %v1424_v11 = vld [vmem:[%s7538_s5 + $0x90] sm:$0xff] }
  0xfa   : > { %v1488_v12 = vld [vmem:[%s7538_s5 + $0x290] sm:$0xff] }
  0xfb   : > { %v893_v18 = vrot.slane %v885_v14, %v860_v59  ;;  %v1422_v14 = vld [vmem:[%s7538_s5 + $0x80] sm:$0xff] }
 0x10c   : > { %v628_v55 = vpop.f32.mrf.mxu1 }
 0x10d   : > { %v629_v57 = vadd.f32 %v628_v55, %v482_v51  ;;  %v1497_v55 = vld [vmem:[%s7538_s5 + $0x2d8] sm:$0xff] }
 0x10e   : > { %v630_v58 = vpop.f32.mrf.mxu1 }
 0x10f   : > { %v631_v61 = vadd.f32 %v630_v58, %v486_v54  ;;  %v1496_v58 = vld [vmem:[%s7538_s5 + $0x2d0] sm:$0xff] }
 0x111   : > { %v854_v62 = vcombine.low %v629_v57, %v631_v61  ;;  %v1432_v57 = vld [vmem:[%s7538_s5 + $0xd0] sm:$0xff]  ;;  %v1430_v61 = vld [vmem:[%s7538_s5 + $0xc0] sm:$0xff] }
 0x113   : > { %v868_v0 = vrot.slane %v854_v62, %v860_v59  ;;  %v1494_v62 = vld [vmem:[%s7538_s5 + $0x2c0] sm:$0xff] }
 0x115   : > { %v869_v2 = vcombine.low %v861_v63, %v868_v0  ;;  %v913_v3 = vcombine.high %v861_v63, %v868_v0  ;;  %v1429_v63 = vld [vmem:[%s7538_s5 + $0xb8] sm:$0xff] }
 0x116   : > { %v1493_v0 = vld [vmem:[%s7538_s5 + $0x2b8] sm:$0xff] }
 0x117   : > { %v876_v5 = vrot.slane %v869_v2, %v860_v59  ;;  %v920_v6 = vrot.slane %v913_v3, %v860_v59  ;;  %v1428_v2 = vld [vmem:[%s7538_s5 + $0xb0] sm:$0xff] }
 0x118   : > { %v1492_v3 = vld [vmem:[%s7538_s5 + $0x2b0] sm:$0xff] }
 0x119   : > { %879 = vst.msk [vmem:[#allocation2 + $0x1] ss:$8 sm:$0xf] %vm4723_vm1, %v876_v5  ;;  %923 = vst.msk [vmem:[#allocation2 + $0x3] ss:$8 sm:$0xf] %vm4723_vm1, %v920_v6  ;;  %v937_v7 = vcombine.high %v876_v5, %v876_v5  ;;  %v947_v8 = vcombine.high %v920_v6, %v920_v6 }
 0x11a   : > { %v1427_v5 = vld [vmem:[%s7538_s5 + $0xa8] sm:$0xff] }
 0x11b   : > { %940 = vst.msk [vmem:[#allocation2 + $0x5] ss:$8 sm:$0xf] %vm4723_vm1, %v937_v7  ;;  %950 = vst.msk [vmem:[#allocation2 + $0x7] ss:$8 sm:$0xf] %vm4723_vm1, %v947_v8 }
 0x11c   : > { %v1491_v6 = vld [vmem:[%s7538_s5 + $0x2a8] sm:$0xff]  ;;  %v1426_v7 = vld [vmem:[%s7538_s5 + $0xa0] sm:$0xff] }
 0x11d   : > { %v1490_v8 = vld [vmem:[%s7538_s5 + $0x2a0] sm:$0xff] }
 0x12c   : > { %v835_v13 = vpop.f32.mrf.mxu1 }
 0x12d   : > { %v836_v15 = vadd.f32 %v835_v13, %v482_v51  ;;  %v1434_v51 = vld [vmem:[%s7538_s5 + $0xe0] sm:$0xff]  ;;  %v1423_v13 = vld [vmem:[%s7538_s5 + $0x88] sm:$0xff] }
 0x12e   : > { %v837_v4 = vpop.f32.mrf.mxu1 }
 0x12f   : > { %v838_v16 = vadd.f32 %v837_v4, %v486_v54  ;;  %v1487_v4 = vld [vmem:[%s7538_s5 + $0x288] sm:$0xff] }
 0x131   : > { %v886_v17 = vcombine.low %v836_v15, %v838_v16  ;;  %v1486_v15 = vld [vmem:[%s7538_s5 + $0x280] sm:$0xff]  ;;  %v1421_v16 = vld [vmem:[%s7538_s5 + $0x78] sm:$0xff] }
 0x133   : > { %v900_v19 = vrot.slane %v886_v17, %v860_v59  ;;  %v1485_v17 = vld [vmem:[%s7538_s5 + $0x278] sm:$0xff] }
 0x135   : > { %v901_v20 = vcombine.low %v893_v18, %v900_v19  ;;  %v925_v21 = vcombine.high %v893_v18, %v900_v19  ;;  %v1420_v18 = vld [vmem:[%s7538_s5 + $0x70] sm:$0xff] }
 0x136   : > { %v1484_v19 = vld [vmem:[%s7538_s5 + $0x270] sm:$0xff] }
 0x137   : > { %v908_v22 = vrot.slane %v901_v20, %v860_v59  ;;  %v932_v23 = vrot.slane %v925_v21, %v860_v59  ;;  %v1431_v59 = vld [vmem:[%s7538_s5 + $0xc8] sm:$0xff] }
 0x138   : > { %v1419_v20 = vld [vmem:[%s7538_s5 + $0x68] sm:$0xff] }
 0x139   : > { %911 = vst.msk [vmem:[#allocation2 + $0x2] ss:$8 sm:$0xf] %vm4723_vm1, %v908_v22  ;;  %935 = vst.msk [vmem:[#allocation2 + $0x4] ss:$8 sm:$0xf] %vm4723_vm1, %v932_v23  ;;  %v942_v24 = vcombine.high %v908_v22, %v908_v22  ;;  %v952_v25 = vcombine.high %v932_v23, %v932_v23 }
 0x13a   : > { %v1483_v21 = vld [vmem:[%s7538_s5 + $0x268] sm:$0xff]  ;;  %v1418_v22 = vld [vmem:[%s7538_s5 + $0x60] sm:$0xff] }
 0x13b   : > { %945 = vst.msk [vmem:[#allocation2 + $0x6] ss:$8 sm:$0xf] %vm4723_vm1, %v942_v24  ;;  %955 = vst.msk [vmem:[#allocation2 + $0x20] ss:$8 sm:$0xf] %vm4723_vm1, %v952_v25 }
 0x13c   : > { %v1482_v23 = vld [vmem:[%s7538_s5 + $0x260] sm:$0xff]  ;;  %v1417_v24 = vld [vmem:[%s7538_s5 + $0x58] sm:$0xff] }
 0x13d   : > { %v1481_v25 = vld [vmem:[%s7538_s5 + $0x258] sm:$0xff] }
 0x142   : > { %v1535_v26 = vld [vmem:[#allocation2 + $0x8] sm:$0xfe]  ;;  %v1539_v27 = vld [vmem:[#allocation2 + $0x28] sm:$0x1]  ;;  %v1537_v28 = vld [vmem:[#allocation2 + $0x18] sm:$0xfe] }
 0x143   : > { %v1682_v29 = vrot.slane %v1535_v26, 1  ;;  %v1683_v30 = vrot.slane %v1539_v27, 1  ;;  %v1541_v31 = vld [vmem:[#allocation2 + $0x38] sm:$0x1]  ;;  %v1688_v32 = vrot.slane %v1537_v28, 1  ;;  %v1403_v1 = vld [vmem:[#allocation2 + $0x8] sm:$0xff] }
 0x144   : > { %v1689_v33 = vrot.slane %v1541_v31, 1  ;;  %v1534_v34 = vld [vmem:[#allocation2] sm:$0xfe]  ;;  %v1538_v35 = vld [vmem:[#allocation2 + $0x20] sm:$0x1]  ;;  %v1405_v54 = vld [vmem:[#allocation2 + $0x18] sm:$0xff] }
 0x145   : > { %v1684_v36 = vsel %vm1096_vm0, %v1682_v29, %v1683_v30  ;;  %v1679_v37 = vrot.slane %v1534_v34, 1  ;;  %v1680_v38 = vrot.slane %v1538_v35, 1  ;;  %v1536_v39 = vld [vmem:[#allocation2 + $0x10] sm:$0xfe]  ;;  %v1540_v42 = vld [vmem:[#allocation2 + $0x30] sm:$0x1] }
 0x146   : > { %1759 = vmatprep.mubr.f32.mxu1 %v1684_v36  ;;  %v1690_v56 = vsel %vm1096_vm0, %v1688_v32, %v1689_v33  ;;  %v1685_v43 = vrot.slane %v1536_v39, 1  ;;  %v1686_v44 = vrot.slane %v1540_v42, 1  ;;  %v1416_v26 = vld [vmem:[%s7538_s5 + $0x50] sm:$0xff]  ;;  %v1415_v28 = vld [vmem:[%s7538_s5 + $0x48] sm:$0xff]  ;;  %v1414_v30 = vld [vmem:[%s7538_s5 + $0x40] sm:$0xff] }
 0x147   : > { %1830 = vmatprep.mubr.f32.mxu0 %v1690_v56  ;;  %v1681_v46 = vsel %vm1096_vm0, %v1679_v37, %v1680_v38  ;;  %v1480_v27 = vld [vmem:[%s7538_s5 + $0x250] sm:$0xff]  ;;  %v1479_v29 = vld [vmem:[%s7538_s5 + $0x248] sm:$0xff]  ;;  %v1478_v31 = vld [vmem:[%s7538_s5 + $0x240] sm:$0xff] }
 0x148   : > { %1760 = vmatmul.mubr.f32.vlgmr.msra.gmra.mxu1 %v1681_v46  ;;  %v1687_v49 = vsel %vm1096_vm0, %v1685_v43, %v1686_v44  ;;  %v1413_v32 = vld [vmem:[%s7538_s5 + $0x38] sm:$0xff]  ;;  %v1412_v34 = vld [vmem:[%s7538_s5 + $0x30] sm:$0xff]  ;;  %v1411_v36 = vld [vmem:[%s7538_s5 + $0x28] sm:$0xff] }
 0x149   : > { %1831 = vmatmul.mubr.f32.vlgmr.msra.gmra.mxu0 %v1687_v49  ;;  %1838 = vmatpush1.msra.mxu1 %v1436_v45  ;;  %v1477_v33 = vld [vmem:[%s7538_s5 + $0x238] sm:$0xff]  ;;  %v1476_v35 = vld [vmem:[%s7538_s5 + $0x230] sm:$0xff]  ;;  %v1475_v37 = vld [vmem:[%s7538_s5 + $0x228] sm:$0xff] }
 0x14a   : > { %1909 = vmatpush1.msra.mxu0 %v1500_v47  ;;  %1839 = vmatprep.subr.mxu1 %v1435_v48  ;;  %v1410_v38 = vld [vmem:[%s7538_s5 + $0x20] sm:$0xff]  ;;  %v1409_v42 = vld [vmem:[%s7538_s5 + $0x18] sm:$0xff]  ;;  %v1408_v43 = vld [vmem:[%s7538_s5 + $0x10] sm:$0xff] }
 0x14b   : > { %1901 = vmatprep.mubr.f32.mxu1 %v1403_v1  ;;  %1910 = vmatprep.subr.mxu0 %v1499_v50  ;;  %v1474_v39 = vld [vmem:[%s7538_s5 + $0x220] sm:$0xff]  ;;  %v1473_v56 = vld [vmem:[%s7538_s5 + $0x218] sm:$0xff]  ;;  %v1472_v44 = vld [vmem:[%s7538_s5 + $0x210] sm:$0xff] }
 0x14c   : > { %1972 = vmatprep.mubr.f32.mxu0 %v1405_v54  ;;  %1840 = vmatpush1.msra.mxu1 %v1434_v51  ;;  %v1407_v45 = vld [vmem:[%s7538_s5 + $0x8] sm:$0xff]  ;;  %v1406_v47 = vld [vmem:[%s7538_s5] sm:$0xff]  ;;  %v1469_v49 = vld [vmem:[%s7538_s5 + $0x1f8] sm:$0xff] }
 0x14d   : > { %1911 = vmatpush1.msra.mxu0 %v1498_v52  ;;  %1841 = vmatprep.subr.mxu1 %v1433_v53  ;;  %v1471_v46 = vld [vmem:[%s7538_s5 + $0x208] sm:$0xff]  ;;  %v1470_v48 = vld [vmem:[%s7538_s5 + $0x200] sm:$0xff]  ;;  %v1533_v50 = vld [vmem:[%s7538_s5 + $0x3f8] sm:$0xff] }
 0x14e   : > { %1912 = vmatprep.subr.mxu0 %v1497_v55  ;;  %1842 = vmatpush1.msra.mxu1 %v1432_v57  ;;  %v1468_v51 = vld [vmem:[%s7538_s5 + $0x1f0] sm:$0xff]  ;;  %v1467_v52 = vld [vmem:[%s7538_s5 + $0x1e8] sm:$0xff]  ;;  %v1466_v54 = vld [vmem:[%s7538_s5 + $0x1e0] sm:$0xff] }
 0x14f   : > { %1913 = vmatpush1.msra.mxu0 %v1496_v58  ;;  %1843 = vmatprep.subr.mxu1 %v1431_v59  ;;  %v1532_v1 = vld [vmem:[%s7538_s5 + $0x3f0] sm:$0xff]  ;;  %v1531_v53 = vld [vmem:[%s7538_s5 + $0x3e8] sm:$0xff]  ;;  %v1530_v55 = vld [vmem:[%s7538_s5 + $0x3e0] sm:$0xff] }
 0x150   : > { %1914 = vmatprep.subr.mxu0 %v1495_v60  ;;  %1844 = vmatpush1.msra.mxu1 %v1430_v61  ;;  %v1465_v57 = vld [vmem:[%s7538_s5 + $0x1d8] sm:$0xff]  ;;  %v1464_v59 = vld [vmem:[%s7538_s5 + $0x1d0] sm:$0xff]  ;;  %v1463_v61 = vld [vmem:[%s7538_s5 + $0x1c8] sm:$0xff] }
 0x151   : > { %1915 = vmatpush1.msra.mxu0 %v1494_v62  ;;  %1845 = vmatprep.subr.mxu1 %v1429_v63  ;;  %v1529_v58 = vld [vmem:[%s7538_s5 + $0x3d8] sm:$0xff]  ;;  %v1528_v60 = vld [vmem:[%s7538_s5 + $0x3d0] sm:$0xff]  ;;  %v1527_v62 = vld [vmem:[%s7538_s5 + $0x3c8] sm:$0xff] }
 0x152   : > { %1916 = vmatprep.subr.mxu0 %v1493_v0  ;;  %1846 = vmatpush1.msra.mxu1 %v1428_v2  ;;  %v1462_v63 = vld [vmem:[%s7538_s5 + $0x1c0] sm:$0xff]  ;;  %v1461_v2 = vld [vmem:[%s7538_s5 + $0x1b8] sm:$0xff] }
 0x153   : > { %1917 = vmatpush1.msra.mxu0 %v1492_v3  ;;  %1847 = vmatprep.subr.mxu1 %v1427_v5  ;;  %v1526_v0 = vld [vmem:[%s7538_s5 + $0x3c0] sm:$0xff]  ;;  %v1525_v3 = vld [vmem:[%s7538_s5 + $0x3b8] sm:$0xff]  ;;  %v1460_v5 = vld [vmem:[%s7538_s5 + $0x1b0] sm:$0xff] }
 0x154   : > { %1918 = vmatprep.subr.mxu0 %v1491_v6  ;;  %1848 = vmatpush1.msra.mxu1 %v1426_v7  ;;  %v1524_v6 = vld [vmem:[%s7538_s5 + $0x3b0] sm:$0xff]  ;;  %v1459_v7 = vld [vmem:[%s7538_s5 + $0x1a8] sm:$0xff] }
 0x155   : > { %1919 = vmatpush1.msra.mxu0 %v1490_v8  ;;  %1849 = vmatprep.subr.mxu1 %v1425_v9  ;;  %v1523_v8 = vld [vmem:[%s7538_s5 + $0x3a8] sm:$0xff]  ;;  %v1458_v9 = vld [vmem:[%s7538_s5 + $0x1a0] sm:$0xff] }
 0x156   : > { %1920 = vmatprep.subr.mxu0 %v1489_v10  ;;  %1850 = vmatpush1.msra.mxu1 %v1424_v11  ;;  %v1522_v10 = vld [vmem:[%s7538_s5 + $0x3a0] sm:$0xff]  ;;  %v1457_v11 = vld [vmem:[%s7538_s5 + $0x198] sm:$0xff] }
 0x157   : > { %1921 = vmatpush1.msra.mxu0 %v1488_v12  ;;  %1851 = vmatprep.subr.mxu1 %v1423_v13  ;;  %v1521_v12 = vld [vmem:[%s7538_s5 + $0x398] sm:$0xff]  ;;  %v1456_v13 = vld [vmem:[%s7538_s5 + $0x190] sm:$0xff] }
 0x158   : > { %1922 = vmatprep.subr.mxu0 %v1487_v4  ;;  %1852 = vmatpush1.msra.mxu1 %v1422_v14  ;;  %v1520_v4 = vld [vmem:[%s7538_s5 + $0x390] sm:$0xff]  ;;  %v1455_v14 = vld [vmem:[%s7538_s5 + $0x188] sm:$0xff] }
 0x159   : > { %1923 = vmatpush1.msra.mxu0 %v1486_v15  ;;  %1853 = vmatprep.subr.mxu1 %v1421_v16  ;;  %v1519_v15 = vld [vmem:[%s7538_s5 + $0x388] sm:$0xff]  ;;  %v1454_v16 = vld [vmem:[%s7538_s5 + $0x180] sm:$0xff] }
 0x15a   : > { %1924 = vmatprep.subr.mxu0 %v1485_v17  ;;  %1854 = vmatpush1.msra.mxu1 %v1420_v18  ;;  %v1518_v17 = vld [vmem:[%s7538_s5 + $0x380] sm:$0xff]  ;;  %v1453_v18 = vld [vmem:[%s7538_s5 + $0x178] sm:$0xff] }
 0x15b   : > { %1925 = vmatpush1.msra.mxu0 %v1484_v19  ;;  %1855 = vmatprep.subr.mxu1 %v1419_v20  ;;  %v1517_v19 = vld [vmem:[%s7538_s5 + $0x378] sm:$0xff]  ;;  %v1452_v20 = vld [vmem:[%s7538_s5 + $0x170] sm:$0xff] }
 0x15c   : > { %1926 = vmatprep.subr.mxu0 %v1483_v21  ;;  %1856 = vmatpush1.msra.mxu1 %v1418_v22  ;;  %v1516_v21 = vld [vmem:[%s7538_s5 + $0x370] sm:$0xff]  ;;  %v1451_v22 = vld [vmem:[%s7538_s5 + $0x168] sm:$0xff] }
 0x15d   : > { %1927 = vmatpush1.msra.mxu0 %v1482_v23  ;;  %1857 = vmatprep.subr.mxu1 %v1417_v24  ;;  %v1515_v23 = vld [vmem:[%s7538_s5 + $0x368] sm:$0xff]  ;;  %v1450_v24 = vld [vmem:[%s7538_s5 + $0x160] sm:$0xff] }
 0x15e   : > { %1928 = vmatprep.subr.mxu0 %v1481_v25  ;;  %1858 = vmatpush1.msra.mxu1 %v1416_v26  ;;  %v1514_v25 = vld [vmem:[%s7538_s5 + $0x360] sm:$0xff]  ;;  %v1449_v26 = vld [vmem:[%s7538_s5 + $0x158] sm:$0xff] }
 0x15f   : > { %1929 = vmatpush1.msra.mxu0 %v1480_v27  ;;  %1859 = vmatprep.subr.mxu1 %v1415_v28  ;;  %v1513_v27 = vld [vmem:[%s7538_s5 + $0x358] sm:$0xff]  ;;  %v1448_v28 = vld [vmem:[%s7538_s5 + $0x150] sm:$0xff] }
 0x160   : > { %1930 = vmatprep.subr.mxu0 %v1479_v29  ;;  %1860 = vmatpush1.msra.mxu1 %v1414_v30  ;;  %v1512_v29 = vld [vmem:[%s7538_s5 + $0x350] sm:$0xff]  ;;  %v1447_v30 = vld [vmem:[%s7538_s5 + $0x148] sm:$0xff] }
 0x161   : > { %1931 = vmatpush1.msra.mxu0 %v1478_v31  ;;  %1861 = vmatprep.subr.mxu1 %v1413_v32  ;;  %v1511_v31 = vld [vmem:[%s7538_s5 + $0x348] sm:$0xff]  ;;  %v1446_v32 = vld [vmem:[%s7538_s5 + $0x140] sm:$0xff] }
 0x162   : > { %1932 = vmatprep.subr.mxu0 %v1477_v33  ;;  %1862 = vmatpush1.msra.mxu1 %v1412_v34  ;;  %v1510_v33 = vld [vmem:[%s7538_s5 + $0x340] sm:$0xff]  ;;  %v1445_v34 = vld [vmem:[%s7538_s5 + $0x138] sm:$0xff] }
 0x163   : > { %1933 = vmatpush1.msra.mxu0 %v1476_v35  ;;  %1863 = vmatprep.subr.mxu1 %v1411_v36  ;;  %v1509_v35 = vld [vmem:[%s7538_s5 + $0x338] sm:$0xff]  ;;  %v1444_v36 = vld [vmem:[%s7538_s5 + $0x130] sm:$0xff] }
 0x164   : > { %1934 = vmatprep.subr.mxu0 %v1475_v37  ;;  %1864 = vmatpush1.msra.mxu1 %v1410_v38  ;;  %v1508_v37 = vld [vmem:[%s7538_s5 + $0x330] sm:$0xff]  ;;  %v1443_v38 = vld [vmem:[%s7538_s5 + $0x128] sm:$0xff] }
 0x165   : > { %1935 = vmatpush1.msra.mxu0 %v1474_v39  ;;  %1865 = vmatprep.subr.mxu1 %v1409_v42  ;;  %v1507_v39 = vld [vmem:[%s7538_s5 + $0x328] sm:$0xff]  ;;  %v1442_v42 = vld [vmem:[%s7538_s5 + $0x120] sm:$0xff] }
 0x166   : > { %1936 = vmatprep.subr.mxu0 %v1473_v56  ;;  %1866 = vmatpush1.msra.mxu1 %v1408_v43  ;;  %v1506_v56 = vld [vmem:[%s7538_s5 + $0x320] sm:$0xff]  ;;  %v1441_v43 = vld [vmem:[%s7538_s5 + $0x118] sm:$0xff] }
 0x167   : > { %1937 = vmatpush1.msra.mxu0 %v1472_v44  ;;  %1867 = vmatprep.subr.mxu1 %v1407_v45  ;;  %v1505_v44 = vld [vmem:[%s7538_s5 + $0x318] sm:$0xff]  ;;  %v1440_v45 = vld [vmem:[%s7538_s5 + $0x110] sm:$0xff] }
 0x168   : > { %1938 = vmatprep.subr.mxu0 %v1471_v46  ;;  %1868 = vmatpush1.msra.mxu1 %v1406_v47  ;;  %v1504_v46 = vld [vmem:[%s7538_s5 + $0x310] sm:$0xff]  ;;  %v1439_v47 = vld [vmem:[%s7538_s5 + $0x108] sm:$0xff] }
 0x169   : > { %1939 = vmatpush1.msra.mxu0 %v1470_v48  ;;  %1869 = vmatprep.subr.mxu1 %v1469_v49  ;;  %v1503_v48 = vld [vmem:[%s7538_s5 + $0x308] sm:$0xff]  ;;  %v1980_v49 = vld [vmem:[#allocation2 + $0x8] sm:$0xfc] }
 0x16a   : > { %1940 = vmatprep.subr.mxu0 %v1533_v50  ;;  %1870 = vmatpush2.msra.mxu1 %v1468_v51  ;;  %v1984_v50 = vld [vmem:[#allocation2 + $0x28] sm:$0x3]  ;;  %v1438_v51 = vld [vmem:[%s7538_s5 + $0x100] sm:$0xff] }
 0x16b   : > { %1941 = vmatpush2.msra.mxu0 %v1532_v1  ;;  %1871 = vmatprep.subr.mxu1 %v1467_v52  ;;  %v1982_v1 = vld [vmem:[#allocation2 + $0x18] sm:$0xfc]  ;;  %v1986_v52 = vld [vmem:[#allocation2 + $0x38] sm:$0x3] }
 0x16c   : > { %1942 = vmatprep.subr.mxu0 %v1531_v53  ;;  %1872 = vmatpush2.msra.mxu1 %v1466_v54  ;;  %v1502_v53 = vld [vmem:[%s7538_s5 + $0x300] sm:$0xff]  ;;  %v3684_v54 = vld [vmem:[%s7538_s5 + $0x8f8] sm:$0xff] }
 0x16d   : > { %1943 = vmatpush2.msra.mxu0 %v1530_v55  ;;  %1873 = vmatprep.subr.mxu1 %v1465_v57  ;;  %v2127_v55 = vrot.slane %v1980_v49, 2  ;;  %v2128_v57 = vrot.slane %v1984_v50, 2  ;;  %v3660_v49 = vld [vmem:[%s7538_s5 + $0x838] sm:$0xff] }
 0x16e   : > { %1944 = vmatprep.subr.mxu0 %v1529_v58  ;;  %1874 = vmatpush2.msra.mxu1 %v1464_v59  ;;  %v1402_v58 = vld [vmem:[#allocation2] sm:$0xff]  ;;  %v3748_v59 = vld [vmem:[%s7538_s5 + $0xaf8] sm:$0xff] }
 0x16f   : > { %1945 = vmatpush2.msra.mxu0 %v1528_v60  ;;  %1875 = vmatprep.subr.mxu1 %v1463_v61  ;;  %v3683_v60 = vld [vmem:[%s7538_s5 + $0x8f0] sm:$0xff]  ;;  %v2133_v61 = vrot.slane %v1982_v1, 2  ;;  %v3724_v50 = vld [vmem:[%s7538_s5 + $0xa38] sm:$0xff] }
 0x170   : > { %1946 = vmatprep.subr.mxu0 %v1527_v62  ;;  %1876 = vmatpush2.msra.mxu1 %v1462_v63  ;;  %v2134_v62 = vrot.slane %v1986_v52, 2  ;;  %v1404_v63 = vld [vmem:[#allocation2 + $0x10] sm:$0xff]  ;;  %v3723_v1 = vld [vmem:[%s7538_s5 + $0xa30] sm:$0xff]  ;;  %v3658_v52 = vld [vmem:[%s7538_s5 + $0x828] sm:$0xff] }
 0x171   : > { %1947 = vmatpush2.msra.mxu0 %v1526_v0  ;;  %1877 = vmatprep.subr.mxu1 %v1461_v2  ;;  %v3747_v0 = vld [vmem:[%s7538_s5 + $0xaf0] sm:$0xff]  ;;  %v3682_v2 = vld [vmem:[%s7538_s5 + $0x8e8] sm:$0xff] }
 0x172   : > { %1948 = vmatprep.subr.mxu0 %v1525_v3  ;;  %1878 = vmatpush2.msra.mxu1 %v1460_v5  ;;  %v2129_v3 = vsel %vm1320_vm3, %v2127_v55, %v2128_v57  ;;  %v3746_v5 = vld [vmem:[%s7538_s5 + $0xae8] sm:$0xff]  ;;  %v3721_v55 = vld [vmem:[%s7538_s5 + $0xa20] sm:$0xff]  ;;  %v3656_v57 = vld [vmem:[%s7538_s5 + $0x818] sm:$0xff] }
 0x173   : > { %1949 = vmatpush2.msra.mxu0 %v1524_v6  ;;  %1879 = vmatprep.subr.mxu1 %v1459_v7  ;;  %v3681_v6 = vld [vmem:[%s7538_s5 + $0x8e0] sm:$0xff]  ;;  %v2135_v7 = vsel %vm1320_vm3, %v2133_v61, %v2134_v62  ;;  %v3654_v61 = vld [vmem:[%s7538_s5 + $0x808] sm:$0xff] }
 0x174   : > { %1950 = vmatprep.subr.mxu0 %v1523_v8  ;;  %1880 = vmatpush2.msra.mxu1 %v1458_v9  ;;  %v3745_v8 = vld [vmem:[%s7538_s5 + $0xae0] sm:$0xff]  ;;  %v3680_v9 = vld [vmem:[%s7538_s5 + $0x8d8] sm:$0xff]  ;;  %v3718_v62 = vld [vmem:[%s7538_s5 + $0xa08] sm:$0xff] }
 0x175   : > { %1951 = vmatpush2.msra.mxu0 %v1522_v10  ;;  %1881 = vmatprep.subr.mxu1 %v1457_v11  ;;  %v3744_v10 = vld [vmem:[%s7538_s5 + $0xad8] sm:$0xff]  ;;  %v3679_v11 = vld [vmem:[%s7538_s5 + $0x8d0] sm:$0xff] }
 0x176   : > { %1952 = vmatprep.subr.mxu0 %v1521_v12  ;;  %1882 = vmatpush2.msra.mxu1 %v1456_v13  ;;  %v3743_v12 = vld [vmem:[%s7538_s5 + $0xad0] sm:$0xff]  ;;  %v3678_v13 = vld [vmem:[%s7538_s5 + $0x8c8] sm:$0xff] }
 0x177   : > { %1953 = vmatpush2.msra.mxu0 %v1520_v4  ;;  %1883 = vmatprep.subr.mxu1 %v1455_v14  ;;  %v3742_v4 = vld [vmem:[%s7538_s5 + $0xac8] sm:$0xff]  ;;  %v3677_v14 = vld [vmem:[%s7538_s5 + $0x8c0] sm:$0xff] }
 0x178   : > { %1954 = vmatprep.subr.mxu0 %v1519_v15  ;;  %1884 = vmatpush2.msra.mxu1 %v1454_v16  ;;  %v3741_v15 = vld [vmem:[%s7538_s5 + $0xac0] sm:$0xff]  ;;  %v3676_v16 = vld [vmem:[%s7538_s5 + $0x8b8] sm:$0xff] }
 0x179   : > { %1955 = vmatpush2.msra.mxu0 %v1518_v17  ;;  %1885 = vmatprep.subr.mxu1 %v1453_v18  ;;  %v3740_v17 = vld [vmem:[%s7538_s5 + $0xab8] sm:$0xff]  ;;  %v3675_v18 = vld [vmem:[%s7538_s5 + $0x8b0] sm:$0xff] }
 0x17a   : > { %1956 = vmatprep.subr.mxu0 %v1517_v19  ;;  %1886 = vmatpush2.msra.mxu1 %v1452_v20  ;;  %v3739_v19 = vld [vmem:[%s7538_s5 + $0xab0] sm:$0xff]  ;;  %v3674_v20 = vld [vmem:[%s7538_s5 + $0x8a8] sm:$0xff] }
 0x17b   : > { %1957 = vmatpush2.msra.mxu0 %v1516_v21  ;;  %1887 = vmatprep.subr.mxu1 %v1451_v22  ;;  %v3738_v21 = vld [vmem:[%s7538_s5 + $0xaa8] sm:$0xff]  ;;  %v3673_v22 = vld [vmem:[%s7538_s5 + $0x8a0] sm:$0xff] }
 0x17c   : > { %1958 = vmatprep.subr.mxu0 %v1515_v23  ;;  %1888 = vmatpush2.msra.mxu1 %v1450_v24  ;;  %v3737_v23 = vld [vmem:[%s7538_s5 + $0xaa0] sm:$0xff]  ;;  %v3672_v24 = vld [vmem:[%s7538_s5 + $0x898] sm:$0xff] }
 0x17d   : > { %1959 = vmatpush2.msra.mxu0 %v1514_v25  ;;  %1889 = vmatprep.subr.mxu1 %v1449_v26  ;;  %v3736_v25 = vld [vmem:[%s7538_s5 + $0xa98] sm:$0xff]  ;;  %v3671_v26 = vld [vmem:[%s7538_s5 + $0x890] sm:$0xff] }
 0x17e   : > { %1960 = vmatprep.subr.mxu0 %v1513_v27  ;;  %1890 = vmatpush2.msra.mxu1 %v1448_v28  ;;  %v3735_v27 = vld [vmem:[%s7538_s5 + $0xa90] sm:$0xff]  ;;  %v3670_v28 = vld [vmem:[%s7538_s5 + $0x888] sm:$0xff] }
 0x17f   : > { %1961 = vmatpush2.msra.mxu0 %v1512_v29  ;;  %1891 = vmatprep.subr.mxu1 %v1447_v30  ;;  %v3734_v29 = vld [vmem:[%s7538_s5 + $0xa88] sm:$0xff]  ;;  %v3669_v30 = vld [vmem:[%s7538_s5 + $0x880] sm:$0xff] }
 0x180   : > { %1962 = vmatprep.subr.mxu0 %v1511_v31  ;;  %1892 = vmatpush2.msra.mxu1 %v1446_v32  ;;  %v3733_v31 = vld [vmem:[%s7538_s5 + $0xa80] sm:$0xff]  ;;  %v3668_v32 = vld [vmem:[%s7538_s5 + $0x878] sm:$0xff] }
 0x181   : > { %1963 = vmatpush2.msra.mxu0 %v1510_v33  ;;  %1893 = vmatprep.subr.mxu1 %v1445_v34  ;;  %v3732_v33 = vld [vmem:[%s7538_s5 + $0xa78] sm:$0xff]  ;;  %v3667_v34 = vld [vmem:[%s7538_s5 + $0x870] sm:$0xff] }
 0x182   : > { %1964 = vmatprep.subr.mxu0 %v1509_v35  ;;  %1894 = vmatpush2.msra.mxu1 %v1444_v36  ;;  %v3731_v35 = vld [vmem:[%s7538_s5 + $0xa70] sm:$0xff]  ;;  %v3666_v36 = vld [vmem:[%s7538_s5 + $0x868] sm:$0xff] }
 0x183   : > { %1965 = vmatpush2.msra.mxu0 %v1508_v37  ;;  %1895 = vmatprep.subr.mxu1 %v1443_v38  ;;  %v3730_v37 = vld [vmem:[%s7538_s5 + $0xa68] sm:$0xff]  ;;  %v3665_v38 = vld [vmem:[%s7538_s5 + $0x860] sm:$0xff] }
 0x184   : > { %1966 = vmatprep.subr.mxu0 %v1507_v39  ;;  %1896 = vmatpush2.msra.mxu1 %v1442_v42  ;;  %v3729_v39 = vld [vmem:[%s7538_s5 + $0xa60] sm:$0xff]  ;;  %v3664_v42 = vld [vmem:[%s7538_s5 + $0x858] sm:$0xff] }
 0x185   : > { %1967 = vmatpush2.msra.mxu0 %v1506_v56  ;;  %1897 = vmatprep.subr.mxu1 %v1441_v43  ;;  %v3728_v56 = vld [vmem:[%s7538_s5 + $0xa58] sm:$0xff]  ;;  %v3663_v43 = vld [vmem:[%s7538_s5 + $0x850] sm:$0xff] }
 0x186   : > { %1968 = vmatprep.subr.mxu0 %v1505_v44  ;;  %1898 = vmatpush2.msra.mxu1 %v1440_v45  ;;  %v3727_v44 = vld [vmem:[%s7538_s5 + $0xa50] sm:$0xff]  ;;  %v3662_v45 = vld [vmem:[%s7538_s5 + $0x848] sm:$0xff] }
 0x187   : > { %1969 = vmatpush2.msra.mxu0 %v1504_v46  ;;  %1899 = vmatprep.subr.mxu1 %v1439_v47  ;;  %v3726_v46 = vld [vmem:[%s7538_s5 + $0xa48] sm:$0xff]  ;;  %v3661_v47 = vld [vmem:[%s7538_s5 + $0x840] sm:$0xff] }
 0x188   : > { %1970 = vmatprep.subr.mxu0 %v1503_v48  ;;  %1900 = vmatpush2.msra.mxu1 %v1438_v51  ;;  %v3725_v48 = vld [vmem:[%s7538_s5 + $0xa40] sm:$0xff]  ;;  %v3659_v51 = vld [vmem:[%s7538_s5 + $0x830] sm:$0xff] }
 0x189   : > { %1971 = vmatpush2.msra.mxu0 %v1502_v53  ;;  %1902 = vmatmul.mubr.f32.vlgmr.msra.gmra.mxu1 %v1402_v58  ;;  %v3722_v53 = vld [vmem:[%s7538_s5 + $0xa28] sm:$0xff]  ;;  %v3720_v58 = vld [vmem:[%s7538_s5 + $0xa18] sm:$0xff] }
 0x18a   : > { %1973 = vmatmul.mubr.f32.vlgmr.msra.gmra.mxu0 %v1404_v63  ;;  %2140 = vmatprep.subr.mxu1 %v3684_v54  ;;  %v3657_v54 = vld [vmem:[%s7538_s5 + $0x820] sm:$0xff] }
 0x18b   : > { %2211 = vmatprep.subr.mxu0 %v3748_v59  ;;  %2141 = vmatpush1.msra.mxu1 %v3683_v60  ;;  %v3655_v59 = vld [vmem:[%s7538_s5 + $0x810] sm:$0xff]  ;;  %v3653_v63 = vld [vmem:[%s7538_s5 + $0x800] sm:$0xff] }
 0x18c   : > { %2204 = vmatprep.mubr.f32.mxu1 %v2129_v3  ;;  %2212 = vmatpush1.msra.mxu0 %v3747_v0  ;;  %v3719_v60 = vld [vmem:[%s7538_s5 + $0xa10] sm:$0xff]  ;;  %v3717_v0 = vld [vmem:[%s7538_s5 + $0xa00] sm:$0xff]  ;;  %v3780_v3 = vld [vmem:[%s7538_s5 + $0xbf8] sm:$0xff] }
 0x18d   : > { %2275 = vmatprep.mubr.f32.mxu0 %v2135_v7  ;;  %2142 = vmatprep.subr.mxu1 %v3682_v2  ;;  %v3716_v2 = vld [vmem:[%s7538_s5 + $0x9f8] sm:$0xff]  ;;  %v3714_v7 = vld [vmem:[%s7538_s5 + $0x9e8] sm:$0xff] }
 0x18e   : > { %2213 = vmatprep.subr.mxu0 %v3746_v5  ;;  %2143 = vmatpush1.msra.mxu1 %v3681_v6  ;;  %v3715_v5 = vld [vmem:[%s7538_s5 + $0x9f0] sm:$0xff] }
 0x18f   : > { %2214 = vmatpush1.msra.mxu0 %v3745_v8  ;;  %2144 = vmatprep.subr.mxu1 %v3680_v9  ;;  %v3779_v6 = vld [vmem:[%s7538_s5 + $0xbf0] sm:$0xff]  ;;  %v3778_v8 = vld [vmem:[%s7538_s5 + $0xbe8] sm:$0xff]  ;;  %v3713_v9 = vld [vmem:[%s7538_s5 + $0x9e0] sm:$0xff] }
 0x190   : > { %2215 = vmatprep.subr.mxu0 %v3744_v10  ;;  %2145 = vmatpush1.msra.mxu1 %v3679_v11  ;;  %v3777_v10 = vld [vmem:[%s7538_s5 + $0xbe0] sm:$0xff]  ;;  %v3712_v11 = vld [vmem:[%s7538_s5 + $0x9d8] sm:$0xff] }
 0x191   : > { %2216 = vmatpush1.msra.mxu0 %v3743_v12  ;;  %2146 = vmatprep.subr.mxu1 %v3678_v13  ;;  %v3776_v12 = vld [vmem:[%s7538_s5 + $0xbd8] sm:$0xff]  ;;  %v3711_v13 = vld [vmem:[%s7538_s5 + $0x9d0] sm:$0xff] }
 0x192   : > { %2217 = vmatprep.subr.mxu0 %v3742_v4  ;;  %2147 = vmatpush1.msra.mxu1 %v3677_v14  ;;  %v3775_v4 = vld [vmem:[%s7538_s5 + $0xbd0] sm:$0xff]  ;;  %v3710_v14 = vld [vmem:[%s7538_s5 + $0x9c8] sm:$0xff] }
 0x193   : > { %2218 = vmatpush1.msra.mxu0 %v3741_v15  ;;  %2148 = vmatprep.subr.mxu1 %v3676_v16  ;;  %v3774_v15 = vld [vmem:[%s7538_s5 + $0xbc8] sm:$0xff]  ;;  %v3709_v16 = vld [vmem:[%s7538_s5 + $0x9c0] sm:$0xff] }
 0x194   : > { %2219 = vmatprep.subr.mxu0 %v3740_v17  ;;  %2149 = vmatpush1.msra.mxu1 %v3675_v18  ;;  %v3773_v17 = vld [vmem:[%s7538_s5 + $0xbc0] sm:$0xff]  ;;  %v3708_v18 = vld [vmem:[%s7538_s5 + $0x9b8] sm:$0xff] }
 0x195   : > { %2220 = vmatpush1.msra.mxu0 %v3739_v19  ;;  %2150 = vmatprep.subr.mxu1 %v3674_v20  ;;  %v3772_v19 = vld [vmem:[%s7538_s5 + $0xbb8] sm:$0xff]  ;;  %v3707_v20 = vld [vmem:[%s7538_s5 + $0x9b0] sm:$0xff] }
 0x196   : > { %2221 = vmatprep.subr.mxu0 %v3738_v21  ;;  %2151 = vmatpush1.msra.mxu1 %v3673_v22  ;;  %v3771_v21 = vld [vmem:[%s7538_s5 + $0xbb0] sm:$0xff]  ;;  %v3706_v22 = vld [vmem:[%s7538_s5 + $0x9a8] sm:$0xff] }
 0x197   : > { %2222 = vmatpush1.msra.mxu0 %v3737_v23  ;;  %2152 = vmatprep.subr.mxu1 %v3672_v24  ;;  %v3770_v23 = vld [vmem:[%s7538_s5 + $0xba8] sm:$0xff]  ;;  %v3705_v24 = vld [vmem:[%s7538_s5 + $0x9a0] sm:$0xff] }
 0x198   : > { %2223 = vmatprep.subr.mxu0 %v3736_v25  ;;  %2153 = vmatpush1.msra.mxu1 %v3671_v26  ;;  %v3769_v25 = vld [vmem:[%s7538_s5 + $0xba0] sm:$0xff]  ;;  %v3704_v26 = vld [vmem:[%s7538_s5 + $0x998] sm:$0xff] }
 0x199   : > { %2224 = vmatpush1.msra.mxu0 %v3735_v27  ;;  %2154 = vmatprep.subr.mxu1 %v3670_v28  ;;  %v3768_v27 = vld [vmem:[%s7538_s5 + $0xb98] sm:$0xff]  ;;  %v3703_v28 = vld [vmem:[%s7538_s5 + $0x990] sm:$0xff] }
 0x19a   : > { %2225 = vmatprep.subr.mxu0 %v3734_v29  ;;  %2155 = vmatpush1.msra.mxu1 %v3669_v30  ;;  %v3767_v29 = vld [vmem:[%s7538_s5 + $0xb90] sm:$0xff]  ;;  %v3702_v30 = vld [vmem:[%s7538_s5 + $0x988] sm:$0xff] }
 0x19b   : > { %2226 = vmatpush1.msra.mxu0 %v3733_v31  ;;  %2156 = vmatprep.subr.mxu1 %v3668_v32  ;;  %v3766_v31 = vld [vmem:[%s7538_s5 + $0xb88] sm:$0xff]  ;;  %v3701_v32 = vld [vmem:[%s7538_s5 + $0x980] sm:$0xff] }
 0x19c   : > { %2227 = vmatprep.subr.mxu0 %v3732_v33  ;;  %2157 = vmatpush1.msra.mxu1 %v3667_v34  ;;  %v3765_v33 = vld [vmem:[%s7538_s5 + $0xb80] sm:$0xff]  ;;  %v3700_v34 = vld [vmem:[%s7538_s5 + $0x978] sm:$0xff] }
 0x19d   : > { %2228 = vmatpush1.msra.mxu0 %v3731_v35  ;;  %2158 = vmatprep.subr.mxu1 %v3666_v36  ;;  %v3764_v35 = vld [vmem:[%s7538_s5 + $0xb78] sm:$0xff]  ;;  %v3699_v36 = vld [vmem:[%s7538_s5 + $0x970] sm:$0xff] }
 0x19e   : > { %2229 = vmatprep.subr.mxu0 %v3730_v37  ;;  %2159 = vmatpush1.msra.mxu1 %v3665_v38  ;;  %v3763_v37 = vld [vmem:[%s7538_s5 + $0xb70] sm:$0xff]  ;;  %v3698_v38 = vld [vmem:[%s7538_s5 + $0x968] sm:$0xff] }
 0x19f   : > { %2230 = vmatpush1.msra.mxu0 %v3729_v39  ;;  %2160 = vmatprep.subr.mxu1 %v3664_v42  ;;  %v3762_v39 = vld [vmem:[%s7538_s5 + $0xb68] sm:$0xff]  ;;  %v3697_v42 = vld [vmem:[%s7538_s5 + $0x960] sm:$0xff] }
 0x1a0   : > { %2231 = vmatprep.subr.mxu0 %v3728_v56  ;;  %2161 = vmatpush1.msra.mxu1 %v3663_v43  ;;  %v3761_v56 = vld [vmem:[%s7538_s5 + $0xb60] sm:$0xff]  ;;  %v3696_v43 = vld [vmem:[%s7538_s5 + $0x958] sm:$0xff] }
 0x1a1   : > { %2232 = vmatpush1.msra.mxu0 %v3727_v44  ;;  %2162 = vmatprep.subr.mxu1 %v3662_v45  ;;  %v3760_v44 = vld [vmem:[%s7538_s5 + $0xb58] sm:$0xff]  ;;  %v3695_v45 = vld [vmem:[%s7538_s5 + $0x950] sm:$0xff] }
 0x1a2   : > { %2233 = vmatprep.subr.mxu0 %v3726_v46  ;;  %2163 = vmatpush1.msra.mxu1 %v3661_v47  ;;  %v3759_v46 = vld [vmem:[%s7538_s5 + $0xb50] sm:$0xff]  ;;  %v3694_v47 = vld [vmem:[%s7538_s5 + $0x948] sm:$0xff] }
 0x1a3   : > { %2234 = vmatpush1.msra.mxu0 %v3725_v48  ;;  %2164 = vmatprep.subr.mxu1 %v3660_v49  ;;  %v3758_v48 = vld [vmem:[%s7538_s5 + $0xb48] sm:$0xff]  ;;  %v3693_v49 = vld [vmem:[%s7538_s5 + $0x940] sm:$0xff] }
 0x1a4   : > { %2235 = vmatprep.subr.mxu0 %v3724_v50  ;;  %2165 = vmatpush1.msra.mxu1 %v3659_v51  ;;  %v3757_v50 = vld [vmem:[%s7538_s5 + $0xb40] sm:$0xff]  ;;  %v3692_v51 = vld [vmem:[%s7538_s5 + $0x938] sm:$0xff] }
 0x1a5   : > { %2236 = vmatpush1.msra.mxu0 %v3723_v1  ;;  %2166 = vmatprep.subr.mxu1 %v3658_v52  ;;  %v3756_v1 = vld [vmem:[%s7538_s5 + $0xb38] sm:$0xff]  ;;  %v3691_v52 = vld [vmem:[%s7538_s5 + $0x930] sm:$0xff] }
 0x1a6   : > { %2237 = vmatprep.subr.mxu0 %v3722_v53  ;;  %2167 = vmatpush1.msra.mxu1 %v3657_v54  ;;  %v3755_v53 = vld [vmem:[%s7538_s5 + $0xb30] sm:$0xff]  ;;  %v3690_v54 = vld [vmem:[%s7538_s5 + $0x928] sm:$0xff] }
 0x1a7   : > { %2238 = vmatpush1.msra.mxu0 %v3721_v55  ;;  %2168 = vmatprep.subr.mxu1 %v3656_v57  ;;  %v3754_v55 = vld [vmem:[%s7538_s5 + $0xb28] sm:$0xff]  ;;  %v3689_v57 = vld [vmem:[%s7538_s5 + $0x920] sm:$0xff] }
 0x1a8   : > { %2239 = vmatprep.subr.mxu0 %v3720_v58  ;;  %2169 = vmatpush1.msra.mxu1 %v3655_v59  ;;  %v3753_v58 = vld [vmem:[%s7538_s5 + $0xb20] sm:$0xff]  ;;  %v1979_v59 = vld [vmem:[#allocation2] sm:$0xfc] }
 0x1a9   : > { %2240 = vmatpush1.msra.mxu0 %v3719_v60  ;;  %2170 = vmatprep.subr.mxu1 %v3654_v61  ;;  %v1983_v60 = vld [vmem:[#allocation2 + $0x20] sm:$0x3]  ;;  %v3688_v61 = vld [vmem:[%s7538_s5 + $0x918] sm:$0xff] }
 0x1aa   : > { %2241 = vmatprep.subr.mxu0 %v3718_v62  ;;  %2171 = vmatpush1.msra.mxu1 %v3653_v63  ;;  %v1981_v62 = vld [vmem:[#allocation2 + $0x10] sm:$0xfc]  ;;  %v1985_v63 = vld [vmem:[#allocation2 + $0x30] sm:$0x3] }
 0x1ab   : > { %2242 = vmatpush1.msra.mxu0 %v3717_v0  ;;  %2172 = vmatprep.subr.mxu1 %v3716_v2  ;;  %v3752_v0 = vld [vmem:[%s7538_s5 + $0xb18] sm:$0xff]  ;;  %v3687_v2 = vld [vmem:[%s7538_s5 + $0x910] sm:$0xff] }
 0x1ac   : > { %2243 = vmatprep.subr.mxu0 %v3780_v3  ;;  %2173 = vmatpush2.msra.mxu1 %v3715_v5  ;;  %v3751_v3 = vld [vmem:[%s7538_s5 + $0xb10] sm:$0xff]  ;;  %v3686_v5 = vld [vmem:[%s7538_s5 + $0x908] sm:$0xff] }
 0x1ad   : > { %2244 = vmatpush2.msra.mxu0 %v3779_v6  ;;  %2174 = vmatprep.subr.mxu1 %v3714_v7  ;;  %v2124_v6 = vrot.slane %v1979_v59, 2  ;;  %v2125_v7 = vrot.slane %v1983_v60, 2  ;;  %v2330_v59 = vld [vmem:[%s7540_s7 + $0x48] sm:$0xff] }
 0x1ae   : > { %2245 = vmatprep.subr.mxu0 %v3778_v8  ;;  %2175 = vmatpush2.msra.mxu1 %v3713_v9  ;;  %v3750_v8 = vld [vmem:[%s7538_s5 + $0xb08] sm:$0xff]  ;;  %v3685_v9 = vld [vmem:[%s7538_s5 + $0x900] sm:$0xff] }
 0x1af   : > { %2246 = vmatpush2.msra.mxu0 %v3777_v10  ;;  %2176 = vmatprep.subr.mxu1 %v3712_v11  ;;  %v2130_v10 = vrot.slane %v1981_v62, 2  ;;  %v2131_v11 = vrot.slane %v1985_v63, 2  ;;  %v3790_v60 = vld [vmem:[%s7540_s7 + $0x248] sm:$0xff]  ;;  %v3789_v62 = vld [vmem:[%s7540_s7 + $0x240] sm:$0xff]  ;;  %v2328_v63 = vld [vmem:[%s7540_s7 + $0x38] sm:$0xff] }
 0x1b0   : > { %2247 = vmatprep.subr.mxu0 %v3776_v12  ;;  %2177 = vmatpush2.msra.mxu1 %v3711_v13  ;;  %v3749_v12 = vld [vmem:[%s7538_s5 + $0xb00] sm:$0xff]  ;;  %v2126_v13 = vsel %vm1320_vm3, %v2124_v6, %v2125_v7  ;;  %v3786_v6 = vld [vmem:[%s7540_s7 + $0x228] sm:$0xff] }
 0x1b1   : > { %2248 = vmatpush2.msra.mxu0 %v3775_v4  ;;  %2178 = vmatprep.subr.mxu1 %v3710_v14  ;;  %v2132_v4 = vsel %vm1320_vm3, %v2130_v10, %v2131_v11  ;;  %v2352_v14 = vld [vmem:[%s7540_s7 + $0xf8] sm:$0xff]  ;;  %v2325_v7 = vld [vmem:[%s7540_s7 + $0x20] sm:$0xff]  ;;  %v2323_v11 = vld [vmem:[%s7540_s7 + $0x10] sm:$0xff] }
 0x1b2   : > { %2249 = vmatprep.subr.mxu0 %v3774_v15  ;;  %2179 = vmatpush2.msra.mxu1 %v3709_v16  ;;  %v2351_v15 = vld [vmem:[%s7540_s7 + $0xf0] sm:$0xff]  ;;  %v3812_v16 = vld [vmem:[%s7540_s7 + $0x2f8] sm:$0xff] }
 0x1b3   : > { %2250 = vmatpush2.msra.mxu0 %v3773_v17  ;;  %2180 = vmatprep.subr.mxu1 %v3708_v18  ;;  %v2350_v17 = vld [vmem:[%s7540_s7 + $0xe8] sm:$0xff]  ;;  %v3811_v18 = vld [vmem:[%s7540_s7 + $0x2f0] sm:$0xff]  ;;  %v3784_v10 = vld [vmem:[%s7540_s7 + $0x218] sm:$0xff] }
 0x1b4   : > { %2251 = vmatprep.subr.mxu0 %v3772_v19  ;;  %2181 = vmatpush2.msra.mxu1 %v3707_v20  ;;  %v2349_v19 = vld [vmem:[%s7540_s7 + $0xe0] sm:$0xff]  ;;  %v3810_v20 = vld [vmem:[%s7540_s7 + $0x2e8] sm:$0xff] }
 0x1b5   : > { %2252 = vmatpush2.msra.mxu0 %v3771_v21  ;;  %2182 = vmatprep.subr.mxu1 %v3706_v22  ;;  %v2348_v21 = vld [vmem:[%s7540_s7 + $0xd8] sm:$0xff]  ;;  %v3809_v22 = vld [vmem:[%s7540_s7 + $0x2e0] sm:$0xff] }
 0x1b6   : > { %2253 = vmatprep.subr.mxu0 %v3770_v23  ;;  %2183 = vmatpush2.msra.mxu1 %v3705_v24  ;;  %v2347_v23 = vld [vmem:[%s7540_s7 + $0xd0] sm:$0xff]  ;;  %v3808_v24 = vld [vmem:[%s7540_s7 + $0x2d8] sm:$0xff] }
 0x1b7   : > { %2254 = vmatpush2.msra.mxu0 %v3769_v25  ;;  %2184 = vmatprep.subr.mxu1 %v3704_v26  ;;  %v2346_v25 = vld [vmem:[%s7540_s7 + $0xc8] sm:$0xff]  ;;  %v3807_v26 = vld [vmem:[%s7540_s7 + $0x2d0] sm:$0xff] }
 0x1b8   : > { %2255 = vmatprep.subr.mxu0 %v3768_v27  ;;  %2185 = vmatpush2.msra.mxu1 %v3703_v28  ;;  %v3806_v27 = vld [vmem:[%s7540_s7 + $0x2c8] sm:$0xff]  ;;  %v2345_v28 = vld [vmem:[%s7540_s7 + $0xc0] sm:$0xff] }
 0x1b9   : > { %2256 = vmatpush2.msra.mxu0 %v3767_v29  ;;  %2186 = vmatprep.subr.mxu1 %v3702_v30  ;;  %v3805_v29 = vld [vmem:[%s7540_s7 + $0x2c0] sm:$0xff]  ;;  %v2344_v30 = vld [vmem:[%s7540_s7 + $0xb8] sm:$0xff] }
 0x1ba   : > { %2257 = vmatprep.subr.mxu0 %v3766_v31  ;;  %2187 = vmatpush2.msra.mxu1 %v3701_v32  ;;  %v3804_v31 = vld [vmem:[%s7540_s7 + $0x2b8] sm:$0xff]  ;;  %v2343_v32 = vld [vmem:[%s7540_s7 + $0xb0] sm:$0xff] }
 0x1bb   : > { %2258 = vmatpush2.msra.mxu0 %v3765_v33  ;;  %2188 = vmatprep.subr.mxu1 %v3700_v34  ;;  %v3803_v33 = vld [vmem:[%s7540_s7 + $0x2b0] sm:$0xff]  ;;  %v2342_v34 = vld [vmem:[%s7540_s7 + $0xa8] sm:$0xff] }
 0x1bc   : > { %2259 = vmatprep.subr.mxu0 %v3764_v35  ;;  %2189 = vmatpush2.msra.mxu1 %v3699_v36  ;;  %v3802_v35 = vld [vmem:[%s7540_s7 + $0x2a8] sm:$0xff]  ;;  %v2341_v36 = vld [vmem:[%s7540_s7 + $0xa0] sm:$0xff] }
 0x1bd   : > { %2260 = vmatpush2.msra.mxu0 %v3763_v37  ;;  %2190 = vmatprep.subr.mxu1 %v3698_v38  ;;  %v3801_v37 = vld [vmem:[%s7540_s7 + $0x2a0] sm:$0xff]  ;;  %v2340_v38 = vld [vmem:[%s7540_s7 + $0x98] sm:$0xff] }
 0x1be   : > { %2261 = vmatprep.subr.mxu0 %v3762_v39  ;;  %2191 = vmatpush2.msra.mxu1 %v3697_v42  ;;  %v3800_v39 = vld [vmem:[%s7540_s7 + $0x298] sm:$0xff]  ;;  %v2339_v42 = vld [vmem:[%s7540_s7 + $0x90] sm:$0xff] }
 0x1bf   : > { %2262 = vmatpush2.msra.mxu0 %v3761_v56  ;;  %2192 = vmatprep.subr.mxu1 %v3696_v43  ;;  %v3799_v56 = vld [vmem:[%s7540_s7 + $0x290] sm:$0xff]  ;;  %v2338_v43 = vld [vmem:[%s7540_s7 + $0x88] sm:$0xff] }
 0x1c0   : > { %2263 = vmatprep.subr.mxu0 %v3760_v44  ;;  %2193 = vmatpush2.msra.mxu1 %v3695_v45  ;;  %v3798_v44 = vld [vmem:[%s7540_s7 + $0x288] sm:$0xff]  ;;  %v2337_v45 = vld [vmem:[%s7540_s7 + $0x80] sm:$0xff] }
 0x1c1   : > { %2264 = vmatpush2.msra.mxu0 %v3759_v46  ;;  %2194 = vmatprep.subr.mxu1 %v3694_v47  ;;  %v3797_v46 = vld [vmem:[%s7540_s7 + $0x280] sm:$0xff]  ;;  %v2336_v47 = vld [vmem:[%s7540_s7 + $0x78] sm:$0xff] }
 0x1c2   : > { %2265 = vmatprep.subr.mxu0 %v3758_v48  ;;  %2195 = vmatpush2.msra.mxu1 %v3693_v49  ;;  %v3796_v48 = vld [vmem:[%s7540_s7 + $0x278] sm:$0xff]  ;;  %v2335_v49 = vld [vmem:[%s7540_s7 + $0x70] sm:$0xff] }
 0x1c3   : > { %2266 = vmatpush2.msra.mxu0 %v3757_v50  ;;  %2196 = vmatprep.subr.mxu1 %v3692_v51  ;;  %v3795_v50 = vld [vmem:[%s7540_s7 + $0x270] sm:$0xff]  ;;  %v2334_v51 = vld [vmem:[%s7540_s7 + $0x68] sm:$0xff] }
 0x1c4   : > { %2267 = vmatprep.subr.mxu0 %v3756_v1  ;;  %2197 = vmatpush2.msra.mxu1 %v3691_v52  ;;  %v3794_v1 = vld [vmem:[%s7540_s7 + $0x268] sm:$0xff]  ;;  %v2333_v52 = vld [vmem:[%s7540_s7 + $0x60] sm:$0xff] }
 0x1c5   : > { %2268 = vmatpush2.msra.mxu0 %v3755_v53  ;;  %2198 = vmatprep.subr.mxu1 %v3690_v54  ;;  %v3793_v53 = vld [vmem:[%s7540_s7 + $0x260] sm:$0xff]  ;;  %v2332_v54 = vld [vmem:[%s7540_s7 + $0x58] sm:$0xff] }
 0x1c6   : > { %2269 = vmatprep.subr.mxu0 %v3754_v55  ;;  %2199 = vmatpush2.msra.mxu1 %v3689_v57  ;;  %v3792_v55 = vld [vmem:[%s7540_s7 + $0x258] sm:$0xff]  ;;  %v2331_v57 = vld [vmem:[%s7540_s7 + $0x50] sm:$0xff] }
 0x1c7   : > { %2270 = vmatpush2.msra.mxu0 %v3753_v58  ;;  %2200 = vmatprep.subr.mxu1 %v3688_v61  ;;  %v3791_v58 = vld [vmem:[%s7540_s7 + $0x250] sm:$0xff]  ;;  %v2329_v61 = vld [vmem:[%s7540_s7 + $0x40] sm:$0xff] }
 0x1c8   : > { %2271 = vmatprep.subr.mxu0 %v3752_v0  ;;  %2201 = vmatpush2.msra.mxu1 %v3687_v2  ;;  %v3788_v0 = vld [vmem:[%s7540_s7 + $0x238] sm:$0xff]  ;;  %v2327_v2 = vld [vmem:[%s7540_s7 + $0x30] sm:$0xff] }
 0x1c9   : > { %2272 = vmatpush2.msra.mxu0 %v3751_v3  ;;  %2202 = vmatprep.subr.mxu1 %v3686_v5  ;;  %v3787_v3 = vld [vmem:[%s7540_s7 + $0x230] sm:$0xff]  ;;  %v2326_v5 = vld [vmem:[%s7540_s7 + $0x28] sm:$0xff] }
 0x1ca   : > { %2273 = vmatprep.subr.mxu0 %v3750_v8  ;;  %2203 = vmatpush2.msra.mxu1 %v3685_v9  ;;  %v3785_v8 = vld [vmem:[%s7540_s7 + $0x220] sm:$0xff]  ;;  %v2324_v9 = vld [vmem:[%s7540_s7 + $0x18] sm:$0xff] }
 0x1cb   : > { %2274 = vmatpush2.msra.mxu0 %v3749_v12  ;;  %2205 = vmatmul.mubr.f32.vlgmr.msra.gmra.mxu1 %v2126_v13  ;;  %v3783_v12 = vld [vmem:[%s7540_s7 + $0x210] sm:$0xff]  ;;  %v2322_v13 = vld [vmem:[%s7540_s7 + $0x8] sm:$0xff] }
 0x1cc   : > { %2276 = vmatmul.mubr.f32.vlgmr.msra.gmra.mxu0 %v2132_v4  ;;  %2537 = vmatprep.subr.mxu0 %v2352_v14  ;;  %v3782_v4 = vld [vmem:[%s7540_s7 + $0x208] sm:$0xff]  ;;  %v2321_v14 = vld [vmem:[%s7540_s7] sm:$0xff] }
 0x1cd   : > { %2466 = vmatprep.subr.mxu1 %v3812_v16  ;;  %2538 = vmatpush1.msra.mxu0 %v2351_v15  ;;  %v3781_v15 = vld [vmem:[%s7540_s7 + $0x200] sm:$0xff]  ;;  %v2384_v16 = vld [vmem:[%s7540_s7 + $0x1f8] sm:$0xff] }
 0x1ce   : > { %2467 = vmatpush1.msra.mxu1 %v3811_v18  ;;  %2539 = vmatprep.subr.mxu0 %v2350_v17  ;;  %v3844_v17 = vld [vmem:[%s7540_s7 + $0x3f8] sm:$0xff]  ;;  %v2383_v18 = vld [vmem:[%s7540_s7 + $0x1f0] sm:$0xff] }
 0x1cf   : > { %2468 = vmatprep.subr.mxu1 %v3810_v20  ;;  %2540 = vmatpush1.msra.mxu0 %v2349_v19  ;;  %v3843_v19 = vld [vmem:[%s7540_s7 + $0x3f0] sm:$0xff]  ;;  %v2382_v20 = vld [vmem:[%s7540_s7 + $0x1e8] sm:$0xff] }
 0x1d0   : > { %2469 = vmatpush1.msra.mxu1 %v3809_v22  ;;  %2541 = vmatprep.subr.mxu0 %v2348_v21  ;;  %v3842_v21 = vld [vmem:[%s7540_s7 + $0x3e8] sm:$0xff]  ;;  %v2381_v22 = vld [vmem:[%s7540_s7 + $0x1e0] sm:$0xff] }
 0x1d1   : > { %2470 = vmatprep.subr.mxu1 %v3808_v24  ;;  %2542 = vmatpush1.msra.mxu0 %v2347_v23  ;;  %v3841_v23 = vld [vmem:[%s7540_s7 + $0x3e0] sm:$0xff]  ;;  %v2380_v24 = vld [vmem:[%s7540_s7 + $0x1d8] sm:$0xff] }
 0x1d2   : > { %2471 = vmatpush1.msra.mxu1 %v3807_v26  ;;  %2543 = vmatprep.subr.mxu0 %v2346_v25  ;;  %v3840_v25 = vld [vmem:[%s7540_s7 + $0x3d8] sm:$0xff]  ;;  %v2379_v26 = vld [vmem:[%s7540_s7 + $0x1d0] sm:$0xff] }
 0x1d3   : > { %2472 = vmatprep.subr.mxu1 %v3806_v27  ;;  %2544 = vmatpush1.msra.mxu0 %v2345_v28  ;;  %v3839_v27 = vld [vmem:[%s7540_s7 + $0x3d0] sm:$0xff]  ;;  %v2378_v28 = vld [vmem:[%s7540_s7 + $0x1c8] sm:$0xff] }
 0x1d4   : > { %2473 = vmatpush1.msra.mxu1 %v3805_v29  ;;  %2545 = vmatprep.subr.mxu0 %v2344_v30  ;;  %v2377_v29 = vld [vmem:[%s7540_s7 + $0x1c0] sm:$0xff]  ;;  %v3838_v30 = vld [vmem:[%s7540_s7 + $0x3c8] sm:$0xff] }
 0x1d5   : > { %2474 = vmatprep.subr.mxu1 %v3804_v31  ;;  %2546 = vmatpush1.msra.mxu0 %v2343_v32  ;;  %v2376_v31 = vld [vmem:[%s7540_s7 + $0x1b8] sm:$0xff]  ;;  %v3837_v32 = vld [vmem:[%s7540_s7 + $0x3c0] sm:$0xff] }
 0x1d6   : > { %2475 = vmatpush1.msra.mxu1 %v3803_v33  ;;  %2547 = vmatprep.subr.mxu0 %v2342_v34  ;;  %v2375_v33 = vld [vmem:[%s7540_s7 + $0x1b0] sm:$0xff]  ;;  %v3836_v34 = vld [vmem:[%s7540_s7 + $0x3b8] sm:$0xff] }
 0x1d7   : > { %2476 = vmatprep.subr.mxu1 %v3802_v35  ;;  %2548 = vmatpush1.msra.mxu0 %v2341_v36  ;;  %v2374_v35 = vld [vmem:[%s7540_s7 + $0x1a8] sm:$0xff]  ;;  %v3835_v36 = vld [vmem:[%s7540_s7 + $0x3b0] sm:$0xff] }
 0x1d8   : > { %2477 = vmatpush1.msra.mxu1 %v3801_v37  ;;  %2549 = vmatprep.subr.mxu0 %v2340_v38  ;;  %v2373_v37 = vld [vmem:[%s7540_s7 + $0x1a0] sm:$0xff]  ;;  %v3834_v38 = vld [vmem:[%s7540_s7 + $0x3a8] sm:$0xff] }
 0x1d9   : > { %2478 = vmatprep.subr.mxu1 %v3800_v39  ;;  %2550 = vmatpush1.msra.mxu0 %v2339_v42  ;;  %v2372_v39 = vld [vmem:[%s7540_s7 + $0x198] sm:$0xff]  ;;  %v3833_v42 = vld [vmem:[%s7540_s7 + $0x3a0] sm:$0xff] }
 0x1da   : > { %2479 = vmatpush1.msra.mxu1 %v3799_v56  ;;  %2551 = vmatprep.subr.mxu0 %v2338_v43  ;;  %v2371_v56 = vld [vmem:[%s7540_s7 + $0x190] sm:$0xff]  ;;  %v3832_v43 = vld [vmem:[%s7540_s7 + $0x398] sm:$0xff] }
 0x1db   : > { %2480 = vmatprep.subr.mxu1 %v3798_v44  ;;  %2552 = vmatpush1.msra.mxu0 %v2337_v45  ;;  %v2370_v44 = vld [vmem:[%s7540_s7 + $0x188] sm:$0xff]  ;;  %v3831_v45 = vld [vmem:[%s7540_s7 + $0x390] sm:$0xff] }
 0x1dc   : > { %2481 = vmatpush1.msra.mxu1 %v3797_v46  ;;  %2553 = vmatprep.subr.mxu0 %v2336_v47  ;;  %v2369_v46 = vld [vmem:[%s7540_s7 + $0x180] sm:$0xff]  ;;  %v3830_v47 = vld [vmem:[%s7540_s7 + $0x388] sm:$0xff] }
 0x1dd   : > { %2482 = vmatprep.subr.mxu1 %v3796_v48  ;;  %2554 = vmatpush1.msra.mxu0 %v2335_v49  ;;  %v2368_v48 = vld [vmem:[%s7540_s7 + $0x178] sm:$0xff]  ;;  %v3829_v49 = vld [vmem:[%s7540_s7 + $0x380] sm:$0xff] }
 0x1de   : > { %2483 = vmatpush1.msra.mxu1 %v3795_v50  ;;  %2555 = vmatprep.subr.mxu0 %v2334_v51  ;;  %v2367_v50 = vld [vmem:[%s7540_s7 + $0x170] sm:$0xff]  ;;  %v3828_v51 = vld [vmem:[%s7540_s7 + $0x378] sm:$0xff] }
 0x1df   : > { %2484 = vmatprep.subr.mxu1 %v3794_v1  ;;  %2556 = vmatpush1.msra.mxu0 %v2333_v52  ;;  %v2366_v1 = vld [vmem:[%s7540_s7 + $0x168] sm:$0xff]  ;;  %v3827_v52 = vld [vmem:[%s7540_s7 + $0x370] sm:$0xff] }
 0x1e0   : > { %2485 = vmatpush1.msra.mxu1 %v3793_v53  ;;  %2557 = vmatprep.subr.mxu0 %v2332_v54  ;;  %v2365_v53 = vld [vmem:[%s7540_s7 + $0x160] sm:$0xff]  ;;  %v3826_v54 = vld [vmem:[%s7540_s7 + $0x368] sm:$0xff] }
 0x1e1   : > { %2486 = vmatprep.subr.mxu1 %v3792_v55  ;;  %2558 = vmatpush1.msra.mxu0 %v2331_v57  ;;  %v2364_v55 = vld [vmem:[%s7540_s7 + $0x158] sm:$0xff]  ;;  %v3825_v57 = vld [vmem:[%s7540_s7 + $0x360] sm:$0xff] }
 0x1e2   : > { %2487 = vmatpush1.msra.mxu1 %v3791_v58  ;;  %2559 = vmatprep.subr.mxu0 %v2330_v59  ;;  %v2363_v58 = vld [vmem:[%s7540_s7 + $0x150] sm:$0xff]  ;;  %v3824_v59 = vld [vmem:[%s7540_s7 + $0x358] sm:$0xff] }
 0x1e3   : > { %2488 = vmatprep.subr.mxu1 %v3790_v60  ;;  %2560 = vmatpush1.msra.mxu0 %v2329_v61  ;;  %v2362_v60 = vld [vmem:[%s7540_s7 + $0x148] sm:$0xff]  ;;  %v3823_v61 = vld [vmem:[%s7540_s7 + $0x350] sm:$0xff] }
 0x1e4   : > { %2489 = vmatpush1.msra.mxu1 %v3789_v62  ;;  %2561 = vmatprep.subr.mxu0 %v2328_v63  ;;  %v2361_v62 = vld [vmem:[%s7540_s7 + $0x140] sm:$0xff]  ;;  %v3822_v63 = vld [vmem:[%s7540_s7 + $0x348] sm:$0xff] }
 0x1e5   : > { %2490 = vmatprep.subr.mxu1 %v3788_v0  ;;  %2562 = vmatpush1.msra.mxu0 %v2327_v2  ;;  %v2360_v0 = vld [vmem:[%s7540_s7 + $0x138] sm:$0xff]  ;;  %v3821_v2 = vld [vmem:[%s7540_s7 + $0x340] sm:$0xff] }
 0x1e6   : > { %2491 = vmatpush1.msra.mxu1 %v3787_v3  ;;  %2563 = vmatprep.subr.mxu0 %v2326_v5  ;;  %v2359_v3 = vld [vmem:[%s7540_s7 + $0x130] sm:$0xff]  ;;  %v3820_v5 = vld [vmem:[%s7540_s7 + $0x338] sm:$0xff] }
 0x1e7   : > { %2492 = vmatprep.subr.mxu1 %v3786_v6  ;;  %2564 = vmatpush1.msra.mxu0 %v2325_v7  ;;  %v2358_v6 = vld [vmem:[%s7540_s7 + $0x128] sm:$0xff]  ;;  %v3819_v7 = vld [vmem:[%s7540_s7 + $0x330] sm:$0xff] }
 0x1e8   : > { %2493 = vmatpush1.msra.mxu1 %v3785_v8  ;;  %2565 = vmatprep.subr.mxu0 %v2324_v9  ;;  %v2357_v8 = vld [vmem:[%s7540_s7 + $0x120] sm:$0xff]  ;;  %v3818_v9 = vld [vmem:[%s7540_s7 + $0x328] sm:$0xff] }
 0x1e9   : > { %2494 = vmatprep.subr.mxu1 %v3784_v10  ;;  %2566 = vmatpush1.msra.mxu0 %v2323_v11  ;;  %v2356_v10 = vld [vmem:[%s7540_s7 + $0x118] sm:$0xff]  ;;  %v3817_v11 = vld [vmem:[%s7540_s7 + $0x320] sm:$0xff] }
 0x1ea   : > { %2495 = vmatpush1.msra.mxu1 %v3783_v12  ;;  %2567 = vmatprep.subr.mxu0 %v2322_v13  ;;  %v2355_v12 = vld [vmem:[%s7540_s7 + $0x110] sm:$0xff]  ;;  %v3816_v13 = vld [vmem:[%s7540_s7 + $0x318] sm:$0xff] }
 0x1eb   : > { %2496 = vmatprep.subr.mxu1 %v3782_v4  ;;  %2568 = vmatpush1.msra.mxu0 %v2321_v14  ;;  %v2354_v4 = vld [vmem:[%s7540_s7 + $0x108] sm:$0xff]  ;;  %v3815_v14 = vld [vmem:[%s7540_s7 + $0x310] sm:$0xff] }
 0x1ec   : > { %2497 = vmatpush1.msra.mxu1 %v3781_v15  ;;  %2569 = vmatprep.subr.mxu0 %v2384_v16  ;;  %v2353_v15 = vld [vmem:[%s7540_s7 + $0x100] sm:$0xff]  ;;  %v3814_v16 = vld [vmem:[%s7540_s7 + $0x308] sm:$0xff] }
 0x1ed   : > { %2498 = vmatprep.subr.mxu1 %v3844_v17  ;;  %2570 = vmatpush2.msra.mxu0 %v2383_v18  ;;  %v3813_v17 = vld [vmem:[%s7540_s7 + $0x300] sm:$0xff]  ;;  %v3876_v18 = vld [vmem:[%s7540_s7 + $0x4f8] sm:$0xff] }
 0x1ee   : > { %2499 = vmatpush2.msra.mxu1 %v3843_v19  ;;  %2571 = vmatprep.subr.mxu0 %v2382_v20  ;;  %v1171_v19 = vpop.f32.mrf.mxu0 }
 0x1ef   : > { %2500 = vmatprep.subr.mxu1 %v3842_v21  ;;  %2572 = vmatpush2.msra.mxu0 %v2381_v22  ;;  %v1242_v21 = vpop.f32.mrf.mxu1 }
 0x1f0   : > { %2501 = vmatpush2.msra.mxu1 %v3841_v23  ;;  %2573 = vmatprep.subr.mxu0 %v2380_v24  ;;  %v1173_v20 = vpop.f32.mrf.mxu0 }
 0x1f1   : > { %2502 = vmatprep.subr.mxu1 %v3840_v25  ;;  %2574 = vmatpush2.msra.mxu0 %v2379_v26  ;;  %v1244_v23 = vpop.f32.mrf.mxu1 }
 0x1f2   : > { %2503 = vmatpush2.msra.mxu1 %v3839_v27  ;;  %2575 = vmatprep.subr.mxu0 %v2378_v28  ;;  %v1395_v22 = vpop.f32.mrf.mxu0 }
 0x1f3   : > { %2576 = vmatpush2.msra.mxu0 %v2377_v29  ;;  %2504 = vmatprep.subr.mxu1 %v3838_v30 }
 0x1f4   : > { %2577 = vmatprep.subr.mxu0 %v2376_v31  ;;  %2505 = vmatpush2.msra.mxu1 %v3837_v32  ;;  %v1397_v24 = vpop.f32.mrf.mxu0 }
 0x1f5   : > { %2578 = vmatpush2.msra.mxu0 %v2375_v33  ;;  %2506 = vmatprep.subr.mxu1 %v3836_v34 }
 0x1f6   : > { %2579 = vmatprep.subr.mxu0 %v2374_v35  ;;  %2507 = vmatpush2.msra.mxu1 %v3835_v36  ;;  %v1243_v35 = vadd.f32 %v1242_v21, %v1171_v19  ;;  %v3873_v19 = vld [vmem:[%s7540_s7 + $0x4e0] sm:$0xff]  ;;  %v3871_v21 = vld [vmem:[%s7540_s7 + $0x4d0] sm:$0xff] }
 0x1f7   : > { %2580 = vmatpush2.msra.mxu0 %v2373_v37  ;;  %2508 = vmatprep.subr.mxu1 %v3834_v38 }
 0x1f8   : > { %2581 = vmatprep.subr.mxu0 %v2372_v39  ;;  %2509 = vmatpush2.msra.mxu1 %v3833_v42  ;;  %v2286_v42 = vld [vmem:[%s7539_s6] sm:$0x3] }
 0x1f9   : > { %2582 = vmatpush2.msra.mxu0 %v2371_v56  ;;  %2510 = vmatprep.subr.mxu1 %v3832_v43  ;;  %v1245_v56 = vadd.f32 %v1244_v23, %v1173_v20  ;;  %v3872_v20 = vld [vmem:[%s7540_s7 + $0x4d8] sm:$0xff]  ;;  %v3869_v23 = vld [vmem:[%s7540_s7 + $0x4c0] sm:$0xff] }
 0x1fa   : > { %2583 = vmatprep.subr.mxu0 %v2370_v44  ;;  %2511 = vmatpush2.msra.mxu1 %v3831_v45 }
 0x1fb   : > { %2584 = vmatpush2.msra.mxu0 %v2369_v46  ;;  %2512 = vmatprep.subr.mxu1 %v3830_v47  ;;  %v1400_v46 = vadd.f32 %v1395_v22, %v1243_v35  ;;  %v3870_v22 = vld [vmem:[%s7540_s7 + $0x4c8] sm:$0xff]  ;;  %v3857_v35 = vld [vmem:[%s7540_s7 + $0x460] sm:$0xff] }
 0x1fc   : > { %2585 = vmatprep.subr.mxu0 %v2368_v48  ;;  %2513 = vmatpush2.msra.mxu1 %v3829_v49 }
 0x1fd   : > { %2586 = vmatpush2.msra.mxu0 %v2367_v50  ;;  %2514 = vmatprep.subr.mxu1 %v3828_v51  ;;  %v2291_v50 = vrot.slane %v2286_v42, %v5542_v40 }
 0x1fe   : > { %2587 = vmatprep.subr.mxu0 %v2366_v1  ;;  %2515 = vmatpush2.msra.mxu1 %v3827_v52  ;;  %v1401_v1 = vadd.f32 %v1397_v24, %v1245_v56  ;;  %v3868_v24 = vld [vmem:[%s7540_s7 + $0x4b8] sm:$0xff]  ;;  %v3851_v56 = vld [vmem:[%s7540_s7 + $0x430] sm:$0xff] }
 0x1ff   : > { %2588 = vmatpush2.msra.mxu0 %v2365_v53  ;;  %2516 = vmatprep.subr.mxu1 %v3826_v54  ;;  %v2295_v54 = vrot.slane %v2286_v42, %v5544_v41  ;;  %v3852_v42 = vld [vmem:[%s7540_s7 + $0x438] sm:$0xff] }
 0x200   : > { %2589 = vmatprep.subr.mxu0 %v2364_v55  ;;  %2517 = vmatpush2.msra.mxu1 %v3825_v57 }
 0x201   : > { %2590 = vmatpush2.msra.mxu0 %v2363_v58  ;;  %2518 = vmatprep.subr.mxu1 %v3824_v59 }
 0x202   : > { %2591 = vmatprep.subr.mxu0 %v2362_v60  ;;  %2519 = vmatpush2.msra.mxu1 %v3823_v61 }
 0x203   : > { %2592 = vmatpush2.msra.mxu0 %v2361_v62  ;;  %2520 = vmatprep.subr.mxu1 %v3822_v63 }
 0x204   : > { %2593 = vmatprep.subr.mxu0 %v2360_v0  ;;  %2521 = vmatpush2.msra.mxu1 %v3821_v2 }
 0x205   : > { %2594 = vmatpush2.msra.mxu0 %v2359_v3  ;;  %2522 = vmatprep.subr.mxu1 %v3820_v5 }
 0x206   : > { %2595 = vmatprep.subr.mxu0 %v2358_v6  ;;  %2523 = vmatpush2.msra.mxu1 %v3819_v7 }
 0x207   : > { %2596 = vmatpush2.msra.mxu0 %v2357_v8  ;;  %2524 = vmatprep.subr.mxu1 %v3818_v9 }
 0x208   : > { %2597 = vmatprep.subr.mxu0 %v2356_v10  ;;  %2525 = vmatpush2.msra.mxu1 %v3817_v11  ;;  %v1761_v25 = vpop.f32.mrf.mxu1 }
 0x209   : > { %2598 = vmatpush2.msra.mxu0 %v2355_v12  ;;  %2526 = vmatprep.subr.mxu1 %v3816_v13  ;;  %v1832_v26 = vpop.f32.mrf.mxu0 }
 0x20a   : > { %2599 = vmatprep.subr.mxu0 %v2354_v4  ;;  %2527 = vmatpush2.msra.mxu1 %v3815_v14  ;;  %v1763_v27 = vpop.f32.mrf.mxu1  ;;  %v1833_v31 = vadd.f32 %v1832_v26, %v1761_v25  ;;  %v3867_v25 = vld [vmem:[%s7540_s7 + $0x4b0] sm:$0xff]  ;;  %v3866_v26 = vld [vmem:[%s7540_s7 + $0x4a8] sm:$0xff] }
 0x20b   : > { %2600 = vmatpush2.msra.mxu0 %v2353_v15  ;;  %2528 = vmatprep.subr.mxu1 %v3814_v16  ;;  %v1834_v28 = vpop.f32.mrf.mxu0  ;;  %v3875_v15 = vld [vmem:[%s7540_s7 + $0x4f0] sm:$0xff] }
 0x20c   : > { %2529 = vmatpush2.msra.mxu1 %v3813_v17  ;;  %v1835_v33 = vadd.f32 %v1834_v28, %v1763_v27  ;;  %v3874_v17 = vld [vmem:[%s7540_s7 + $0x4e8] sm:$0xff]  ;;  %v3865_v27 = vld [vmem:[%s7540_s7 + $0x4a0] sm:$0xff]  ;;  %v3864_v28 = vld [vmem:[%s7540_s7 + $0x498] sm:$0xff] }
 0x20d   : > { %2689 = vmatprep.subr.mxu1 %v3876_v18 }
 0x249   : > { %v1903_v29 = vpop.f32.mrf.mxu1 }
 0x24a   : > { %v1974_v30 = vpop.f32.mrf.mxu0  ;;  %v1904_v34 = vadd.f32 %v1903_v29, %v1833_v31  ;;  %v3863_v29 = vld [vmem:[%s7540_s7 + $0x490] sm:$0xff]  ;;  %v3861_v31 = vld [vmem:[%s7540_s7 + $0x480] sm:$0xff] }
 0x24b   : > { %v1905_v32 = vpop.f32.mrf.mxu1 }
 0x24c   : > { %v1976_v36 = vpop.f32.mrf.mxu0  ;;  %v1906_v37 = vadd.f32 %v1905_v32, %v1835_v33  ;;  %v1975_v43 = vadd.f32 %v1974_v30, %v1904_v34  ;;  %v3862_v30 = vld [vmem:[%s7540_s7 + $0x488] sm:$0xff]  ;;  %v3860_v32 = vld [vmem:[%s7540_s7 + $0x478] sm:$0xff]  ;;  %v3859_v33 = vld [vmem:[%s7540_s7 + $0x470] sm:$0xff] }
 0x24d   : > { %v3858_v34 = vld [vmem:[%s7540_s7 + $0x468] sm:$0xff] }
 0x24e   : > { %v1977_v48 = vadd.f32 %v1976_v36, %v1906_v37  ;;  %v3856_v36 = vld [vmem:[%s7540_s7 + $0x458] sm:$0xff]  ;;  %v3855_v37 = vld [vmem:[%s7540_s7 + $0x450] sm:$0xff] }
 0x28b   : > { %v2206_v38 = vpop.f32.mrf.mxu1 }
 0x28c   : > { %v2277_v39 = vpop.f32.mrf.mxu0 }
 0x28d   : > { %v2278_v44 = vadd.f32 %v2277_v39, %v2206_v38  ;;  %v2208_v45 = vpop.f32.mrf.mxu1  ;;  %v3854_v38 = vld [vmem:[%s7540_s7 + $0x448] sm:$0xff]  ;;  %v3853_v39 = vld [vmem:[%s7540_s7 + $0x440] sm:$0xff] }
 0x28e   : > { %v2279_v47 = vpop.f32.mrf.mxu0 }
 0x28f   : > { %v2282_v49 = vadd.f32 %v2278_v44, %v1975_v43  ;;  %v2280_v51 = vadd.f32 %v2279_v47, %v2208_v45  ;;  %v3850_v43 = vld [vmem:[%s7540_s7 + $0x428] sm:$0xff]  ;;  %v3849_v44 = vld [vmem:[%s7540_s7 + $0x420] sm:$0xff]  ;;  %v3848_v45 = vld [vmem:[%s7540_s7 + $0x418] sm:$0xff] }
 0x290   : > { %v3846_v47 = vld [vmem:[%s7540_s7 + $0x408] sm:$0xff] }
 0x291   : > { %v2284_v52 = vadd.f32 %v2282_v49, %v1400_v46  ;;  %v2283_v53 = vadd.f32 %v2280_v51, %v1977_v48  ;;  %v3847_v46 = vld [vmem:[%s7540_s7 + $0x410] sm:$0xff]  ;;  %v3845_v48 = vld [vmem:[%s7540_s7 + $0x400] sm:$0xff]  ;;  %v3908_v49 = vld [vmem:[%s7540_s7 + $0x5f8] sm:$0xff] }
 0x292   : > { %v3906_v51 = vld [vmem:[%s7540_s7 + $0x5e8] sm:$0xff] }
 0x293   : > { %v6729_v55 = vadd.f32 %v2291_v50, %v2284_v52  ;;  %v2285_v57 = vadd.f32 %v2283_v53, %v1401_v1  ;;  %v3907_v50 = vld [vmem:[%s7540_s7 + $0x5f0] sm:$0xff]  ;;  %v3905_v1 = vld [vmem:[%s7540_s7 + $0x5e0] sm:$0xff]  ;;  %v3904_v52 = vld [vmem:[%s7540_s7 + $0x5d8] sm:$0xff] }
 0x294   : > { %v3903_v53 = vld [vmem:[%s7540_s7 + $0x5d0] sm:$0xff] }
 0x295   : > { %v2300_v58 = vmax.f32 %v6729_v55, 0.0  ;;  %v6732_v59 = vadd.f32 %v2295_v54, %v2285_v57  ;;  %v3902_v54 = vld [vmem:[%s7540_s7 + $0x5c8] sm:$0xff]  ;;  %v3901_v57 = vld [vmem:[%s7540_s7 + $0x5c0] sm:$0xff] }
 0x297   : > { %v2311_v60 = vrot.slane %v2300_v58, 7  ;;  %v2301_v61 = vmax.f32 %v6732_v59, 0.0 }
 0x299   : > { %2315 = vst [vmem:[#allocation3] sm:$0xfe] %v2311_v60  ;;  %2317 = vst [vmem:[#allocation3 + $0x10] sm:$0x1] %v2311_v60  ;;  %v2312_v62 = vrot.slane %v2301_v61, 7  ;;  %v3900_v60 = vld [vmem:[%s7540_s7 + $0x5b8] sm:$0xff] }
 0x29b   : > { %2316 = vst [vmem:[#allocation3 + $0x8] sm:$0xfe] %v2312_v62  ;;  %2318 = vst [vmem:[#allocation3 + $0x18] sm:$0x1] %v2312_v62  ;;  %v3899_v62 = vld [vmem:[%s7540_s7 + $0x5b0] sm:$0xff] }
 0x2a0   : > { %v2385_v63 = vld [vmem:[#allocation3] sm:$0xfe]  ;;  %v2387_v0 = vld [vmem:[#allocation3 + $0x10] sm:$0x1] }
 0x2a1   : > { %v2319_v2 = vld [vmem:[#allocation3] sm:$0xff]  ;;  %v2458_v3 = vrot.slane %v2385_v63, 1  ;;  %v2459_v8 = vrot.slane %v2387_v0, 1  ;;  %v3898_v63 = vld [vmem:[%s7540_s7 + $0x5a8] sm:$0xff]  ;;  %v3897_v0 = vld [vmem:[%s7540_s7 + $0x5a0] sm:$0xff] }
 0x2a2   : > { %v2320_v5 = vld [vmem:[#allocation3 + $0x8] sm:$0xff]  ;;  %v2388_v7 = vld [vmem:[#allocation3 + $0x18] sm:$0x1] }
 0x2a3   : > { %v2386_v6 = vld [vmem:[#allocation3 + $0x8] sm:$0xfe]  ;;  %2601 = vmatprep.mubr.f32.mxu0 %v2320_v5  ;;  %v2462_v10 = vrot.slane %v2388_v7, 1  ;;  %v2611_v12 = vld [vmem:[#allocation3 + $0x18] sm:$0x3]  ;;  %v2460_v16 = vsel %vm1096_vm0, %v2458_v3, %v2459_v8  ;;  %v3895_v3 = vld [vmem:[%s7540_s7 + $0x590] sm:$0xff] }
 0x2a4   : > { %v2461_v9 = vrot.slane %v2386_v6, 1  ;;  %v2609_v11 = vld [vmem:[#allocation3 + $0x8] sm:$0xfc]  ;;  %2602 = vmatmul.mubr.f32.vlgmr.msra.gmra.mxu0 %v2319_v2  ;;  %v2685_v4 = vrot.slane %v2611_v12, 2  ;;  %v3894_v5 = vld [vmem:[%s7540_s7 + $0x588] sm:$0xff]  ;;  %v3893_v6 = vld [vmem:[%s7540_s7 + $0x580] sm:$0xff] }
 0x2a5   : > { %v2684_v13 = vrot.slane %v2609_v11, 2  ;;  %v3896_v2 = vld [vmem:[%s7540_s7 + $0x598] sm:$0xff]  ;;  %v3891_v8 = vld [vmem:[%s7540_s7 + $0x570] sm:$0xff] }
 0x2a6   : > { %v2463_v14 = vsel %vm1096_vm0, %v2461_v9, %v2462_v10  ;;  %v3892_v7 = vld [vmem:[%s7540_s7 + $0x578] sm:$0xff]  ;;  %v3890_v9 = vld [vmem:[%s7540_s7 + $0x568] sm:$0xff]  ;;  %v3889_v10 = vld [vmem:[%s7540_s7 + $0x560] sm:$0xff] }
 0x2a7   : > { %2530 = vmatprep.mubr.f32.mxu1 %v2463_v14  ;;  %v2686_v18 = vsel %vm1320_vm3, %v2684_v13, %v2685_v4  ;;  %v3888_v11 = vld [vmem:[%s7540_s7 + $0x558] sm:$0xff]  ;;  %v3887_v12 = vld [vmem:[%s7540_s7 + $0x550] sm:$0xff]  ;;  %v3886_v13 = vld [vmem:[%s7540_s7 + $0x548] sm:$0xff] }
 0x2a8   : > { %2531 = vmatmul.mubr.f32.vlgmr.msra.gmra.mxu1 %v2460_v16  ;;  %v3885_v4 = vld [vmem:[%s7540_s7 + $0x540] sm:$0xff]  ;;  %v3884_v14 = vld [vmem:[%s7540_s7 + $0x538] sm:$0xff]  ;;  %v3882_v16 = vld [vmem:[%s7540_s7 + $0x528] sm:$0xff] }
 0x2a9   : > { %2690 = vmatpush1.msra.mxu1 %v3875_v15  ;;  %2753 = vmatprep.mubr.f32.mxu1 %v2686_v18  ;;  %v3883_v15 = vld [vmem:[%s7540_s7 + $0x530] sm:$0xff] }
 0x2aa   : > { %2691 = vmatprep.subr.mxu1 %v3874_v17  ;;  %v3881_v17 = vld [vmem:[%s7540_s7 + $0x520] sm:$0xff]  ;;  %v2608_v18 = vld [vmem:[#allocation3] sm:$0xfc] }
 0x2ab   : > { %2692 = vmatpush1.msra.mxu1 %v3873_v19  ;;  %v2610_v19 = vld [vmem:[#allocation3 + $0x10] sm:$0x3] }
 0x2ac   : > { %2693 = vmatprep.subr.mxu1 %v3872_v20  ;;  %v3880_v20 = vld [vmem:[%s7540_s7 + $0x518] sm:$0xff] }
 0x2ad   : > { %2694 = vmatpush1.msra.mxu1 %v3871_v21  ;;  %v3879_v21 = vld [vmem:[%s7540_s7 + $0x510] sm:$0xff] }
 0x2ae   : > { %2695 = vmatprep.subr.mxu1 %v3870_v22  ;;  %v3878_v22 = vld [vmem:[%s7540_s7 + $0x508] sm:$0xff] }
 0x2af   : > { %2696 = vmatpush1.msra.mxu1 %v3869_v23  ;;  %v2681_v23 = vrot.slane %v2608_v18, 2  ;;  %v3916_v18 = vld [vmem:[%s7542_s9 + $0x238] sm:$0xff] }
 0x2b0   : > { %2697 = vmatprep.subr.mxu1 %v3868_v24  ;;  %v2682_v24 = vrot.slane %v2610_v19, 2  ;;  %v2801_v19 = vld [vmem:[%s7542_s9 + $0x30] sm:$0xff] }
 0x2b1   : > { %2698 = vmatpush1.msra.mxu1 %v3867_v25  ;;  %v3877_v25 = vld [vmem:[%s7540_s7 + $0x500] sm:$0xff] }
 0x2b2   : > { %2699 = vmatprep.subr.mxu1 %v3866_v26  ;;  %v2683_v26 = vsel %vm1320_vm3, %v2681_v23, %v2682_v24  ;;  %v2799_v23 = vld [vmem:[%s7542_s9 + $0x20] sm:$0xff] }
 0x2b3   : > { %2700 = vmatpush1.msra.mxu1 %v3865_v27  ;;  %v2826_v27 = vld [vmem:[%s7542_s9 + $0xf8] sm:$0xff]  ;;  %v3913_v24 = vld [vmem:[%s7542_s9 + $0x220] sm:$0xff] }
 0x2b4   : > { %2701 = vmatprep.subr.mxu1 %v3864_v28  ;;  %v2825_v28 = vld [vmem:[%s7542_s9 + $0xf0] sm:$0xff] }
 0x2b5   : > { %2702 = vmatpush1.msra.mxu1 %v3863_v29  ;;  %v3940_v29 = vld [vmem:[%s7542_s9 + $0x2f8] sm:$0xff] }
 0x2b6   : > { %2703 = vmatprep.subr.mxu1 %v3862_v30  ;;  %2940 = vmatprep.subr.mxu0 %v3940_v29  ;;  %v2824_v30 = vld [vmem:[%s7542_s9 + $0xe8] sm:$0xff] }
 0x2b7   : > { %2704 = vmatpush1.msra.mxu1 %v3861_v31  ;;  %v3939_v31 = vld [vmem:[%s7542_s9 + $0x2f0] sm:$0xff]  ;;  %v2796_v29 = vld [vmem:[%s7542_s9 + $0x8] sm:$0xff] }
 0x2b8   : > { %2705 = vmatprep.subr.mxu1 %v3860_v32  ;;  %v2823_v32 = vld [vmem:[%s7542_s9 + $0xe0] sm:$0xff]  ;;  %2941 = vmatpush1.msra.mxu0 %v3939_v31 }
 0x2b9   : > { %2706 = vmatpush1.msra.mxu1 %v3859_v33  ;;  %v3938_v33 = vld [vmem:[%s7542_s9 + $0x2e8] sm:$0xff]  ;;  %v2795_v31 = vld [vmem:[%s7542_s9] sm:$0xff] }
 0x2ba   : > { %2707 = vmatprep.subr.mxu1 %v3858_v34  ;;  %v2822_v34 = vld [vmem:[%s7542_s9 + $0xd8] sm:$0xff]  ;;  %2942 = vmatprep.subr.mxu0 %v3938_v33 }
 0x2bb   : > { %2708 = vmatpush1.msra.mxu1 %v3857_v35  ;;  %v3937_v35 = vld [vmem:[%s7542_s9 + $0x2e0] sm:$0xff]  ;;  %v2858_v33 = vld [vmem:[%s7542_s9 + $0x1f8] sm:$0xff] }
 0x2bc   : > { %2709 = vmatprep.subr.mxu1 %v3856_v36  ;;  %v2821_v36 = vld [vmem:[%s7542_s9 + $0xd0] sm:$0xff]  ;;  %2943 = vmatpush1.msra.mxu0 %v3937_v35 }
 0x2bd   : > { %2710 = vmatpush1.msra.mxu1 %v3855_v37  ;;  %v3936_v37 = vld [vmem:[%s7542_s9 + $0x2d8] sm:$0xff]  ;;  %v2857_v35 = vld [vmem:[%s7542_s9 + $0x1f0] sm:$0xff] }
 0x2be   : > { %2711 = vmatprep.subr.mxu1 %v3854_v38  ;;  %v2820_v38 = vld [vmem:[%s7542_s9 + $0xc8] sm:$0xff]  ;;  %2944 = vmatprep.subr.mxu0 %v3936_v37 }
 0x2bf   : > { %2712 = vmatpush1.msra.mxu1 %v3853_v39  ;;  %v3935_v39 = vld [vmem:[%s7542_s9 + $0x2d0] sm:$0xff]  ;;  %v2856_v37 = vld [vmem:[%s7542_s9 + $0x1e8] sm:$0xff] }
 0x2c0   : > { %2713 = vmatprep.subr.mxu1 %v3852_v42  ;;  %v3934_v42 = vld [vmem:[%s7542_s9 + $0x2c8] sm:$0xff]  ;;  %2945 = vmatpush1.msra.mxu0 %v3935_v39  ;;  %v2855_v39 = vld [vmem:[%s7542_s9 + $0x1e0] sm:$0xff] }
 0x2c1   : > { %2714 = vmatpush1.msra.mxu1 %v3851_v56  ;;  %v2819_v56 = vld [vmem:[%s7542_s9 + $0xc0] sm:$0xff]  ;;  %2946 = vmatprep.subr.mxu0 %v3934_v42 }
 0x2c2   : > { %2715 = vmatprep.subr.mxu1 %v3850_v43  ;;  %v3933_v43 = vld [vmem:[%s7542_s9 + $0x2c0] sm:$0xff] }
 0x2c3   : > { %2716 = vmatpush1.msra.mxu1 %v3849_v44  ;;  %v2818_v44 = vld [vmem:[%s7542_s9 + $0xb8] sm:$0xff]  ;;  %2947 = vmatpush1.msra.mxu0 %v3933_v43  ;;  %v3969_v42 = vld [vmem:[%s7542_s9 + $0x3e0] sm:$0xff] }
 0x2c4   : > { %2717 = vmatprep.subr.mxu1 %v3848_v45  ;;  %v3932_v45 = vld [vmem:[%s7542_s9 + $0x2b8] sm:$0xff] }
 0x2c5   : > { %2718 = vmatpush1.msra.mxu1 %v3847_v46  ;;  %v2817_v46 = vld [vmem:[%s7542_s9 + $0xb0] sm:$0xff]  ;;  %2948 = vmatprep.subr.mxu0 %v3932_v45  ;;  %v3968_v43 = vld [vmem:[%s7542_s9 + $0x3d8] sm:$0xff] }
 0x2c6   : > { %2719 = vmatprep.subr.mxu1 %v3846_v47  ;;  %v3931_v47 = vld [vmem:[%s7542_s9 + $0x2b0] sm:$0xff] }
 0x2c7   : > { %2720 = vmatpush1.msra.mxu1 %v3845_v48  ;;  %v2816_v48 = vld [vmem:[%s7542_s9 + $0xa8] sm:$0xff]  ;;  %2949 = vmatpush1.msra.mxu0 %v3931_v47  ;;  %v3967_v45 = vld [vmem:[%s7542_s9 + $0x3d0] sm:$0xff] }
 0x2c8   : > { %2721 = vmatprep.subr.mxu1 %v3908_v49  ;;  %v3930_v49 = vld [vmem:[%s7542_s9 + $0x2a8] sm:$0xff] }
 0x2c9   : > { %2722 = vmatpush2.msra.mxu1 %v3907_v50  ;;  %v2815_v50 = vld [vmem:[%s7542_s9 + $0xa0] sm:$0xff]  ;;  %2950 = vmatprep.subr.mxu0 %v3930_v49  ;;  %v3966_v47 = vld [vmem:[%s7542_s9 + $0x3c8] sm:$0xff] }
 0x2ca   : > { %2723 = vmatprep.subr.mxu1 %v3906_v51  ;;  %v3929_v51 = vld [vmem:[%s7542_s9 + $0x2a0] sm:$0xff] }
 0x2cb   : > { %2724 = vmatpush2.msra.mxu1 %v3905_v1  ;;  %v2814_v1 = vld [vmem:[%s7542_s9 + $0x98] sm:$0xff]  ;;  %2951 = vmatpush1.msra.mxu0 %v3929_v51  ;;  %v3965_v49 = vld [vmem:[%s7542_s9 + $0x3c0] sm:$0xff] }
 0x2cc   : > { %2725 = vmatprep.subr.mxu1 %v3904_v52  ;;  %v3928_v52 = vld [vmem:[%s7542_s9 + $0x298] sm:$0xff] }
 0x2cd   : > { %2726 = vmatpush2.msra.mxu1 %v3903_v53  ;;  %v2813_v53 = vld [vmem:[%s7542_s9 + $0x90] sm:$0xff]  ;;  %2952 = vmatprep.subr.mxu0 %v3928_v52  ;;  %v3964_v51 = vld [vmem:[%s7542_s9 + $0x3b8] sm:$0xff] }
 0x2ce   : > { %2727 = vmatprep.subr.mxu1 %v3902_v54  ;;  %v3927_v54 = vld [vmem:[%s7542_s9 + $0x290] sm:$0xff] }
 0x2cf   : > { %2728 = vmatpush2.msra.mxu1 %v3901_v57  ;;  %v2812_v57 = vld [vmem:[%s7542_s9 + $0x88] sm:$0xff]  ;;  %2953 = vmatpush1.msra.mxu0 %v3927_v54  ;;  %v3963_v52 = vld [vmem:[%s7542_s9 + $0x3b0] sm:$0xff]  ;;  %v2847_v54 = vld [vmem:[%s7542_s9 + $0x1a0] sm:$0xff] }
 0x2d0   : > { %2729 = vmatprep.subr.mxu1 %v3900_v60  ;;  %v3926_v60 = vld [vmem:[%s7542_s9 + $0x288] sm:$0xff] }
 0x2d1   : > { %2730 = vmatpush2.msra.mxu1 %v3899_v62  ;;  %v2811_v62 = vld [vmem:[%s7542_s9 + $0x80] sm:$0xff]  ;;  %2954 = vmatprep.subr.mxu0 %v3926_v60  ;;  %v2846_v60 = vld [vmem:[%s7542_s9 + $0x198] sm:$0xff] }
 0x2d2   : > { %2731 = vmatprep.subr.mxu1 %v3898_v63  ;;  %v3925_v63 = vld [vmem:[%s7542_s9 + $0x280] sm:$0xff] }
 0x2d3   : > { %2732 = vmatpush2.msra.mxu1 %v3897_v0  ;;  %v2810_v0 = vld [vmem:[%s7542_s9 + $0x78] sm:$0xff]  ;;  %2955 = vmatpush1.msra.mxu0 %v3925_v63  ;;  %v2845_v63 = vld [vmem:[%s7542_s9 + $0x190] sm:$0xff] }
 0x2d4   : > { %2733 = vmatprep.subr.mxu1 %v3896_v2  ;;  %v3924_v2 = vld [vmem:[%s7542_s9 + $0x278] sm:$0xff] }
 0x2d5   : > { %2734 = vmatpush2.msra.mxu1 %v3895_v3  ;;  %v2809_v3 = vld [vmem:[%s7542_s9 + $0x70] sm:$0xff]  ;;  %2956 = vmatprep.subr.mxu0 %v3924_v2  ;;  %v2844_v2 = vld [vmem:[%s7542_s9 + $0x188] sm:$0xff] }
 0x2d6   : > { %2735 = vmatprep.subr.mxu1 %v3894_v5  ;;  %v3923_v5 = vld [vmem:[%s7542_s9 + $0x270] sm:$0xff] }
 0x2d7   : > { %2736 = vmatpush2.msra.mxu1 %v3893_v6  ;;  %v2808_v6 = vld [vmem:[%s7542_s9 + $0x68] sm:$0xff]  ;;  %2957 = vmatpush1.msra.mxu0 %v3923_v5  ;;  %v2843_v5 = vld [vmem:[%s7542_s9 + $0x180] sm:$0xff] }
 0x2d8   : > { %2737 = vmatprep.subr.mxu1 %v3892_v7  ;;  %v3922_v7 = vld [vmem:[%s7542_s9 + $0x268] sm:$0xff] }
 0x2d9   : > { %2738 = vmatpush2.msra.mxu1 %v3891_v8  ;;  %v2807_v8 = vld [vmem:[%s7542_s9 + $0x60] sm:$0xff]  ;;  %2958 = vmatprep.subr.mxu0 %v3922_v7  ;;  %v2842_v7 = vld [vmem:[%s7542_s9 + $0x178] sm:$0xff] }
 0x2da   : > { %2739 = vmatprep.subr.mxu1 %v3890_v9  ;;  %v3921_v9 = vld [vmem:[%s7542_s9 + $0x260] sm:$0xff] }
 0x2db   : > { %2740 = vmatpush2.msra.mxu1 %v3889_v10  ;;  %v2806_v10 = vld [vmem:[%s7542_s9 + $0x58] sm:$0xff]  ;;  %2959 = vmatpush1.msra.mxu0 %v3921_v9  ;;  %v2841_v9 = vld [vmem:[%s7542_s9 + $0x170] sm:$0xff] }
 0x2dc   : > { %2741 = vmatprep.subr.mxu1 %v3888_v11  ;;  %v3920_v11 = vld [vmem:[%s7542_s9 + $0x258] sm:$0xff] }
 0x2dd   : > { %2742 = vmatpush2.msra.mxu1 %v3887_v12  ;;  %v2805_v12 = vld [vmem:[%s7542_s9 + $0x50] sm:$0xff]  ;;  %2960 = vmatprep.subr.mxu0 %v3920_v11  ;;  %v2840_v11 = vld [vmem:[%s7542_s9 + $0x168] sm:$0xff] }
 0x2de   : > { %2743 = vmatprep.subr.mxu1 %v3886_v13  ;;  %v3919_v13 = vld [vmem:[%s7542_s9 + $0x250] sm:$0xff] }
 0x2df   : > { %2744 = vmatpush2.msra.mxu1 %v3885_v4  ;;  %v2804_v4 = vld [vmem:[%s7542_s9 + $0x48] sm:$0xff]  ;;  %2961 = vmatpush1.msra.mxu0 %v3919_v13  ;;  %v2839_v13 = vld [vmem:[%s7542_s9 + $0x160] sm:$0xff] }
 0x2e0   : > { %2745 = vmatprep.subr.mxu1 %v3884_v14  ;;  %v3918_v14 = vld [vmem:[%s7542_s9 + $0x248] sm:$0xff] }
 0x2e1   : > { %2746 = vmatpush2.msra.mxu1 %v3883_v15  ;;  %v2803_v15 = vld [vmem:[%s7542_s9 + $0x40] sm:$0xff]  ;;  %2962 = vmatprep.subr.mxu0 %v3918_v14  ;;  %v2838_v14 = vld [vmem:[%s7542_s9 + $0x158] sm:$0xff] }
 0x2e2   : > { %2747 = vmatprep.subr.mxu1 %v3882_v16  ;;  %v3917_v16 = vld [vmem:[%s7542_s9 + $0x240] sm:$0xff] }
 0x2e3   : > { %2748 = vmatpush2.msra.mxu1 %v3881_v17  ;;  %v2802_v17 = vld [vmem:[%s7542_s9 + $0x38] sm:$0xff]  ;;  %2963 = vmatpush1.msra.mxu0 %v3917_v16  ;;  %v2837_v16 = vld [vmem:[%s7542_s9 + $0x150] sm:$0xff] }
 0x2e4   : > { %2749 = vmatprep.subr.mxu1 %v3880_v20  ;;  %v3915_v20 = vld [vmem:[%s7542_s9 + $0x230] sm:$0xff]  ;;  %2964 = vmatprep.subr.mxu0 %v3916_v18  ;;  %v2836_v18 = vld [vmem:[%s7542_s9 + $0x148] sm:$0xff] }
 0x2e5   : > { %2750 = vmatpush2.msra.mxu1 %v3879_v21  ;;  %v2800_v21 = vld [vmem:[%s7542_s9 + $0x28] sm:$0xff]  ;;  %2965 = vmatpush1.msra.mxu0 %v3915_v20  ;;  %v2835_v20 = vld [vmem:[%s7542_s9 + $0x140] sm:$0xff] }
 0x2e6   : > { %2751 = vmatprep.subr.mxu1 %v3878_v22  ;;  %v3914_v22 = vld [vmem:[%s7542_s9 + $0x228] sm:$0xff] }
 0x2e7   : > { %2752 = vmatpush2.msra.mxu1 %v3877_v25  ;;  %v2798_v25 = vld [vmem:[%s7542_s9 + $0x18] sm:$0xff]  ;;  %2966 = vmatprep.subr.mxu0 %v3914_v22 }
 0x2e8   : > { %2754 = vmatmul.mubr.f32.vlgmr.msra.gmra.mxu1 %v2683_v26  ;;  %3011 = vmatprep.subr.mxu1 %v2826_v27  ;;  %v3912_v26 = vld [vmem:[%s7542_s9 + $0x218] sm:$0xff]  ;;  %v2797_v27 = vld [vmem:[%s7542_s9 + $0x10] sm:$0xff] }
 0x2e9   : > { %3012 = vmatpush1.msra.mxu1 %v2825_v28  ;;  %v3911_v28 = vld [vmem:[%s7542_s9 + $0x210] sm:$0xff]  ;;  %2967 = vmatpush1.msra.mxu0 %v3913_v24  ;;  %v2834_v22 = vld [vmem:[%s7542_s9 + $0x138] sm:$0xff] }
 0x2ea   : > { %3013 = vmatprep.subr.mxu1 %v2824_v30  ;;  %v3910_v30 = vld [vmem:[%s7542_s9 + $0x208] sm:$0xff]  ;;  %2968 = vmatprep.subr.mxu0 %v3912_v26  ;;  %v2833_v24 = vld [vmem:[%s7542_s9 + $0x130] sm:$0xff] }
 0x2eb   : > { %3014 = vmatpush1.msra.mxu1 %v2823_v32  ;;  %v3909_v32 = vld [vmem:[%s7542_s9 + $0x200] sm:$0xff]  ;;  %2969 = vmatpush1.msra.mxu0 %v3911_v28  ;;  %v2832_v26 = vld [vmem:[%s7542_s9 + $0x128] sm:$0xff] }
 0x2ec   : > { %3015 = vmatprep.subr.mxu1 %v2822_v34  ;;  %v3972_v34 = vld [vmem:[%s7542_s9 + $0x3f8] sm:$0xff]  ;;  %2970 = vmatprep.subr.mxu0 %v3910_v30  ;;  %v2831_v28 = vld [vmem:[%s7542_s9 + $0x120] sm:$0xff] }
 0x2ed   : > { %3016 = vmatpush1.msra.mxu1 %v2821_v36  ;;  %v3971_v36 = vld [vmem:[%s7542_s9 + $0x3f0] sm:$0xff]  ;;  %2971 = vmatpush1.msra.mxu0 %v3909_v32  ;;  %v2830_v30 = vld [vmem:[%s7542_s9 + $0x118] sm:$0xff] }
 0x2ee   : > { %3017 = vmatprep.subr.mxu1 %v2820_v38  ;;  %v3970_v38 = vld [vmem:[%s7542_s9 + $0x3e8] sm:$0xff]  ;;  %2972 = vmatprep.subr.mxu0 %v3972_v34  ;;  %v2829_v32 = vld [vmem:[%s7542_s9 + $0x110] sm:$0xff] }
 0x2ef   : > { %3018 = vmatpush1.msra.mxu1 %v2819_v56  ;;  %2973 = vmatpush2.msra.mxu0 %v3971_v36  ;;  %v2854_v56 = vld [vmem:[%s7542_s9 + $0x1d8] sm:$0xff]  ;;  %v2828_v34 = vld [vmem:[%s7542_s9 + $0x108] sm:$0xff]  ;;  %v2827_v36 = vld [vmem:[%s7542_s9 + $0x100] sm:$0xff] }
 0x2f0   : > { %3019 = vmatprep.subr.mxu1 %v2818_v44  ;;  %2974 = vmatprep.subr.mxu0 %v3970_v38  ;;  %v2853_v44 = vld [vmem:[%s7542_s9 + $0x1d0] sm:$0xff]  ;;  %v3941_v38 = vld [vmem:[%s7542_s9 + $0x300] sm:$0xff] }
 0x2f1   : > { %3020 = vmatpush1.msra.mxu1 %v2817_v46  ;;  %2975 = vmatpush2.msra.mxu0 %v3969_v42  ;;  %v2852_v46 = vld [vmem:[%s7542_s9 + $0x1c8] sm:$0xff] }
 0x2f2   : > { %3021 = vmatprep.subr.mxu1 %v2816_v48  ;;  %2976 = vmatprep.subr.mxu0 %v3968_v43  ;;  %v2851_v48 = vld [vmem:[%s7542_s9 + $0x1c0] sm:$0xff] }
 0x2f3   : > { %3022 = vmatpush1.msra.mxu1 %v2815_v50  ;;  %2977 = vmatpush2.msra.mxu0 %v3967_v45  ;;  %v2850_v50 = vld [vmem:[%s7542_s9 + $0x1b8] sm:$0xff]  ;;  %v2762_v43 = vld [vmem:[%s7541_s8] sm:$0x3] }
 0x2f4   : > { %3023 = vmatprep.subr.mxu1 %v2814_v1  ;;  %2978 = vmatprep.subr.mxu0 %v3966_v47  ;;  %v2849_v1 = vld [vmem:[%s7542_s9 + $0x1b0] sm:$0xff] }
 0x2f5   : > { %3024 = vmatpush1.msra.mxu1 %v2813_v53  ;;  %2979 = vmatpush2.msra.mxu0 %v3965_v49  ;;  %v2848_v53 = vld [vmem:[%s7542_s9 + $0x1a8] sm:$0xff] }
 0x2f6   : > { %3025 = vmatprep.subr.mxu1 %v2812_v57  ;;  %2980 = vmatprep.subr.mxu0 %v3964_v51  ;;  %v3962_v57 = vld [vmem:[%s7542_s9 + $0x3a8] sm:$0xff]  ;;  %v2771_v51 = vrot.slane %v2762_v43, %v5544_v41 }
 0x2f7   : > { %3026 = vmatpush1.msra.mxu1 %v2811_v62  ;;  %2981 = vmatpush2.msra.mxu0 %v3963_v52  ;;  %v3961_v62 = vld [vmem:[%s7542_s9 + $0x3a0] sm:$0xff] }
 0x2f8   : > { %3027 = vmatprep.subr.mxu1 %v2810_v0  ;;  %2982 = vmatprep.subr.mxu0 %v3962_v57  ;;  %v3960_v0 = vld [vmem:[%s7542_s9 + $0x398] sm:$0xff] }
 0x2f9   : > { %3028 = vmatpush1.msra.mxu1 %v2809_v3  ;;  %2983 = vmatpush2.msra.mxu0 %v3961_v62  ;;  %v3959_v3 = vld [vmem:[%s7542_s9 + $0x390] sm:$0xff] }
 0x2fa   : > { %3029 = vmatprep.subr.mxu1 %v2808_v6  ;;  %2984 = vmatprep.subr.mxu0 %v3960_v0  ;;  %v3958_v6 = vld [vmem:[%s7542_s9 + $0x388] sm:$0xff] }
 0x2fb   : > { %3030 = vmatpush1.msra.mxu1 %v2807_v8  ;;  %2985 = vmatpush2.msra.mxu0 %v3959_v3  ;;  %v3957_v8 = vld [vmem:[%s7542_s9 + $0x380] sm:$0xff] }
 0x2fc   : > { %3031 = vmatprep.subr.mxu1 %v2806_v10  ;;  %2986 = vmatprep.subr.mxu0 %v3958_v6  ;;  %v3956_v10 = vld [vmem:[%s7542_s9 + $0x378] sm:$0xff] }
 0x2fd   : > { %3032 = vmatpush1.msra.mxu1 %v2805_v12  ;;  %2987 = vmatpush2.msra.mxu0 %v3957_v8  ;;  %v3955_v12 = vld [vmem:[%s7542_s9 + $0x370] sm:$0xff] }
 0x2fe   : > { %3033 = vmatprep.subr.mxu1 %v2804_v4  ;;  %2988 = vmatprep.subr.mxu0 %v3956_v10  ;;  %v3954_v4 = vld [vmem:[%s7542_s9 + $0x368] sm:$0xff] }
 0x2ff   : > { %3034 = vmatpush1.msra.mxu1 %v2803_v15  ;;  %2989 = vmatpush2.msra.mxu0 %v3955_v12  ;;  %v3953_v15 = vld [vmem:[%s7542_s9 + $0x360] sm:$0xff] }
 0x300   : > { %3035 = vmatprep.subr.mxu1 %v2802_v17  ;;  %v3952_v17 = vld [vmem:[%s7542_s9 + $0x358] sm:$0xff]  ;;  %2990 = vmatprep.subr.mxu0 %v3954_v4 }
 0x301   : > { %3036 = vmatpush1.msra.mxu1 %v2801_v19  ;;  %v3951_v19 = vld [vmem:[%s7542_s9 + $0x350] sm:$0xff]  ;;  %2991 = vmatpush2.msra.mxu0 %v3953_v15 }
 0x302   : > { %3037 = vmatprep.subr.mxu1 %v2800_v21  ;;  %v3950_v21 = vld [vmem:[%s7542_s9 + $0x348] sm:$0xff]  ;;  %2992 = vmatprep.subr.mxu0 %v3952_v17 }
 0x303   : > { %3038 = vmatpush1.msra.mxu1 %v2799_v23  ;;  %v3949_v23 = vld [vmem:[%s7542_s9 + $0x340] sm:$0xff]  ;;  %2993 = vmatpush2.msra.mxu0 %v3951_v19 }
 0x304   : > { %3039 = vmatprep.subr.mxu1 %v2798_v25  ;;  %v3948_v25 = vld [vmem:[%s7542_s9 + $0x338] sm:$0xff]  ;;  %2994 = vmatprep.subr.mxu0 %v3950_v21 }
 0x305   : > { %3040 = vmatpush1.msra.mxu1 %v2797_v27  ;;  %v3947_v27 = vld [vmem:[%s7542_s9 + $0x330] sm:$0xff]  ;;  %2995 = vmatpush2.msra.mxu0 %v3949_v23  ;;  %v4000_v21 = vld [vmem:[%s7542_s9 + $0x4d8] sm:$0xff]  ;;  %v3998_v23 = vld [vmem:[%s7542_s9 + $0x4c8] sm:$0xff] }
 0x306   : > { %3041 = vmatprep.subr.mxu1 %v2796_v29  ;;  %v3946_v29 = vld [vmem:[%s7542_s9 + $0x328] sm:$0xff]  ;;  %2996 = vmatprep.subr.mxu0 %v3948_v25  ;;  %v3996_v25 = vld [vmem:[%s7542_s9 + $0x4b8] sm:$0xff] }
 0x307   : > { %3042 = vmatpush1.msra.mxu1 %v2795_v31  ;;  %v3945_v31 = vld [vmem:[%s7542_s9 + $0x320] sm:$0xff]  ;;  %2997 = vmatpush2.msra.mxu0 %v3947_v27  ;;  %v3994_v27 = vld [vmem:[%s7542_s9 + $0x4a8] sm:$0xff] }
 0x308   : > { %3043 = vmatprep.subr.mxu1 %v2858_v33  ;;  %v3944_v33 = vld [vmem:[%s7542_s9 + $0x318] sm:$0xff]  ;;  %2998 = vmatprep.subr.mxu0 %v3946_v29 }
 0x309   : > { %3044 = vmatpush2.msra.mxu1 %v2857_v35  ;;  %v3943_v35 = vld [vmem:[%s7542_s9 + $0x310] sm:$0xff]  ;;  %2999 = vmatpush2.msra.mxu0 %v3945_v31  ;;  %v3992_v29 = vld [vmem:[%s7542_s9 + $0x498] sm:$0xff]  ;;  %v3990_v31 = vld [vmem:[%s7542_s9 + $0x488] sm:$0xff] }
 0x30a   : > { %3045 = vmatprep.subr.mxu1 %v2856_v37  ;;  %v3942_v37 = vld [vmem:[%s7542_s9 + $0x308] sm:$0xff]  ;;  %3000 = vmatprep.subr.mxu0 %v3944_v33  ;;  %v3988_v33 = vld [vmem:[%s7542_s9 + $0x478] sm:$0xff] }
 0x30b   : > { %3046 = vmatpush2.msra.mxu1 %v2855_v39  ;;  %3001 = vmatpush2.msra.mxu0 %v3943_v35  ;;  %v4004_v39 = vld [vmem:[%s7542_s9 + $0x4f8] sm:$0xff]  ;;  %v3986_v35 = vld [vmem:[%s7542_s9 + $0x468] sm:$0xff] }
 0x30c   : > { %3047 = vmatprep.subr.mxu1 %v2854_v56  ;;  %3002 = vmatprep.subr.mxu0 %v3942_v37  ;;  %v3984_v37 = vld [vmem:[%s7542_s9 + $0x458] sm:$0xff] }
 0x30d   : > { %3048 = vmatpush2.msra.mxu1 %v2853_v44  ;;  %3003 = vmatpush2.msra.mxu0 %v3941_v38  ;;  %v3983_v38 = vld [vmem:[%s7542_s9 + $0x450] sm:$0xff] }
 0x30e   : > { %3049 = vmatprep.subr.mxu1 %v2852_v46  ;;  %3163 = vmatprep.subr.mxu0 %v4004_v39  ;;  %v2767_v46 = vrot.slane %v2762_v43, %v5542_v40  ;;  %v3982_v39 = vld [vmem:[%s7542_s9 + $0x448] sm:$0xff]  ;;  %v3979_v43 = vld [vmem:[%s7542_s9 + $0x430] sm:$0xff] }
 0x30f   : > { %3050 = vmatpush2.msra.mxu1 %v2851_v48 }
 0x310   : > { %3051 = vmatprep.subr.mxu1 %v2850_v50 }
 0x311   : > { %3052 = vmatpush2.msra.mxu1 %v2849_v1 }
 0x312   : > { %3053 = vmatprep.subr.mxu1 %v2848_v53 }
 0x313   : > { %3054 = vmatpush2.msra.mxu1 %v2847_v54 }
 0x314   : > { %3055 = vmatprep.subr.mxu1 %v2846_v60 }
 0x315   : > { %3056 = vmatpush2.msra.mxu1 %v2845_v63 }
 0x316   : > { %3057 = vmatprep.subr.mxu1 %v2844_v2 }
 0x317   : > { %3058 = vmatpush2.msra.mxu1 %v2843_v5 }
 0x318   : > { %3059 = vmatprep.subr.mxu1 %v2842_v7 }
 0x319   : > { %3060 = vmatpush2.msra.mxu1 %v2841_v9 }
 0x31a   : > { %3061 = vmatprep.subr.mxu1 %v2840_v11 }
 0x31b   : > { %3062 = vmatpush2.msra.mxu1 %v2839_v13 }
 0x31c   : > { %3063 = vmatprep.subr.mxu1 %v2838_v14 }
 0x31d   : > { %3064 = vmatpush2.msra.mxu1 %v2837_v16  ;;  %v4003_v16 = vld [vmem:[%s7542_s9 + $0x4f0] sm:$0xff] }
 0x31e   : > { %3065 = vmatprep.subr.mxu1 %v2836_v18  ;;  %v4002_v18 = vld [vmem:[%s7542_s9 + $0x4e8] sm:$0xff] }
 0x31f   : > { %3066 = vmatpush2.msra.mxu1 %v2835_v20  ;;  %v4001_v20 = vld [vmem:[%s7542_s9 + $0x4e0] sm:$0xff] }
 0x320   : > { %3067 = vmatprep.subr.mxu1 %v2834_v22  ;;  %v3999_v22 = vld [vmem:[%s7542_s9 + $0x4d0] sm:$0xff] }
 0x321   : > { %3068 = vmatpush2.msra.mxu1 %v2833_v24  ;;  %v3997_v24 = vld [vmem:[%s7542_s9 + $0x4c0] sm:$0xff] }
 0x322   : > { %3069 = vmatprep.subr.mxu1 %v2832_v26  ;;  %v3995_v26 = vld [vmem:[%s7542_s9 + $0x4b0] sm:$0xff] }
 0x323   : > { %3070 = vmatpush2.msra.mxu1 %v2831_v28  ;;  %v3993_v28 = vld [vmem:[%s7542_s9 + $0x4a0] sm:$0xff] }
 0x324   : > { %3071 = vmatprep.subr.mxu1 %v2830_v30  ;;  %v3991_v30 = vld [vmem:[%s7542_s9 + $0x490] sm:$0xff] }
 0x325   : > { %3072 = vmatpush2.msra.mxu1 %v2829_v32  ;;  %v3989_v32 = vld [vmem:[%s7542_s9 + $0x480] sm:$0xff] }
 0x326   : > { %3073 = vmatprep.subr.mxu1 %v2828_v34  ;;  %v3987_v34 = vld [vmem:[%s7542_s9 + $0x470] sm:$0xff] }
 0x327   : > { %3074 = vmatpush2.msra.mxu1 %v2827_v36  ;;  %v3985_v36 = vld [vmem:[%s7542_s9 + $0x460] sm:$0xff] }
 0x364   : > { %v2603_v56 = vpop.f32.mrf.mxu0 }
 0x366   : > { %v2605_v47 = vpop.f32.mrf.mxu0 }
 0x368   : > { %v2532_v42 = vpop.f32.mrf.mxu1 }
 0x369   : > { %v2604_v45 = vadd.f32 %v2603_v56, %v2532_v42  ;;  %v3981_v42 = vld [vmem:[%s7542_s9 + $0x440] sm:$0xff]  ;;  %v3980_v56 = vld [vmem:[%s7542_s9 + $0x438] sm:$0xff] }
 0x36a   : > { %v2534_v44 = vpop.f32.mrf.mxu1 }
 0x36b   : > { %v2606_v49 = vadd.f32 %v2605_v47, %v2534_v44  ;;  %v3978_v44 = vld [vmem:[%s7542_s9 + $0x428] sm:$0xff]  ;;  %v3975_v47 = vld [vmem:[%s7542_s9 + $0x410] sm:$0xff] }
 0x3a8   : > { %v2755_v48 = vpop.f32.mrf.mxu1 }
 0x3a9   : > { %v2760_v50 = vadd.f32 %v2755_v48, %v2604_v45  ;;  %v3977_v45 = vld [vmem:[%s7542_s9 + $0x420] sm:$0xff]  ;;  %v3974_v48 = vld [vmem:[%s7542_s9 + $0x408] sm:$0xff] }
 0x3aa   : > { %v2757_v1 = vpop.f32.mrf.mxu1 }
 0x3ab   : > { %v2774_v52 = vadd.f32 %v2767_v46, %v2760_v50  ;;  %v2761_v53 = vadd.f32 %v2757_v1, %v2606_v49  ;;  %v3976_v46 = vld [vmem:[%s7542_s9 + $0x418] sm:$0xff]  ;;  %v3973_v49 = vld [vmem:[%s7542_s9 + $0x400] sm:$0xff]  ;;  %v4034_v1 = vld [vmem:[%s7542_s9 + $0x5e8] sm:$0xff] }
 0x3ac   : > { %v4036_v50 = vld [vmem:[%s7542_s9 + $0x5f8] sm:$0xff] }
 0x3ad   : > { %v2776_v54 = vmax.f32 %v2774_v52, 0.0  ;;  %v2775_v57 = vadd.f32 %v2771_v51, %v2761_v53  ;;  %v4035_v51 = vld [vmem:[%s7542_s9 + $0x5f0] sm:$0xff]  ;;  %v4033_v52 = vld [vmem:[%s7542_s9 + $0x5e0] sm:$0xff]  ;;  %v4032_v53 = vld [vmem:[%s7542_s9 + $0x5d8] sm:$0xff] }
 0x3af   : > { %v2785_v60 = vrot.slane %v2776_v54, 7  ;;  %v2777_v62 = vmax.f32 %v2775_v57, 0.0  ;;  %v4031_v54 = vld [vmem:[%s7542_s9 + $0x5d0] sm:$0xff]  ;;  %v4030_v57 = vld [vmem:[%s7542_s9 + $0x5c8] sm:$0xff] }
 0x3b1   : > { %2789 = vst [vmem:[#allocation4] sm:$0xfe] %v2785_v60  ;;  %2791 = vst [vmem:[#allocation4 + $0x10] sm:$0x1] %v2785_v60  ;;  %v2786_v63 = vrot.slane %v2777_v62, 7  ;;  %v4029_v60 = vld [vmem:[%s7542_s9 + $0x5c0] sm:$0xff] }
 0x3b2   : > { %v4028_v62 = vld [vmem:[%s7542_s9 + $0x5b8] sm:$0xff] }
 0x3b3   : > { %2790 = vst [vmem:[#allocation4 + $0x8] sm:$0xfe] %v2786_v63  ;;  %2792 = vst [vmem:[#allocation4 + $0x18] sm:$0x1] %v2786_v63  ;;  %v4027_v63 = vld [vmem:[%s7542_s9 + $0x5b0] sm:$0xff] }
 0x3b8   : > { %v2859_v0 = vld [vmem:[#allocation4] sm:$0xfe]  ;;  %v2861_v2 = vld [vmem:[#allocation4 + $0x10] sm:$0x1] }
 0x3b9   : > { %v2793_v3 = vld [vmem:[#allocation4] sm:$0xff]  ;;  %v2932_v5 = vrot.slane %v2859_v0, 1  ;;  %v2933_v9 = vrot.slane %v2861_v2, 1  ;;  %v4026_v0 = vld [vmem:[%s7542_s9 + $0x5a8] sm:$0xff]  ;;  %v4025_v2 = vld [vmem:[%s7542_s9 + $0x5a0] sm:$0xff] }
 0x3ba   : > { %v2794_v6 = vld [vmem:[#allocation4 + $0x8] sm:$0xff]  ;;  %v2862_v8 = vld [vmem:[#allocation4 + $0x18] sm:$0x1] }
 0x3bb   : > { %v2860_v7 = vld [vmem:[#allocation4 + $0x8] sm:$0xfe]  ;;  %3075 = vmatprep.mubr.f32.mxu1 %v2794_v6  ;;  %v2936_v11 = vrot.slane %v2862_v8, 1  ;;  %v3085_v13 = vld [vmem:[#allocation4 + $0x18] sm:$0x3]  ;;  %v2934_v17 = vsel %vm1096_vm0, %v2932_v5, %v2933_v9  ;;  %v4023_v5 = vld [vmem:[%s7542_s9 + $0x590] sm:$0xff] }
 0x3bc   : > { %v2935_v10 = vrot.slane %v2860_v7, 1  ;;  %v3083_v12 = vld [vmem:[#allocation4 + $0x8] sm:$0xfc]  ;;  %3076 = vmatmul.mubr.f32.vlgmr.msra.gmra.mxu1 %v2793_v3  ;;  %v3159_v14 = vrot.slane %v3085_v13, 2  ;;  %v4022_v6 = vld [vmem:[%s7542_s9 + $0x588] sm:$0xff]  ;;  %v4021_v7 = vld [vmem:[%s7542_s9 + $0x580] sm:$0xff] }
 0x3bd   : > { %v3158_v4 = vrot.slane %v3083_v12, 2  ;;  %v4024_v3 = vld [vmem:[%s7542_s9 + $0x598] sm:$0xff]  ;;  %v4019_v9 = vld [vmem:[%s7542_s9 + $0x570] sm:$0xff] }
 0x3be   : > { %v2937_v15 = vsel %vm1096_vm0, %v2935_v10, %v2936_v11  ;;  %v4020_v8 = vld [vmem:[%s7542_s9 + $0x578] sm:$0xff]  ;;  %v4018_v10 = vld [vmem:[%s7542_s9 + $0x568] sm:$0xff]  ;;  %v4017_v11 = vld [vmem:[%s7542_s9 + $0x560] sm:$0xff] }
 0x3bf   : > { %3004 = vmatprep.mubr.f32.mxu0 %v2937_v15  ;;  %v3160_v19 = vsel %vm1320_vm3, %v3158_v4, %v3159_v14  ;;  %v4016_v12 = vld [vmem:[%s7542_s9 + $0x558] sm:$0xff]  ;;  %v4015_v13 = vld [vmem:[%s7542_s9 + $0x550] sm:$0xff]  ;;  %v4014_v4 = vld [vmem:[%s7542_s9 + $0x548] sm:$0xff] }
 0x3c0   : > { %3005 = vmatmul.mubr.f32.vlgmr.msra.gmra.mxu0 %v2934_v17  ;;  %v4013_v14 = vld [vmem:[%s7542_s9 + $0x540] sm:$0xff]  ;;  %v4012_v15 = vld [vmem:[%s7542_s9 + $0x538] sm:$0xff]  ;;  %v4010_v17 = vld [vmem:[%s7542_s9 + $0x528] sm:$0xff] }
 0x3c1   : > { %3164 = vmatpush1.msra.mxu0 %v4003_v16  ;;  %3227 = vmatprep.mubr.f32.mxu0 %v3160_v19  ;;  %v4011_v16 = vld [vmem:[%s7542_s9 + $0x530] sm:$0xff] }
 0x3c2   : > { %3165 = vmatprep.subr.mxu0 %v4002_v18  ;;  %v4009_v18 = vld [vmem:[%s7542_s9 + $0x520] sm:$0xff]  ;;  %v3082_v19 = vld [vmem:[#allocation4] sm:$0xfc] }
 0x3c3   : > { %3166 = vmatpush1.msra.mxu0 %v4001_v20  ;;  %v3084_v20 = vld [vmem:[#allocation4 + $0x10] sm:$0x3] }
 0x3c4   : > { %3167 = vmatprep.subr.mxu0 %v4000_v21  ;;  %v4008_v21 = vld [vmem:[%s7542_s9 + $0x518] sm:$0xff] }
 0x3c5   : > { %3168 = vmatpush1.msra.mxu0 %v3999_v22  ;;  %v4007_v22 = vld [vmem:[%s7542_s9 + $0x510] sm:$0xff] }
 0x3c6   : > { %3169 = vmatprep.subr.mxu0 %v3998_v23  ;;  %v4006_v23 = vld [vmem:[%s7542_s9 + $0x508] sm:$0xff] }
 0x3c7   : > { %3170 = vmatpush1.msra.mxu0 %v3997_v24  ;;  %v3155_v24 = vrot.slane %v3082_v19, 2 }
 0x3c8   : > { %3171 = vmatprep.subr.mxu0 %v3996_v25  ;;  %v3156_v25 = vrot.slane %v3084_v20, 2 }
 0x3c9   : > { %3172 = vmatpush1.msra.mxu0 %v3995_v26  ;;  %v4005_v26 = vld [vmem:[%s7542_s9 + $0x500] sm:$0xff] }
 0x3ca   : > { %3173 = vmatprep.subr.mxu0 %v3994_v27  ;;  %v3157_v27 = vsel %vm1320_vm3, %v3155_v24, %v3156_v25 }
 0x3cb   : > { %3174 = vmatpush1.msra.mxu0 %v3993_v28 }
 0x3cc   : > { %3175 = vmatprep.subr.mxu0 %v3992_v29 }
 0x3cd   : > { %3176 = vmatpush1.msra.mxu0 %v3991_v30  ;;  %v3236_v30 = vld [vmem:[%s7543_s10] sm:$0x3] }
 0x3ce   : > { %3177 = vmatprep.subr.mxu0 %v3990_v31 }
 0x3cf   : > { %3178 = vmatpush1.msra.mxu0 %v3989_v32 }
 0x3d0   : > { %3179 = vmatprep.subr.mxu0 %v3988_v33  ;;  %v3241_v33 = vrot.slane %v3236_v30, %v5542_v40 }
 0x3d1   : > { %3180 = vmatpush1.msra.mxu0 %v3987_v34 }
 0x3d2   : > { %3181 = vmatprep.subr.mxu0 %v3986_v35 }
 0x3d3   : > { %3182 = vmatpush1.msra.mxu0 %v3985_v36 }
 0x3d4   : > { %3183 = vmatprep.subr.mxu0 %v3984_v37 }
 0x3d5   : > { %3184 = vmatpush1.msra.mxu0 %v3983_v38  ;;  %v3245_v38 = vrot.slane %v3236_v30, %v5544_v41 }
 0x3d6   : > { %3185 = vmatprep.subr.mxu0 %v3982_v39 }
 0x3d7   : > { %3186 = vmatpush1.msra.mxu0 %v3981_v42 }
 0x3d8   : > { %3187 = vmatprep.subr.mxu0 %v3980_v56 }
 0x3d9   : > { %3188 = vmatpush1.msra.mxu0 %v3979_v43 }
 0x3da   : > { %3189 = vmatprep.subr.mxu0 %v3978_v44 }
 0x3db   : > { %3190 = vmatpush1.msra.mxu0 %v3977_v45 }
 0x3dc   : > { %3191 = vmatprep.subr.mxu0 %v3976_v46 }
 0x3dd   : > { %3192 = vmatpush1.msra.mxu0 %v3975_v47 }
 0x3de   : > { %3193 = vmatprep.subr.mxu0 %v3974_v48 }
 0x3df   : > { %3194 = vmatpush1.msra.mxu0 %v3973_v49 }
 0x3e0   : > { %3195 = vmatprep.subr.mxu0 %v4036_v50 }
 0x3e1   : > { %3196 = vmatpush2.msra.mxu0 %v4035_v51 }
 0x3e2   : > { %3197 = vmatprep.subr.mxu0 %v4034_v1 }
 0x3e3   : > { %3198 = vmatpush2.msra.mxu0 %v4033_v52 }
 0x3e4   : > { %3199 = vmatprep.subr.mxu0 %v4032_v53 }
 0x3e5   : > { %3200 = vmatpush2.msra.mxu0 %v4031_v54 }
 0x3e6   : > { %3201 = vmatprep.subr.mxu0 %v4030_v57 }
 0x3e7   : > { %3202 = vmatpush2.msra.mxu0 %v4029_v60 }
 0x3e8   : > { %3203 = vmatprep.subr.mxu0 %v4028_v62 }
 0x3e9   : > { %3204 = vmatpush2.msra.mxu0 %v4027_v63 }
 0x3ea   : > { %3205 = vmatprep.subr.mxu0 %v4026_v0 }
 0x3eb   : > { %3206 = vmatpush2.msra.mxu0 %v4025_v2 }
 0x3ec   : > { %3207 = vmatprep.subr.mxu0 %v4024_v3 }
 0x3ed   : > { %3208 = vmatpush2.msra.mxu0 %v4023_v5 }
 0x3ee   : > { %3209 = vmatprep.subr.mxu0 %v4022_v6 }
 0x3ef   : > { %3210 = vmatpush2.msra.mxu0 %v4021_v7 }
 0x3f0   : > { %3211 = vmatprep.subr.mxu0 %v4020_v8 }
 0x3f1   : > { %3212 = vmatpush2.msra.mxu0 %v4019_v9 }
 0x3f2   : > { %3213 = vmatprep.subr.mxu0 %v4018_v10 }
 0x3f3   : > { %3214 = vmatpush2.msra.mxu0 %v4017_v11 }
 0x3f4   : > { %3215 = vmatprep.subr.mxu0 %v4016_v12 }
 0x3f5   : > { %3216 = vmatpush2.msra.mxu0 %v4015_v13 }
 0x3f6   : > { %3217 = vmatprep.subr.mxu0 %v4014_v4 }
 0x3f7   : > { %3218 = vmatpush2.msra.mxu0 %v4013_v14 }
 0x3f8   : > { %3219 = vmatprep.subr.mxu0 %v4012_v15 }
 0x3f9   : > { %3220 = vmatpush2.msra.mxu0 %v4011_v16 }
 0x3fa   : > { %3221 = vmatprep.subr.mxu0 %v4010_v17 }
 0x3fb   : > { %3222 = vmatpush2.msra.mxu0 %v4009_v18 }
 0x3fc   : > { %3223 = vmatprep.subr.mxu0 %v4008_v21 }
 0x3fd   : > { %3224 = vmatpush2.msra.mxu0 %v4007_v22 }
 0x3fe   : > { %3225 = vmatprep.subr.mxu0 %v4006_v23 }
 0x3ff   : > { %3226 = vmatpush2.msra.mxu0 %v4005_v26 }
 0x400   : > { %3228 = vmatmul.mubr.f32.vlgmr.msra.gmra.mxu0 %v3157_v27 }
 0x47c   : > { %v3077_v29 = vpop.f32.mrf.mxu1 }
 0x47e   : > { %v3079_v34 = vpop.f32.mrf.mxu1 }
 0x480   : > { %v3006_v28 = vpop.f32.mrf.mxu0 }
 0x481   : > { %v3078_v32 = vadd.f32 %v3077_v29, %v3006_v28 }
 0x482   : > { %v3008_v31 = vpop.f32.mrf.mxu0 }
 0x483   : > { %v3080_v36 = vadd.f32 %v3079_v34, %v3008_v31 }
 0x4c0   : > { %v3229_v35 = vpop.f32.mrf.mxu0 }
 0x4c1   : > { %v3234_v37 = vadd.f32 %v3229_v35, %v3078_v32 }
 0x4c2   : > { %v3231_v39 = vpop.f32.mrf.mxu0 }
 0x4c3   : > { %v3248_v42 = vadd.f32 %v3241_v33, %v3234_v37  ;;  %v3235_v56 = vadd.f32 %v3231_v39, %v3080_v36 }
 0x4c5   : > { %v3250_v43 = vadd.f32 %v3248_v42, %v2300_v58  ;;  %v3249_v44 = vadd.f32 %v3245_v38, %v3235_v56 }
 0x4c7   : > { %v3252_v45 = vmax.f32 %v3250_v43, 0.0  ;;  %v3251_v40 = vadd.f32 %v3249_v44, %v2301_v61 }
 0x4c9   : > { %3254 = vst [vmem:[%s403_s21] sm:$0xff] %v3252_v45  ;;  %v3253_v46 = vmax.f32 %v3251_v40, 0.0 }
 0x4cb   : > { %3255 = vst [vmem:[%s403_s21 + $0x8] sm:$0xff] %v3253_v46 }
 0x4cc PF: > { %s21_s17 = sadd.s32 1, %s4057_s17  }
 0x4cd   : > { %p18_p4 = scmp.ge.s32.totalorder %s21_s17, 4  }
 0x4cf   :  { %20 = sbr.rel (!%p18_p4) target bundleno = 1 (0x1), region = 117 }

</bundles_post_ra>
